<compile_context>
chip_gen: v7x
topology: tpu7x:2x2x1
jax: 0.10.0
libtpu: 0.0.40
codegen_flags: <defaults>
</compile_context>

<pallas_src>
import jax
import jax.numpy as jnp
from jax.experimental import pallas as pl
from jax.experimental.pallas import tpu as pltpu

EPS = 1e-5           # PyTorch BatchNorm1d default eps
NEG_SLOPE = 0.2      # leaky_relu slope
K = 4                # conv kernel size
S = 2                # conv stride
ROWS = 8             # packed rows per sample (fixed for every layer)


def _conv_out_len(length):
    return (length - K) // S + 1


# ---------------------------------------------------------------------------
# Host-side weight packing: stride-2 conv on row/lane-packed activations.
#   in_row[q] holds F consecutive time steps (lane = f*Cin + c)
#   out_row[q] holds F/2 consecutive outputs (lane = j*Cout + d)
#   out_row[q] = in_row[q] @ U + in_row[q+1] @ V
# ---------------------------------------------------------------------------
def _pack_conv_weights(w, f_in):
    d, c, _ = w.shape                       # (Cout, Cin, K) PyTorch layout
    g = f_in // 2
    wt = jnp.transpose(w, (2, 1, 0)).astype(jnp.float32)      # (K, Cin, Cout)
    u = jnp.zeros((f_in * c, g * d), jnp.float32)
    v = jnp.zeros((f_in * c, g * d), jnp.float32)
    for j in range(g):
        for k in range(K):
            f = 2 * j + k
            blk = wt[k]                                        # (Cin, Cout)
            if f < f_in:
                u = u.at[f * c:(f + 1) * c, j * d:(j + 1) * d].set(blk)
            else:
                v = v.at[(f - f_in) * c:(f - f_in + 1) * c,
                         j * d:(j + 1) * d].set(blk)
    return u, v


# ---------------------------------------------------------------------------
# Single fused kernel (all 2-D values, full-ref loads/stores only)
# ---------------------------------------------------------------------------
def _make_kernel(n, m1, m2, m3):
    def kernel(xp_ref,
               u1_ref, v1_ref, g1_ref, be1_ref,
               u2_ref, v2_ref, g2_ref, be2_ref,
               u3_ref, v3_ref, g3_ref, be3_ref,
               u4_ref, v4_ref, b4_ref,
               wsel_ref, bfc_ref,
               o_ref):

        def shift_up(z, k):
            pad = jnp.zeros((k, z.shape[1]), z.dtype)
            return jnp.concatenate([z[k:, :], pad], axis=0)

        def conv(a, u_ref, v_ref):
            zu = jnp.dot(a, u_ref[...], preferred_element_type=jnp.float32)
            zv = jnp.dot(a, v_ref[...], preferred_element_type=jnp.float32)
            return zu + shift_up(zv, 1)          # out_row[q] = in[q]@U + in[q+1]@V

        def bn_lrelu(y, g_ref, be_ref, gl, dl, ml):
            # training-mode BatchNorm over the n*ml valid positions, one pass.
            shift_amt = dl.bit_length() - 1
            row_i = jax.lax.broadcasted_iota(jnp.int32, y.shape, 0)
            lane_i = jax.lax.broadcasted_iota(jnp.int32, y.shape, 1)
            pos = gl * (row_i & (ROWS - 1)) + (lane_i >> shift_amt)
            mask = (pos < ml).astype(jnp.float32)
            ym = y * mask
            ym2 = y * ym
            s_blk = ym[:, 0:dl]
            q_blk = ym2[:, 0:dl]
            for j in range(1, gl):               # fold lane blocks -> per channel
                s_blk = s_blk + ym[:, j * dl:(j + 1) * dl]
                q_blk = q_blk + ym2[:, j * dl:(j + 1) * dl]
            inv_cnt = 1.0 / float(n * ml)
            mean = s_blk.sum(axis=0, keepdims=True) * inv_cnt        # (1, D)
            ex2 = q_blk.sum(axis=0, keepdims=True) * inv_cnt
            var = ex2 - mean * mean
            scale = g_ref[...] * jax.lax.rsqrt(var + EPS)
            shift = be_ref[...] - mean * scale
            scale_t = jnp.concatenate([scale] * gl, axis=1)          # (1, G*D)
            shift_t = jnp.concatenate([shift] * gl, axis=1)
            z = y * scale_t + shift_t
            return jnp.where(z > 0, z, NEG_SLOPE * z)

        # ---- layers 1..3: conv (bias cancelled by BN) + BN + LeakyReLU
        a0 = xp_ref[...]                                            # (N*8,  96)
        a1 = bn_lrelu(conv(a0, u1_ref, v1_ref), g1_ref, be1_ref, 8, 64, m1)
        a2 = bn_lrelu(conv(a1, u2_ref, v2_ref), g2_ref, be2_ref, 4, 128, m2)
        a3 = bn_lrelu(conv(a2, u3_ref, v3_ref), g3_ref, be3_ref, 2, 256, m3)

        # ---- layer 4 (Cout=1, with bias) + LeakyReLU + Linear(6,1) + sigmoid
        y4 = conv(a3, u4_ref, v4_ref) + b4_ref[...]                 # (N*8, 1)
        act = jnp.where(y4 > 0, y4, NEG_SLOPE * y4)
        w = act * wsel_ref[...]          # fc weights placed per row, 0 on pad rows
        w = w + shift_up(w, 1)           # log2 tree: row n*8 = sum of that sample
        w = w + shift_up(w, 2)
        w = w + shift_up(w, 4)
        logit = w + bfc_ref[...]
        o_ref[...] = 1.0 / (1.0 + jnp.exp(-logit))
    return kernel


# ---------------------------------------------------------------------------
# Wrapper
# ---------------------------------------------------------------------------
def _full_spec(shape):
    rank = len(shape)
    return pl.BlockSpec(shape, lambda i: (0,) * rank)


def discriminator_forward(x, params):
    """x: (N, 6, L) PyTorch NCL layout; returns (N, 1, 1)."""
    n, cin, length = x.shape
    assert cin == 6
    l1 = _conv_out_len(length)
    l2 = _conv_out_len(l1)
    l3 = _conv_out_len(l2)
    l4 = _conv_out_len(l3)
    assert l4 == 6 and length <= 16 * ROWS, (
        "input length must yield a final conv length of 6 (Linear(6,1))")

    # Pack input: channels-last, zero-pad length to 128, 16 time-steps per row.
    x_cl = jnp.transpose(x, (0, 2, 1)).astype(jnp.float32)           # (N, L, 6)
    x_pad = jnp.pad(x_cl, ((0, 0), (0, 16 * ROWS - length), (0, 0)))  # (N, 128, 6)
    xp = x_pad.reshape(n * ROWS, 16 * cin)                           # (N*8, 96)

    u1, v1 = _pack_conv_weights(params["c1_w"], 16)
    u2, v2 = _pack_conv_weights(params["c2_w"], 8)
    u3, v3 = _pack_conv_weights(params["c3_w"], 4)
    u4, v4 = _pack_conv_weights(params["c4_w"], 2)

    def row(v):
        return v.reshape(1, -1).astype(jnp.float32)

    b4 = params["c4_b"].reshape(1, 1).astype(jnp.float32)
    wfc = params["fc_w"].reshape(-1).astype(jnp.float32)             # (6,)
    wsel = jnp.concatenate([wfc, jnp.zeros((ROWS - 6,), jnp.float32)])
    wsel = jnp.tile(wsel.reshape(1, ROWS), (n, 1)).reshape(n * ROWS, 1)
    bfc = params["fc_b"].reshape(1, 1).astype(jnp.float32)

    args = [xp,
            u1, v1, row(params["c1_bn_g"]), row(params["c1_bn_b"]),
            u2, v2, row(params["c2_bn_g"]), row(params["c2_bn_b"]),
            u3, v3, row(params["c3_bn_g"]), row(params["c3_bn_b"]),
            u4, v4, b4,
            wsel, bfc]

    out_full = pl.pallas_call(
        _make_kernel(n, l1, l2, l3),
        out_shape=jax.ShapeDtypeStruct((n * ROWS, 1), jnp.float32),
        grid=(1,),
        in_specs=[_full_spec(a.shape) for a in args],
        out_specs=_full_spec((n * ROWS, 1)),
        compiler_params=pltpu.CompilerParams(
            dimension_semantics=("arbitrary",),
            vmem_limit_bytes=32 * 1024 * 1024),
    )(*args)
    # Row n*8 of the kernel output holds sample n's result.
    return out_full[0::ROWS].reshape(n, 1, 1)


# ---------------------------------------------------------------------------
# Pure-JAX reference (for in-script validation)
# ---------------------------------------------------------------------------
def _reference_forward(x, params):
    def conv1d(a, w, b):
        lout = _conv_out_len(a.shape[2])
        cols = jnp.stack([a[:, :, 2 * t:2 * t + K] for t in range(lout)], axis=2)
        return jnp.einsum('ncts,dcs->ndt', cols, w) + b[None, :, None]

    def bn(a, g, b):
        mean = a.mean(axis=(0, 2), keepdims=True)
        var = a.var(axis=(0, 2), keepdims=True)          # biased, training mode
        return (a - mean) * jax.lax.rsqrt(var + EPS) * g[None, :, None] + b[None, :, None]

    def lrelu(a):
        return jnp.where(a > 0, a, NEG_SLOPE * a)

    h = lrelu(bn(conv1d(x, params["c1_w"], params["c1_b"]),
                 params["c1_bn_g"], params["c1_bn_b"]))
    h = lrelu(bn(conv1d(h, params["c2_w"], params["c2_b"]),
                 params["c2_bn_g"], params["c2_bn_b"]))
    h = lrelu(bn(conv1d(h, params["c3_w"], params["c3_b"]),
                 params["c3_bn_g"], params["c3_bn_b"]))
    h = lrelu(conv1d(h, params["c4_w"], params["c4_b"]))             # (N, 1, 6)
    logit = jnp.einsum('nct,ot->nco', h, params["fc_w"]) + params["fc_b"]
    return jax.nn.sigmoid(logit)


# ---------------------------------------------------------------------------
# Deterministic parameter init (PyTorch-style uniform fan-in bounds)
# ---------------------------------------------------------------------------
_LAYERS = [("c1", 6, 64, True),
           ("c2", 64, 128, True),
           ("c3", 128, 256, True),
           ("c4", 256, 1, False)]


def init_params(key):
    params = {}
    keys = jax.random.split(key, 2 * len(_LAYERS) + 2)
    ki = 0
    for name, cin, cout, has_bn in _LAYERS:
        bound = 1.0 / jnp.sqrt(cin * float(K))
        params[name + "_w"] = jax.random.uniform(
            keys[ki], (cout, cin, K), jnp.float32, -bound, bound); ki += 1
        # c1-c3 biases exist to mirror the PyTorch module; they are exactly
        # cancelled by BatchNorm's mean subtraction so the kernel never uses them.
        params[name + "_b"] = jax.random.uniform(
            keys[ki], (cout,), jnp.float32, -bound, bound); ki += 1
        if has_bn:
            params[name + "_bn_g"] = jnp.ones((cout,), jnp.float32)
            params[name + "_bn_b"] = jnp.zeros((cout,), jnp.float32)
    bound = 1.0 / jnp.sqrt(6.0)
    params["fc_w"] = jax.random.uniform(keys[ki], (1, 6), jnp.float32, -bound, bound); ki += 1
    params["fc_b"] = jax.random.uniform(keys[ki], (1,), jnp.float32, -bound, bound); ki += 1
    return params


if __name__ == "__main__":
    key = jax.random.PRNGKey(0)
    pkey, xkey = jax.random.split(key)
    params = init_params(pkey)
    # Input length 126 -> conv chain 62 -> 30 -> 14 -> 6, matching Linear(6, 1).
    x = jax.random.normal(xkey, (2, 6, 126), jnp.float32)

    fwd = jax.jit(discriminator_forward)
    out = jax.block_until_ready(fwd(x, params))
    assert out.shape == (2, 1, 1)
    assert bool(jnp.all(jnp.isfinite(out))) and bool(jnp.all((out > 0) & (out < 1)))

    ref = _reference_forward(x, params)
    max_err = float(jnp.max(jnp.abs(out - ref)))
    assert max_err < 5e-3, f"mismatch vs reference: {max_err}"
    print("KERNEL_OK")
</pallas_src>

<mosaic_0001>
module attributes {stable_mosaic.version = 11 : i64} {
  func.func @kernel(%arg0: i32, %arg1: memref<16x96xf32, #tpu.memory_space<vmem>>, %arg2: memref<96x512xf32, #tpu.memory_space<vmem>>, %arg3: memref<96x512xf32, #tpu.memory_space<vmem>>, %arg4: memref<1x64xf32, #tpu.memory_space<vmem>>, %arg5: memref<1x64xf32, #tpu.memory_space<vmem>>, %arg6: memref<512x512xf32, #tpu.memory_space<vmem>>, %arg7: memref<512x512xf32, #tpu.memory_space<vmem>>, %arg8: memref<1x128xf32, #tpu.memory_space<vmem>>, %arg9: memref<1x128xf32, #tpu.memory_space<vmem>>, %arg10: memref<512x512xf32, #tpu.memory_space<vmem>>, %arg11: memref<512x512xf32, #tpu.memory_space<vmem>>, %arg12: memref<1x256xf32, #tpu.memory_space<vmem>>, %arg13: memref<1x256xf32, #tpu.memory_space<vmem>>, %arg14: memref<512x1xf32, #tpu.memory_space<vmem>>, %arg15: memref<512x1xf32, #tpu.memory_space<vmem>>, %arg16: memref<1x1xf32, #tpu.memory_space<vmem>>, %arg17: memref<16x1xf32, #tpu.memory_space<vmem>>, %arg18: memref<1x1xf32, #tpu.memory_space<vmem>>, %arg19: memref<16x1xf32, #tpu.memory_space<vmem>>) attributes {dimension_semantics = [#tpu.dimension_semantics<arbitrary>], iteration_bounds = array<i64: 1>, scalar_prefetch = 0 : i64, scratch_operands = 0 : i64, tpu.core_type = #tpu.core_type<tc>, window_params = [{pipeline_mode = #tpu.pipeline_mode<synchronous>, transform_indices = @transform_0, window_bounds = array<i64: 16, 96>}, {pipeline_mode = #tpu.pipeline_mode<synchronous>, transform_indices = @transform_1, window_bounds = array<i64: 96, 512>}, {pipeline_mode = #tpu.pipeline_mode<synchronous>, transform_indices = @transform_2, window_bounds = array<i64: 96, 512>}, {pipeline_mode = #tpu.pipeline_mode<synchronous>, transform_indices = @transform_3, window_bounds = array<i64: 1, 64>}, {pipeline_mode = #tpu.pipeline_mode<synchronous>, transform_indices = @transform_4, window_bounds = array<i64: 1, 64>}, {pipeline_mode = #tpu.pipeline_mode<synchronous>, transform_indices = @transform_5, window_bounds = array<i64: 512, 512>}, {pipeline_mode = #tpu.pipeline_mode<synchronous>, transform_indices = @transform_6, window_bounds = array<i64: 512, 512>}, {pipeline_mode = #tpu.pipeline_mode<synchronous>, transform_indices = @transform_7, window_bounds = array<i64: 1, 128>}, {pipeline_mode = #tpu.pipeline_mode<synchronous>, transform_indices = @transform_8, window_bounds = array<i64: 1, 128>}, {pipeline_mode = #tpu.pipeline_mode<synchronous>, transform_indices = @transform_9, window_bounds = array<i64: 512, 512>}, {pipeline_mode = #tpu.pipeline_mode<synchronous>, transform_indices = @transform_10, window_bounds = array<i64: 512, 512>}, {pipeline_mode = #tpu.pipeline_mode<synchronous>, transform_indices = @transform_11, window_bounds = array<i64: 1, 256>}, {pipeline_mode = #tpu.pipeline_mode<synchronous>, transform_indices = @transform_12, window_bounds = array<i64: 1, 256>}, {pipeline_mode = #tpu.pipeline_mode<synchronous>, transform_indices = @transform_13, window_bounds = array<i64: 512, 1>}, {pipeline_mode = #tpu.pipeline_mode<synchronous>, transform_indices = @transform_14, window_bounds = array<i64: 512, 1>}, {pipeline_mode = #tpu.pipeline_mode<synchronous>, transform_indices = @transform_15, window_bounds = array<i64: 1, 1>}, {pipeline_mode = #tpu.pipeline_mode<synchronous>, transform_indices = @transform_16, window_bounds = array<i64: 16, 1>}, {pipeline_mode = #tpu.pipeline_mode<synchronous>, transform_indices = @transform_17, window_bounds = array<i64: 1, 1>}, {pipeline_mode = #tpu.pipeline_mode<synchronous>, transform_indices = @transform_18, window_bounds = array<i64: 16, 1>}]} {
    %c0 = arith.constant 0 : index
    %c0_0 = arith.constant 0 : index
    %0 = vector.load %arg1[%c0, %c0_0] : memref<16x96xf32, #tpu.memory_space<vmem>>, vector<16x96xf32>
    %c0_1 = arith.constant 0 : index
    %c0_2 = arith.constant 0 : index
    %1 = vector.load %arg2[%c0_1, %c0_2] : memref<96x512xf32, #tpu.memory_space<vmem>>, vector<96x512xf32>
    %cst = arith.constant dense<0.000000e+00> : vector<16x512xf32>
    %2 = tpu.matmul %0, %1, %cst {dimension_numbers = #tpu.dot_dimension_numbers<[1], [0], [0], [1], [0, 0, 1, 1], [], []>} : vector<16x96xf32>, vector<96x512xf32>, vector<16x512xf32> -> vector<16x512xf32>
    %c0_3 = arith.constant 0 : index
    %c0_4 = arith.constant 0 : index
    %3 = vector.load %arg3[%c0_3, %c0_4] : memref<96x512xf32, #tpu.memory_space<vmem>>, vector<96x512xf32>
    %cst_5 = arith.constant dense<0.000000e+00> : vector<16x512xf32>
    %4 = tpu.matmul %0, %3, %cst_5 {dimension_numbers = #tpu.dot_dimension_numbers<[1], [0], [0], [1], [0, 0, 1, 1], [], []>} : vector<16x96xf32>, vector<96x512xf32>, vector<16x512xf32> -> vector<16x512xf32>
    %cst_6 = arith.constant 0.000000e+00 : f32
    %5 = vector.broadcast %cst_6 : f32 to vector<1x512xf32>
    %6 = vector.extract_strided_slice %4 {offsets = [1, 0], sizes = [15, 512], strides = [1, 1]} : vector<16x512xf32> to vector<15x512xf32>
    %7 = tpu.concatenate %6, %5 in 0 : vector<15x512xf32>, vector<1x512xf32> -> vector<16x512xf32>
    %8 = arith.addf %2, %7 : vector<16x512xf32>
    %9 = tpu.iota {dimensions = array<i32: 0>} : vector<16x512xi32>
    %10 = tpu.iota {dimensions = array<i32: 1>} : vector<16x512xi32>
    %c7_i32 = arith.constant 7 : i32
    %11 = vector.broadcast %c7_i32 : i32 to vector<16x512xi32>
    %12 = arith.andi %9, %11 : vector<16x512xi32>
    %c8_i32 = arith.constant 8 : i32
    %13 = vector.broadcast %c8_i32 : i32 to vector<16x512xi32>
    %14 = arith.muli %13, %12 : vector<16x512xi32>
    %c6_i32 = arith.constant 6 : i32
    %15 = vector.broadcast %c6_i32 : i32 to vector<16x512xi32>
    %16 = arith.shrsi %10, %15 : vector<16x512xi32>
    %17 = arith.addi %14, %16 : vector<16x512xi32>
    %c62_i32 = arith.constant 62 : i32
    %18 = vector.broadcast %c62_i32 : i32 to vector<16x512xi32>
    %19 = arith.cmpi slt, %17, %18 : vector<16x512xi32>
    %20 = arith.extui %19 : vector<16x512xi1> to vector<16x512xi32>
    %21 = arith.sitofp %20 : vector<16x512xi32> to vector<16x512xf32>
    %22 = arith.mulf %8, %21 : vector<16x512xf32>
    %23 = arith.mulf %8, %22 : vector<16x512xf32>
    %24 = vector.extract_strided_slice %22 {offsets = [0, 0], sizes = [16, 64], strides = [1, 1]} : vector<16x512xf32> to vector<16x64xf32>
    %25 = vector.extract_strided_slice %23 {offsets = [0, 0], sizes = [16, 64], strides = [1, 1]} : vector<16x512xf32> to vector<16x64xf32>
    %26 = vector.extract_strided_slice %22 {offsets = [0, 64], sizes = [16, 64], strides = [1, 1]} : vector<16x512xf32> to vector<16x64xf32>
    %27 = arith.addf %24, %26 : vector<16x64xf32>
    %28 = vector.extract_strided_slice %23 {offsets = [0, 64], sizes = [16, 64], strides = [1, 1]} : vector<16x512xf32> to vector<16x64xf32>
    %29 = arith.addf %25, %28 : vector<16x64xf32>
    %30 = vector.extract_strided_slice %22 {offsets = [0, 128], sizes = [16, 64], strides = [1, 1]} : vector<16x512xf32> to vector<16x64xf32>
    %31 = arith.addf %27, %30 : vector<16x64xf32>
    %32 = vector.extract_strided_slice %23 {offsets = [0, 128], sizes = [16, 64], strides = [1, 1]} : vector<16x512xf32> to vector<16x64xf32>
    %33 = arith.addf %29, %32 : vector<16x64xf32>
    %34 = vector.extract_strided_slice %22 {offsets = [0, 192], sizes = [16, 64], strides = [1, 1]} : vector<16x512xf32> to vector<16x64xf32>
    %35 = arith.addf %31, %34 : vector<16x64xf32>
    %36 = vector.extract_strided_slice %23 {offsets = [0, 192], sizes = [16, 64], strides = [1, 1]} : vector<16x512xf32> to vector<16x64xf32>
    %37 = arith.addf %33, %36 : vector<16x64xf32>
    %38 = vector.extract_strided_slice %22 {offsets = [0, 256], sizes = [16, 64], strides = [1, 1]} : vector<16x512xf32> to vector<16x64xf32>
    %39 = arith.addf %35, %38 : vector<16x64xf32>
    %40 = vector.extract_strided_slice %23 {offsets = [0, 256], sizes = [16, 64], strides = [1, 1]} : vector<16x512xf32> to vector<16x64xf32>
    %41 = arith.addf %37, %40 : vector<16x64xf32>
    %42 = vector.extract_strided_slice %22 {offsets = [0, 320], sizes = [16, 64], strides = [1, 1]} : vector<16x512xf32> to vector<16x64xf32>
    %43 = arith.addf %39, %42 : vector<16x64xf32>
    %44 = vector.extract_strided_slice %23 {offsets = [0, 320], sizes = [16, 64], strides = [1, 1]} : vector<16x512xf32> to vector<16x64xf32>
    %45 = arith.addf %41, %44 : vector<16x64xf32>
    %46 = vector.extract_strided_slice %22 {offsets = [0, 384], sizes = [16, 64], strides = [1, 1]} : vector<16x512xf32> to vector<16x64xf32>
    %47 = arith.addf %43, %46 : vector<16x64xf32>
    %48 = vector.extract_strided_slice %23 {offsets = [0, 384], sizes = [16, 64], strides = [1, 1]} : vector<16x512xf32> to vector<16x64xf32>
    %49 = arith.addf %45, %48 : vector<16x64xf32>
    %50 = vector.extract_strided_slice %22 {offsets = [0, 448], sizes = [16, 64], strides = [1, 1]} : vector<16x512xf32> to vector<16x64xf32>
    %51 = arith.addf %47, %50 : vector<16x64xf32>
    %52 = vector.extract_strided_slice %23 {offsets = [0, 448], sizes = [16, 64], strides = [1, 1]} : vector<16x512xf32> to vector<16x64xf32>
    %53 = arith.addf %49, %52 : vector<16x64xf32>
    %cst_7 = arith.constant dense<0.000000e+00> : vector<64xf32>
    %54 = vector.multi_reduction <add>, %51, %cst_7 [0] : vector<16x64xf32> to vector<64xf32>
    %55 = vector.shape_cast %54 : vector<64xf32> to vector<1x64xf32>
    %cst_8 = arith.constant 0.00806451589 : f32
    %56 = vector.broadcast %cst_8 : f32 to vector<1x64xf32>
    %57 = arith.mulf %55, %56 : vector<1x64xf32>
    %cst_9 = arith.constant dense<0.000000e+00> : vector<64xf32>
    %58 = vector.multi_reduction <add>, %53, %cst_9 [0] : vector<16x64xf32> to vector<64xf32>
    %59 = vector.shape_cast %58 : vector<64xf32> to vector<1x64xf32>
    %cst_10 = arith.constant 0.00806451589 : f32
    %60 = vector.broadcast %cst_10 : f32 to vector<1x64xf32>
    %61 = arith.mulf %59, %60 : vector<1x64xf32>
    %62 = arith.mulf %57, %57 : vector<1x64xf32>
    %63 = arith.subf %61, %62 : vector<1x64xf32>
    %c0_11 = arith.constant 0 : index
    %c0_12 = arith.constant 0 : index
    %64 = vector.load %arg4[%c0_11, %c0_12] : memref<1x64xf32, #tpu.memory_space<vmem>>, vector<1x64xf32>
    %cst_13 = arith.constant 9.99999974E-6 : f32
    %65 = vector.broadcast %cst_13 : f32 to vector<1x64xf32>
    %66 = arith.addf %63, %65 : vector<1x64xf32>
    %67 = math.rsqrt %66 : vector<1x64xf32>
    %68 = arith.mulf %64, %67 : vector<1x64xf32>
    %c0_14 = arith.constant 0 : index
    %c0_15 = arith.constant 0 : index
    %69 = vector.load %arg5[%c0_14, %c0_15] : memref<1x64xf32, #tpu.memory_space<vmem>>, vector<1x64xf32>
    %70 = arith.mulf %57, %68 : vector<1x64xf32>
    %71 = arith.subf %69, %70 : vector<1x64xf32>
    %72 = tpu.concatenate %68, %68, %68, %68, %68, %68, %68, %68 in 1 : vector<1x64xf32>, vector<1x64xf32>, vector<1x64xf32>, vector<1x64xf32>, vector<1x64xf32>, vector<1x64xf32>, vector<1x64xf32>, vector<1x64xf32> -> vector<1x512xf32>
    %73 = tpu.concatenate %71, %71, %71, %71, %71, %71, %71, %71 in 1 : vector<1x64xf32>, vector<1x64xf32>, vector<1x64xf32>, vector<1x64xf32>, vector<1x64xf32>, vector<1x64xf32>, vector<1x64xf32>, vector<1x64xf32> -> vector<1x512xf32>
    %74 = vector.broadcast %72 : vector<1x512xf32> to vector<16x512xf32>
    %75 = arith.mulf %8, %74 : vector<16x512xf32>
    %76 = vector.broadcast %73 : vector<1x512xf32> to vector<16x512xf32>
    %77 = arith.addf %75, %76 : vector<16x512xf32>
    %cst_16 = arith.constant 0.000000e+00 : f32
    %78 = vector.broadcast %cst_16 : f32 to vector<16x512xf32>
    %79 = arith.cmpf ogt, %77, %78 : vector<16x512xf32>
    %cst_17 = arith.constant 2.000000e-01 : f32
    %80 = vector.broadcast %cst_17 : f32 to vector<16x512xf32>
    %81 = arith.mulf %80, %77 : vector<16x512xf32>
    %82 = arith.select %79, %77, %81 : vector<16x512xi1>, vector<16x512xf32>
    %c0_18 = arith.constant 0 : index
    %c0_19 = arith.constant 0 : index
    %83 = vector.load %arg6[%c0_18, %c0_19] : memref<512x512xf32, #tpu.memory_space<vmem>>, vector<512x512xf32>
    %cst_20 = arith.constant dense<0.000000e+00> : vector<16x512xf32>
    %84 = tpu.matmul %82, %83, %cst_20 {dimension_numbers = #tpu.dot_dimension_numbers<[1], [0], [0], [1], [0, 0, 1, 1], [], []>} : vector<16x512xf32>, vector<512x512xf32>, vector<16x512xf32> -> vector<16x512xf32>
    %c0_21 = arith.constant 0 : index
    %c0_22 = arith.constant 0 : index
    %85 = vector.load %arg7[%c0_21, %c0_22] : memref<512x512xf32, #tpu.memory_space<vmem>>, vector<512x512xf32>
    %cst_23 = arith.constant dense<0.000000e+00> : vector<16x512xf32>
    %86 = tpu.matmul %82, %85, %cst_23 {dimension_numbers = #tpu.dot_dimension_numbers<[1], [0], [0], [1], [0, 0, 1, 1], [], []>} : vector<16x512xf32>, vector<512x512xf32>, vector<16x512xf32> -> vector<16x512xf32>
    %cst_24 = arith.constant 0.000000e+00 : f32
    %87 = vector.broadcast %cst_24 : f32 to vector<1x512xf32>
    %88 = vector.extract_strided_slice %86 {offsets = [1, 0], sizes = [15, 512], strides = [1, 1]} : vector<16x512xf32> to vector<15x512xf32>
    %89 = tpu.concatenate %88, %87 in 0 : vector<15x512xf32>, vector<1x512xf32> -> vector<16x512xf32>
    %90 = arith.addf %84, %89 : vector<16x512xf32>
    %91 = tpu.iota {dimensions = array<i32: 0>} : vector<16x512xi32>
    %92 = tpu.iota {dimensions = array<i32: 1>} : vector<16x512xi32>
    %c7_i32_25 = arith.constant 7 : i32
    %93 = vector.broadcast %c7_i32_25 : i32 to vector<16x512xi32>
    %94 = arith.andi %91, %93 : vector<16x512xi32>
    %c4_i32 = arith.constant 4 : i32
    %95 = vector.broadcast %c4_i32 : i32 to vector<16x512xi32>
    %96 = arith.muli %95, %94 : vector<16x512xi32>
    %c7_i32_26 = arith.constant 7 : i32
    %97 = vector.broadcast %c7_i32_26 : i32 to vector<16x512xi32>
    %98 = arith.shrsi %92, %97 : vector<16x512xi32>
    %99 = arith.addi %96, %98 : vector<16x512xi32>
    %c30_i32 = arith.constant 30 : i32
    %100 = vector.broadcast %c30_i32 : i32 to vector<16x512xi32>
    %101 = arith.cmpi slt, %99, %100 : vector<16x512xi32>
    %102 = arith.extui %101 : vector<16x512xi1> to vector<16x512xi32>
    %103 = arith.sitofp %102 : vector<16x512xi32> to vector<16x512xf32>
    %104 = arith.mulf %90, %103 : vector<16x512xf32>
    %105 = arith.mulf %90, %104 : vector<16x512xf32>
    %106 = vector.extract_strided_slice %104 {offsets = [0, 0], sizes = [16, 128], strides = [1, 1]} : vector<16x512xf32> to vector<16x128xf32>
    %107 = vector.extract_strided_slice %105 {offsets = [0, 0], sizes = [16, 128], strides = [1, 1]} : vector<16x512xf32> to vector<16x128xf32>
    %108 = vector.extract_strided_slice %104 {offsets = [0, 128], sizes = [16, 128], strides = [1, 1]} : vector<16x512xf32> to vector<16x128xf32>
    %109 = arith.addf %106, %108 : vector<16x128xf32>
    %110 = vector.extract_strided_slice %105 {offsets = [0, 128], sizes = [16, 128], strides = [1, 1]} : vector<16x512xf32> to vector<16x128xf32>
    %111 = arith.addf %107, %110 : vector<16x128xf32>
    %112 = vector.extract_strided_slice %104 {offsets = [0, 256], sizes = [16, 128], strides = [1, 1]} : vector<16x512xf32> to vector<16x128xf32>
    %113 = arith.addf %109, %112 : vector<16x128xf32>
    %114 = vector.extract_strided_slice %105 {offsets = [0, 256], sizes = [16, 128], strides = [1, 1]} : vector<16x512xf32> to vector<16x128xf32>
    %115 = arith.addf %111, %114 : vector<16x128xf32>
    %116 = vector.extract_strided_slice %104 {offsets = [0, 384], sizes = [16, 128], strides = [1, 1]} : vector<16x512xf32> to vector<16x128xf32>
    %117 = arith.addf %113, %116 : vector<16x128xf32>
    %118 = vector.extract_strided_slice %105 {offsets = [0, 384], sizes = [16, 128], strides = [1, 1]} : vector<16x512xf32> to vector<16x128xf32>
    %119 = arith.addf %115, %118 : vector<16x128xf32>
    %cst_27 = arith.constant dense<0.000000e+00> : vector<128xf32>
    %120 = vector.multi_reduction <add>, %117, %cst_27 [0] : vector<16x128xf32> to vector<128xf32>
    %121 = vector.shape_cast %120 : vector<128xf32> to vector<1x128xf32>
    %cst_28 = arith.constant 0.0166666675 : f32
    %122 = vector.broadcast %cst_28 : f32 to vector<1x128xf32>
    %123 = arith.mulf %121, %122 : vector<1x128xf32>
    %cst_29 = arith.constant dense<0.000000e+00> : vector<128xf32>
    %124 = vector.multi_reduction <add>, %119, %cst_29 [0] : vector<16x128xf32> to vector<128xf32>
    %125 = vector.shape_cast %124 : vector<128xf32> to vector<1x128xf32>
    %cst_30 = arith.constant 0.0166666675 : f32
    %126 = vector.broadcast %cst_30 : f32 to vector<1x128xf32>
    %127 = arith.mulf %125, %126 : vector<1x128xf32>
    %128 = arith.mulf %123, %123 : vector<1x128xf32>
    %129 = arith.subf %127, %128 : vector<1x128xf32>
    %c0_31 = arith.constant 0 : index
    %c0_32 = arith.constant 0 : index
    %130 = vector.load %arg8[%c0_31, %c0_32] : memref<1x128xf32, #tpu.memory_space<vmem>>, vector<1x128xf32>
    %cst_33 = arith.constant 9.99999974E-6 : f32
    %131 = vector.broadcast %cst_33 : f32 to vector<1x128xf32>
    %132 = arith.addf %129, %131 : vector<1x128xf32>
    %133 = math.rsqrt %132 : vector<1x128xf32>
    %134 = arith.mulf %130, %133 : vector<1x128xf32>
    %c0_34 = arith.constant 0 : index
    %c0_35 = arith.constant 0 : index
    %135 = vector.load %arg9[%c0_34, %c0_35] : memref<1x128xf32, #tpu.memory_space<vmem>>, vector<1x128xf32>
    %136 = arith.mulf %123, %134 : vector<1x128xf32>
    %137 = arith.subf %135, %136 : vector<1x128xf32>
    %138 = tpu.concatenate %134, %134, %134, %134 in 1 : vector<1x128xf32>, vector<1x128xf32>, vector<1x128xf32>, vector<1x128xf32> -> vector<1x512xf32>
    %139 = tpu.concatenate %137, %137, %137, %137 in 1 : vector<1x128xf32>, vector<1x128xf32>, vector<1x128xf32>, vector<1x128xf32> -> vector<1x512xf32>
    %140 = vector.broadcast %138 : vector<1x512xf32> to vector<16x512xf32>
    %141 = arith.mulf %90, %140 : vector<16x512xf32>
    %142 = vector.broadcast %139 : vector<1x512xf32> to vector<16x512xf32>
    %143 = arith.addf %141, %142 : vector<16x512xf32>
    %cst_36 = arith.constant 0.000000e+00 : f32
    %144 = vector.broadcast %cst_36 : f32 to vector<16x512xf32>
    %145 = arith.cmpf ogt, %143, %144 : vector<16x512xf32>
    %cst_37 = arith.constant 2.000000e-01 : f32
    %146 = vector.broadcast %cst_37 : f32 to vector<16x512xf32>
    %147 = arith.mulf %146, %143 : vector<16x512xf32>
    %148 = arith.select %145, %143, %147 : vector<16x512xi1>, vector<16x512xf32>
    %c0_38 = arith.constant 0 : index
    %c0_39 = arith.constant 0 : index
    %149 = vector.load %arg10[%c0_38, %c0_39] : memref<512x512xf32, #tpu.memory_space<vmem>>, vector<512x512xf32>
    %cst_40 = arith.constant dense<0.000000e+00> : vector<16x512xf32>
    %150 = tpu.matmul %148, %149, %cst_40 {dimension_numbers = #tpu.dot_dimension_numbers<[1], [0], [0], [1], [0, 0, 1, 1], [], []>} : vector<16x512xf32>, vector<512x512xf32>, vector<16x512xf32> -> vector<16x512xf32>
    %c0_41 = arith.constant 0 : index
    %c0_42 = arith.constant 0 : index
    %151 = vector.load %arg11[%c0_41, %c0_42] : memref<512x512xf32, #tpu.memory_space<vmem>>, vector<512x512xf32>
    %cst_43 = arith.constant dense<0.000000e+00> : vector<16x512xf32>
    %152 = tpu.matmul %148, %151, %cst_43 {dimension_numbers = #tpu.dot_dimension_numbers<[1], [0], [0], [1], [0, 0, 1, 1], [], []>} : vector<16x512xf32>, vector<512x512xf32>, vector<16x512xf32> -> vector<16x512xf32>
    %cst_44 = arith.constant 0.000000e+00 : f32
    %153 = vector.broadcast %cst_44 : f32 to vector<1x512xf32>
    %154 = vector.extract_strided_slice %152 {offsets = [1, 0], sizes = [15, 512], strides = [1, 1]} : vector<16x512xf32> to vector<15x512xf32>
    %155 = tpu.concatenate %154, %153 in 0 : vector<15x512xf32>, vector<1x512xf32> -> vector<16x512xf32>
    %156 = arith.addf %150, %155 : vector<16x512xf32>
    %157 = tpu.iota {dimensions = array<i32: 0>} : vector<16x512xi32>
    %158 = tpu.iota {dimensions = array<i32: 1>} : vector<16x512xi32>
    %c7_i32_45 = arith.constant 7 : i32
    %159 = vector.broadcast %c7_i32_45 : i32 to vector<16x512xi32>
    %160 = arith.andi %157, %159 : vector<16x512xi32>
    %c2_i32 = arith.constant 2 : i32
    %161 = vector.broadcast %c2_i32 : i32 to vector<16x512xi32>
    %162 = arith.muli %161, %160 : vector<16x512xi32>
    %c8_i32_46 = arith.constant 8 : i32
    %163 = vector.broadcast %c8_i32_46 : i32 to vector<16x512xi32>
    %164 = arith.shrsi %158, %163 : vector<16x512xi32>
    %165 = arith.addi %162, %164 : vector<16x512xi32>
    %c14_i32 = arith.constant 14 : i32
    %166 = vector.broadcast %c14_i32 : i32 to vector<16x512xi32>
    %167 = arith.cmpi slt, %165, %166 : vector<16x512xi32>
    %168 = arith.extui %167 : vector<16x512xi1> to vector<16x512xi32>
    %169 = arith.sitofp %168 : vector<16x512xi32> to vector<16x512xf32>
    %170 = arith.mulf %156, %169 : vector<16x512xf32>
    %171 = arith.mulf %156, %170 : vector<16x512xf32>
    %172 = vector.extract_strided_slice %170 {offsets = [0, 0], sizes = [16, 256], strides = [1, 1]} : vector<16x512xf32> to vector<16x256xf32>
    %173 = vector.extract_strided_slice %171 {offsets = [0, 0], sizes = [16, 256], strides = [1, 1]} : vector<16x512xf32> to vector<16x256xf32>
    %174 = vector.extract_strided_slice %170 {offsets = [0, 256], sizes = [16, 256], strides = [1, 1]} : vector<16x512xf32> to vector<16x256xf32>
    %175 = arith.addf %172, %174 : vector<16x256xf32>
    %176 = vector.extract_strided_slice %171 {offsets = [0, 256], sizes = [16, 256], strides = [1, 1]} : vector<16x512xf32> to vector<16x256xf32>
    %177 = arith.addf %173, %176 : vector<16x256xf32>
    %cst_47 = arith.constant dense<0.000000e+00> : vector<256xf32>
    %178 = vector.multi_reduction <add>, %175, %cst_47 [0] : vector<16x256xf32> to vector<256xf32>
    %179 = vector.shape_cast %178 : vector<256xf32> to vector<1x256xf32>
    %cst_48 = arith.constant 0.0357142873 : f32
    %180 = vector.broadcast %cst_48 : f32 to vector<1x256xf32>
    %181 = arith.mulf %179, %180 : vector<1x256xf32>
    %cst_49 = arith.constant dense<0.000000e+00> : vector<256xf32>
    %182 = vector.multi_reduction <add>, %177, %cst_49 [0] : vector<16x256xf32> to vector<256xf32>
    %183 = vector.shape_cast %182 : vector<256xf32> to vector<1x256xf32>
    %cst_50 = arith.constant 0.0357142873 : f32
    %184 = vector.broadcast %cst_50 : f32 to vector<1x256xf32>
    %185 = arith.mulf %183, %184 : vector<1x256xf32>
    %186 = arith.mulf %181, %181 : vector<1x256xf32>
    %187 = arith.subf %185, %186 : vector<1x256xf32>
    %c0_51 = arith.constant 0 : index
    %c0_52 = arith.constant 0 : index
    %188 = vector.load %arg12[%c0_51, %c0_52] : memref<1x256xf32, #tpu.memory_space<vmem>>, vector<1x256xf32>
    %cst_53 = arith.constant 9.99999974E-6 : f32
    %189 = vector.broadcast %cst_53 : f32 to vector<1x256xf32>
    %190 = arith.addf %187, %189 : vector<1x256xf32>
    %191 = math.rsqrt %190 : vector<1x256xf32>
    %192 = arith.mulf %188, %191 : vector<1x256xf32>
    %c0_54 = arith.constant 0 : index
    %c0_55 = arith.constant 0 : index
    %193 = vector.load %arg13[%c0_54, %c0_55] : memref<1x256xf32, #tpu.memory_space<vmem>>, vector<1x256xf32>
    %194 = arith.mulf %181, %192 : vector<1x256xf32>
    %195 = arith.subf %193, %194 : vector<1x256xf32>
    %196 = tpu.concatenate %192, %192 in 1 : vector<1x256xf32>, vector<1x256xf32> -> vector<1x512xf32>
    %197 = tpu.concatenate %195, %195 in 1 : vector<1x256xf32>, vector<1x256xf32> -> vector<1x512xf32>
    %198 = vector.broadcast %196 : vector<1x512xf32> to vector<16x512xf32>
    %199 = arith.mulf %156, %198 : vector<16x512xf32>
    %200 = vector.broadcast %197 : vector<1x512xf32> to vector<16x512xf32>
    %201 = arith.addf %199, %200 : vector<16x512xf32>
    %cst_56 = arith.constant 0.000000e+00 : f32
    %202 = vector.broadcast %cst_56 : f32 to vector<16x512xf32>
    %203 = arith.cmpf ogt, %201, %202 : vector<16x512xf32>
    %cst_57 = arith.constant 2.000000e-01 : f32
    %204 = vector.broadcast %cst_57 : f32 to vector<16x512xf32>
    %205 = arith.mulf %204, %201 : vector<16x512xf32>
    %206 = arith.select %203, %201, %205 : vector<16x512xi1>, vector<16x512xf32>
    %c0_58 = arith.constant 0 : index
    %c0_59 = arith.constant 0 : index
    %207 = vector.load %arg14[%c0_58, %c0_59] : memref<512x1xf32, #tpu.memory_space<vmem>>, vector<512x1xf32>
    %cst_60 = arith.constant dense<0.000000e+00> : vector<16x1xf32>
    %208 = tpu.matmul %206, %207, %cst_60 {dimension_numbers = #tpu.dot_dimension_numbers<[1], [0], [0], [1], [0, 0, 1, 1], [], []>} : vector<16x512xf32>, vector<512x1xf32>, vector<16x1xf32> -> vector<16x1xf32>
    %c0_61 = arith.constant 0 : index
    %c0_62 = arith.constant 0 : index
    %209 = vector.load %arg15[%c0_61, %c0_62] : memref<512x1xf32, #tpu.memory_space<vmem>>, vector<512x1xf32>
    %cst_63 = arith.constant dense<0.000000e+00> : vector<16x1xf32>
    %210 = tpu.matmul %206, %209, %cst_63 {dimension_numbers = #tpu.dot_dimension_numbers<[1], [0], [0], [1], [0, 0, 1, 1], [], []>} : vector<16x512xf32>, vector<512x1xf32>, vector<16x1xf32> -> vector<16x1xf32>
    %cst_64 = arith.constant 0.000000e+00 : f32
    %211 = vector.broadcast %cst_64 : f32 to vector<1x1xf32>
    %212 = vector.extract_strided_slice %210 {offsets = [1, 0], sizes = [15, 1], strides = [1, 1]} : vector<16x1xf32> to vector<15x1xf32>
    %213 = tpu.concatenate %212, %211 in 0 : vector<15x1xf32>, vector<1x1xf32> -> vector<16x1xf32>
    %214 = arith.addf %208, %213 : vector<16x1xf32>
    %c0_65 = arith.constant 0 : index
    %c0_66 = arith.constant 0 : index
    %215 = vector.load %arg16[%c0_65, %c0_66] : memref<1x1xf32, #tpu.memory_space<vmem>>, vector<1x1xf32>
    %216 = vector.broadcast %215 : vector<1x1xf32> to vector<16x1xf32>
    %217 = arith.addf %214, %216 : vector<16x1xf32>
    %cst_67 = arith.constant 0.000000e+00 : f32
    %218 = vector.broadcast %cst_67 : f32 to vector<16x1xf32>
    %219 = arith.cmpf ogt, %217, %218 : vector<16x1xf32>
    %cst_68 = arith.constant 2.000000e-01 : f32
    %220 = vector.broadcast %cst_68 : f32 to vector<16x1xf32>
    %221 = arith.mulf %220, %217 : vector<16x1xf32>
    %222 = arith.select %219, %217, %221 : vector<16x1xi1>, vector<16x1xf32>
    %c0_69 = arith.constant 0 : index
    %c0_70 = arith.constant 0 : index
    %223 = vector.load %arg17[%c0_69, %c0_70] : memref<16x1xf32, #tpu.memory_space<vmem>>, vector<16x1xf32>
    %224 = arith.mulf %222, %223 : vector<16x1xf32>
    %cst_71 = arith.constant 0.000000e+00 : f32
    %225 = vector.broadcast %cst_71 : f32 to vector<1x1xf32>
    %226 = vector.extract_strided_slice %224 {offsets = [1, 0], sizes = [15, 1], strides = [1, 1]} : vector<16x1xf32> to vector<15x1xf32>
    %227 = tpu.concatenate %226, %225 in 0 : vector<15x1xf32>, vector<1x1xf32> -> vector<16x1xf32>
    %228 = arith.addf %224, %227 : vector<16x1xf32>
    %cst_72 = arith.constant 0.000000e+00 : f32
    %229 = vector.broadcast %cst_72 : f32 to vector<2x1xf32>
    %230 = vector.extract_strided_slice %228 {offsets = [2, 0], sizes = [14, 1], strides = [1, 1]} : vector<16x1xf32> to vector<14x1xf32>
    %231 = tpu.concatenate %230, %229 in 0 : vector<14x1xf32>, vector<2x1xf32> -> vector<16x1xf32>
    %232 = arith.addf %228, %231 : vector<16x1xf32>
    %cst_73 = arith.constant 0.000000e+00 : f32
    %233 = vector.broadcast %cst_73 : f32 to vector<4x1xf32>
    %234 = vector.extract_strided_slice %232 {offsets = [4, 0], sizes = [12, 1], strides = [1, 1]} : vector<16x1xf32> to vector<12x1xf32>
    %235 = tpu.concatenate %234, %233 in 0 : vector<12x1xf32>, vector<4x1xf32> -> vector<16x1xf32>
    %236 = arith.addf %232, %235 : vector<16x1xf32>
    %c0_74 = arith.constant 0 : index
    %c0_75 = arith.constant 0 : index
    %237 = vector.load %arg18[%c0_74, %c0_75] : memref<1x1xf32, #tpu.memory_space<vmem>>, vector<1x1xf32>
    %238 = vector.broadcast %237 : vector<1x1xf32> to vector<16x1xf32>
    %239 = arith.addf %236, %238 : vector<16x1xf32>
    %cst_76 = arith.constant 0.000000e+00 : f32
    %240 = vector.broadcast %cst_76 : f32 to vector<16x1xf32>
    %241 = arith.subf %240, %239 : vector<16x1xf32>
    %242 = math.exp %241 : vector<16x1xf32>
    %cst_77 = arith.constant 1.000000e+00 : f32
    %243 = vector.broadcast %cst_77 : f32 to vector<16x1xf32>
    %244 = arith.addf %243, %242 : vector<16x1xf32>
    %cst_78 = arith.constant 1.000000e+00 : f32
    %245 = vector.broadcast %cst_78 : f32 to vector<16x1xf32>
    %246 = arith.divf %245, %244 : vector<16x1xf32>
    %c0_79 = arith.constant 0 : index
    %c0_80 = arith.constant 0 : index
    %247 = vector.load %arg19[%c0_79, %c0_80] : memref<16x1xf32, #tpu.memory_space<vmem>>, vector<16x1xf32>
    tpu.vector_store %arg19[%c0_79, %c0_80], %246 {strides = array<i32>} : memref<16x1xf32, #tpu.memory_space<vmem>>, vector<16x1xf32>,
    return
  }
  func.func @transform_0(%arg0: i32) -> (i32, i32) {
    %c0_i32 = arith.constant 0 : i32
    %c0_i32_0 = arith.constant 0 : i32
    %c0_i32_1 = arith.constant 0 : i32
    return %c0_i32, %c0_i32_0 : i32, i32
  }
  func.func @transform_1(%arg0: i32) -> (i32, i32) {
    %c0_i32 = arith.constant 0 : i32
    %c0_i32_0 = arith.constant 0 : i32
    %c0_i32_1 = arith.constant 0 : i32
    return %c0_i32, %c0_i32_0 : i32, i32
  }
  func.func @transform_2(%arg0: i32) -> (i32, i32) {
    %c0_i32 = arith.constant 0 : i32
    %c0_i32_0 = arith.constant 0 : i32
    %c0_i32_1 = arith.constant 0 : i32
    return %c0_i32, %c0_i32_0 : i32, i32
  }
  func.func @transform_3(%arg0: i32) -> (i32, i32) {
    %c0_i32 = arith.constant 0 : i32
    %c0_i32_0 = arith.constant 0 : i32
    %c0_i32_1 = arith.constant 0 : i32
    return %c0_i32, %c0_i32_0 : i32, i32
  }
  func.func @transform_4(%arg0: i32) -> (i32, i32) {
    %c0_i32 = arith.constant 0 : i32
    %c0_i32_0 = arith.constant 0 : i32
    %c0_i32_1 = arith.constant 0 : i32
    return %c0_i32, %c0_i32_0 : i32, i32
  }
  func.func @transform_5(%arg0: i32) -> (i32, i32) {
    %c0_i32 = arith.constant 0 : i32
    %c0_i32_0 = arith.constant 0 : i32
    %c0_i32_1 = arith.constant 0 : i32
    return %c0_i32, %c0_i32_0 : i32, i32
  }
  func.func @transform_6(%arg0: i32) -> (i32, i32) {
    %c0_i32 = arith.constant 0 : i32
    %c0_i32_0 = arith.constant 0 : i32
    %c0_i32_1 = arith.constant 0 : i32
    return %c0_i32, %c0_i32_0 : i32, i32
  }
  func.func @transform_7(%arg0: i32) -> (i32, i32) {
    %c0_i32 = arith.constant 0 : i32
    %c0_i32_0 = arith.constant 0 : i32
    %c0_i32_1 = arith.constant 0 : i32
    return %c0_i32, %c0_i32_0 : i32, i32
  }
  func.func @transform_8(%arg0: i32) -> (i32, i32) {
    %c0_i32 = arith.constant 0 : i32
    %c0_i32_0 = arith.constant 0 : i32
    %c0_i32_1 = arith.constant 0 : i32
    return %c0_i32, %c0_i32_0 : i32, i32
  }
  func.func @transform_9(%arg0: i32) -> (i32, i32) {
    %c0_i32 = arith.constant 0 : i32
    %c0_i32_0 = arith.constant 0 : i32
    %c0_i32_1 = arith.constant 0 : i32
    return %c0_i32, %c0_i32_0 : i32, i32
  }
  func.func @transform_10(%arg0: i32) -> (i32, i32) {
    %c0_i32 = arith.constant 0 : i32
    %c0_i32_0 = arith.constant 0 : i32
    %c0_i32_1 = arith.constant 0 : i32
    return %c0_i32, %c0_i32_0 : i32, i32
  }
  func.func @transform_11(%arg0: i32) -> (i32, i32) {
    %c0_i32 = arith.constant 0 : i32
    %c0_i32_0 = arith.constant 0 : i32
    %c0_i32_1 = arith.constant 0 : i32
    return %c0_i32, %c0_i32_0 : i32, i32
  }
  func.func @transform_12(%arg0: i32) -> (i32, i32) {
    %c0_i32 = arith.constant 0 : i32
    %c0_i32_0 = arith.constant 0 : i32
    %c0_i32_1 = arith.constant 0 : i32
    return %c0_i32, %c0_i32_0 : i32, i32
  }
  func.func @transform_13(%arg0: i32) -> (i32, i32) {
    %c0_i32 = arith.constant 0 : i32
    %c0_i32_0 = arith.constant 0 : i32
    %c0_i32_1 = arith.constant 0 : i32
    return %c0_i32, %c0_i32_0 : i32, i32
  }
  func.func @transform_14(%arg0: i32) -> (i32, i32) {
    %c0_i32 = arith.constant 0 : i32
    %c0_i32_0 = arith.constant 0 : i32
    %c0_i32_1 = arith.constant 0 : i32
    return %c0_i32, %c0_i32_0 : i32, i32
  }
  func.func @transform_15(%arg0: i32) -> (i32, i32) {
    %c0_i32 = arith.constant 0 : i32
    %c0_i32_0 = arith.constant 0 : i32
    %c0_i32_1 = arith.constant 0 : i32
    return %c0_i32, %c0_i32_0 : i32, i32
  }
  func.func @transform_16(%arg0: i32) -> (i32, i32) {
    %c0_i32 = arith.constant 0 : i32
    %c0_i32_0 = arith.constant 0 : i32
    %c0_i32_1 = arith.constant 0 : i32
    return %c0_i32, %c0_i32_0 : i32, i32
  }
  func.func @transform_17(%arg0: i32) -> (i32, i32) {
    %c0_i32 = arith.constant 0 : i32
    %c0_i32_0 = arith.constant 0 : i32
    %c0_i32_1 = arith.constant 0 : i32
    return %c0_i32, %c0_i32_0 : i32, i32
  }
  func.func @transform_18(%arg0: i32) -> (i32, i32) {
    %c0_i32 = arith.constant 0 : i32
    %c0_i32_0 = arith.constant 0 : i32
    %c0_i32_1 = arith.constant 0 : i32
    return %c0_i32, %c0_i32_0 : i32, i32
  }
}

</mosaic_0001>

<bundles_post_ra>
// kernel: tile.6
= control target key start
LH: loop header
LB: loop body
LE: loop exit
PB: predicated region body
PF: predicated region fallthrough
CT: control target
= control target key end

     0   :  { %s22_s0 = inlined_call_operand.vmem [shape: f32[8], index: 0, kind: input, shape index: {}]   ;;  %s23_s1 = inlined_call_operand.vmem [shape: f32[2,1,1,8], index: 1, kind: output, shape index: {}]  }
   0x1   :  { %v4_v0 = vld [vmem:[%s22_s0] ss:$0 sm:$0xff] }
   0x2   :  { %5 = vst [vmem:[%s23_s1] sm:$0x3] %v4_v0 }

// kernel: tile.0
= control target key start
LH: loop header
LB: loop body
LE: loop exit
PB: predicated region body
PF: predicated region fallthrough
CT: control target
= control target key end

     0   :  { %s66_s8 = smov 125   ;;  %vm7_vm0 = vcmask 7168   ;;  %s67_s11 = smov 126   ;;  %s117_s0 = inlined_call_operand.vmem [shape: f32[2,1,1,8], index: 0, kind: input, shape index: {}]   ;;  %s118_s1 = inlined_call_operand.vmem [shape: f32[16,1], index: 1, kind: output, shape index: {}]  }
   0x1   :  { %v4_v0 = vld [vmem:[%s117_s0] sm:$0x3]  ;;  %s65_s0 = smov 127   ;;  %s68_s12 = smov 124  }
   0x2   :  { %5 = vst [vmem:[#allocation0] sm:$0x3] %v4_v0  ;;  %s69_s13 = smov 123   ;;  %s70_s14 = smov 122  }
   0x3   :  { %s71_s15 = smov 121  }
   0x9   :  { %v9_v1 = vld [vmem:[#allocation0] sm:$0x3]  }
   0xa   :  { %v21_v2 = vld [vmem:[#allocation0] sm:$0x3]   ;;  %10 = vrot.lane.b32.xlu0 %v9_v1, %s65_s0 }
   0xb   :  { %22 = vrot.lane.b32.xlu1 %v21_v2, %s66_s8  ;;  %v15_v3 = vld [vmem:[#allocation0] sm:$0x3]  }
   0xc   :  { %v27_v4 = vld [vmem:[#allocation0] sm:$0x3]  }
   0xd   :  { %v6_v5 = vld [vmem:[#allocation0] sm:$0x3]  }
   0xe   :  { %8 = vst.msk [vmem:[%s118_s1] ss:$8 sm:$0x3] %vm7_vm0, %v6_v5   ;;  %16 = vrot.lane.b32.xlu0 %v15_v3, %s67_s11  ;;  %v33_v6 = vld [vmem:[#allocation0] sm:$0x3]  }
   0xf   :  { %28 = vrot.lane.b32.xlu1 %v27_v4, %s68_s12  ;;  %v39_v7 = vld [vmem:[#allocation0] sm:$0x3]  }
  0x10   :  { %v45_v8 = vld [vmem:[#allocation0] sm:$0x3]  }
  0x12   :  { %34 = vrot.lane.b32.xlu0 %v33_v6, %s69_s13 }
  0x13   :  { %40 = vrot.lane.b32.xlu1 %v39_v7, %s70_s14 }
  0x16   :  { %46 = vrot.lane.b32.xlu0 %v45_v8, %s71_s15 }
  0x7c   :  { %v11_v9 = vpop.permute.xlu0 %10  }
  0x7d   :  { %v23_v10 = vpop.permute.xlu1 %22   ;;  %51 = vst.msk [vmem:[%s118_s1 + $0x1] ss:$8 sm:$0x3] %vm7_vm0, %v11_v9  }
  0x7e   :  { %53 = vst.msk [vmem:[%s118_s1 + $0x3] ss:$8 sm:$0x3] %vm7_vm0, %v23_v10  }
  0x80   :  { %v17_v11 = vpop.permute.xlu0 %16  }
  0x81   :  { %v29_v12 = vpop.permute.xlu1 %28   ;;  %52 = vst.msk [vmem:[%s118_s1 + $0x2] ss:$8 sm:$0x3] %vm7_vm0, %v17_v11  }
  0x82   :  { %54 = vst.msk [vmem:[%s118_s1 + $0x4] ss:$8 sm:$0x3] %vm7_vm0, %v29_v12  }
  0x84   :  { %v35_v13 = vpop.permute.xlu0 %34  }
  0x85   :  { %v41_v14 = vpop.permute.xlu1 %40   ;;  %55 = vst.msk [vmem:[%s118_s1 + $0x5] ss:$8 sm:$0x3] %vm7_vm0, %v35_v13  }
  0x86   :  { %56 = vst.msk [vmem:[%s118_s1 + $0x6] ss:$8 sm:$0x3] %vm7_vm0, %v41_v14  }
  0x88   :  { %v47_v15 = vpop.permute.xlu0 %46  }
  0x89   :  { %57 = vst.msk [vmem:[%s118_s1 + $0x7] ss:$8 sm:$0x3] %vm7_vm0, %v47_v15  }

// kernel: discriminator_forward.1
= control target key start
LH: loop header
LB: loop body
LE: loop exit
PB: predicated region body
PF: predicated region fallthrough
CT: control target
= control target key end

     0   :  { %v5458_v3 = vmov 0.0   ;;  %vm161_vm0 = vcmask 785408   ;;  %vm330_vm1 = vcmask 1046528   ;;  %vm665_vm10 = vcmask 523264   ;;  %s9947_s2 = inlined_call_operand.vmem [shape: f32[96,512], index: 2, kind: input, shape index: {}]   ;;  %s9948_s1 = inlined_call_operand.vmem [shape: f32[96,512], index: 1, kind: input, shape index: {}]   ;;  %s9949_s0 = inlined_call_operand.vmem [shape: f32[16,96], index: 0, kind: input, shape index: {}]   ;;  %s9950_s6 = inlined_call_operand.vmem [shape: f32[512,512], index: 6, kind: input, shape index: {}]   ;;  %s9951_s3 = inlined_call_operand.vmem [shape: f32[1,64], index: 3, kind: input, shape index: {}]   ;;  %s9952_s4 = inlined_call_operand.vmem [shape: f32[1,64], index: 4, kind: input, shape index: {}]   ;;  %s9953_s5 = inlined_call_operand.vmem [shape: f32[512,512], index: 5, kind: input, shape index: {}]   ;;  %s9954_s10 = inlined_call_operand.vmem [shape: f32[512,512], index: 10, kind: input, shape index: {}]   ;;  %s9955_s7 = inlined_call_operand.vmem [shape: f32[1,128], index: 7, kind: input, shape index: {}]   ;;  %s9956_s8 = inlined_call_operand.vmem [shape: f32[1,128], index: 8, kind: input, shape index: {}]   ;;  %s9957_s9 = inlined_call_operand.vmem [shape: f32[512,512], index: 9, kind: input, shape index: {}]   ;;  %s9958_s14 = inlined_call_operand.vmem [shape: f32[512,1], index: 14, kind: input, shape index: {}]   ;;  %s9959_s13 = inlined_call_operand.vmem [shape: f32[512,1], index: 13, kind: input, shape index: {}]   ;;  %s9960_s11 = inlined_call_operand.vmem [shape: f32[1,256], index: 11, kind: input, shape index: {}]   ;;  %s9961_s12 = inlined_call_operand.vmem [shape: f32[1,256], index: 12, kind: input, shape index: {}]   ;;  %s9962_s15 = inlined_call_operand.<no memory space> [shape: f32[1,1], index: 15, kind: input, shape index: {}]   ;;  %s9963_s17 = inlined_call_operand.<no memory space> [shape: f32[1,1], index: 17, kind: input, shape index: {}]   ;;  %s9964_s16 = inlined_call_operand.vmem [shape: f32[16,1], index: 16, kind: input, shape index: {}]   ;;  %s9965_s18 = inlined_call_operand.vmem [shape: f32[16,1], index: 18, kind: output, shape index: {}]  }
   0x1   :  { %9969 = sst [smem:[#allocation4_spill]] %s9947_s2  ;;  %232 = vmatprep.mubr.f32.mxu0 %v5458_v3  ;;  %309 = vmatprep.mubr.f32.mxu1 %v5458_v3 }
   0x2   :  { %9970 = sst [smem:[#allocation5_spill]] %s9948_s1  ;;  %s9972_s29 = sld [smem:[#allocation4_spill]] }
   0x3   :  { %9971 = sst [smem:[#allocation6_spill]] %s9949_s0  ;;  %s9973_s27 = sld [smem:[#allocation5_spill]] }
   0x8   :  { %v114_v0 = vld [vmem:[%s9972_s29 + $0x8] sm:$0xff]  ;;  %v116_v2 = vld [vmem:[%s9972_s29 + $0x18] sm:$0xff]  ;;  %v113_v6 = vld [vmem:[%s9972_s29] sm:$0xff] }
   0x9   :  { %v118_v1 = vld [vmem:[%s9972_s29 + $0x28] sm:$0xff]  ;;  %v120_v5 = vld [vmem:[%s9972_s29 + $0x38] sm:$0xff]  ;;  %v117_v7 = vld [vmem:[%s9972_s29 + $0x20] sm:$0xff] }
   0xa   :  { %v4143_v4 = vpack.c.bf16 %v118_v1, %v114_v0  ;;  %v4167_v8 = vpack.c.bf16 %v120_v5, %v116_v2  ;;  %v4145_v9 = vpack.c.bf16 %v117_v7, %v113_v6  ;;  %v115_v10 = vld [vmem:[%s9972_s29 + $0x10] sm:$0xff]  ;;  %v122_v12 = vld [vmem:[%s9972_s29 + $0x48] sm:$0xff]  ;;  %v124_v15 = vld [vmem:[%s9972_s29 + $0x58] sm:$0xff] }
   0xb   :  { %v119_v11 = vld [vmem:[%s9972_s29 + $0x30] sm:$0xff]  ;;  %v126_v14 = vld [vmem:[%s9972_s29 + $0x68] sm:$0xff]  ;;  %v128_v16 = vld [vmem:[%s9972_s29 + $0x78] sm:$0xff] }
   0xc   :  { %4144 = vmatprep.subr.bf16.mxu0 %v4143_v4  ;;  %v4169_v13 = vpack.c.bf16 %v119_v11, %v115_v10  ;;  %4168 = vmatprep.subr.bf16.mxu1 %v4167_v8  ;;  %v4147_v17 = vpack.c.bf16 %v126_v14, %v122_v12  ;;  %v4171_v18 = vpack.c.bf16 %v128_v16, %v124_v15  ;;  %v121_v19 = vld [vmem:[%s9972_s29 + $0x40] sm:$0xff]  ;;  %v123_v21 = vld [vmem:[%s9972_s29 + $0x50] sm:$0xff]  ;;  %v130_v24 = vld [vmem:[%s9972_s29 + $0x88] sm:$0xff] }
   0xd   :  { %4146 = vmatpush1.bf16.msra.mxu0 %v4145_v9  ;;  %v125_v20 = vld [vmem:[%s9972_s29 + $0x60] sm:$0xff]  ;;  %v127_v23 = vld [vmem:[%s9972_s29 + $0x70] sm:$0xff]  ;;  %v134_v25 = vld [vmem:[%s9972_s29 + $0xa8] sm:$0xff] }
   0xe   :  { %4170 = vmatpush1.bf16.msra.mxu1 %v4169_v13  ;;  %v4149_v22 = vpack.c.bf16 %v125_v20, %v121_v19  ;;  %4148 = vmatprep.subr.bf16.mxu0 %v4147_v17  ;;  %v4173_v26 = vpack.c.bf16 %v127_v23, %v123_v21  ;;  %v4151_v27 = vpack.c.bf16 %v134_v25, %v130_v24  ;;  %v132_v28 = vld [vmem:[%s9972_s29 + $0x98] sm:$0xff]  ;;  %v129_v30 = vld [vmem:[%s9972_s29 + $0x80] sm:$0xff]  ;;  %v131_v33 = vld [vmem:[%s9972_s29 + $0x90] sm:$0xff] }
   0xf   :  { %4172 = vmatprep.subr.bf16.mxu1 %v4171_v18  ;;  %v136_v29 = vld [vmem:[%s9972_s29 + $0xb8] sm:$0xff]  ;;  %v133_v32 = vld [vmem:[%s9972_s29 + $0xa0] sm:$0xff]  ;;  %v135_v34 = vld [vmem:[%s9972_s29 + $0xb0] sm:$0xff] }
  0x10   :  { %v4175_v31 = vpack.c.bf16 %v136_v29, %v132_v28  ;;  %v4153_v35 = vpack.c.bf16 %v133_v32, %v129_v30  ;;  %v138_v36 = vld [vmem:[%s9972_s29 + $0xc8] sm:$0xff]  ;;  %v140_v38 = vld [vmem:[%s9972_s29 + $0xd8] sm:$0xff]  ;;  %v4177_v39 = vpack.c.bf16 %v135_v34, %v131_v33  ;;  %v137_v42 = vld [vmem:[%s9972_s29 + $0xc0] sm:$0xff] }
  0x11   :  { %4150 = vmatpush1.bf16.msra.mxu0 %v4149_v22  ;;  %v142_v37 = vld [vmem:[%s9972_s29 + $0xe8] sm:$0xff]  ;;  %v144_v41 = vld [vmem:[%s9972_s29 + $0xf8] sm:$0xff]  ;;  %v141_v43 = vld [vmem:[%s9972_s29 + $0xe0] sm:$0xff] }
  0x12   :  { %4174 = vmatpush1.bf16.msra.mxu1 %v4173_v26  ;;  %4152 = vmatprep.subr.bf16.mxu0 %v4151_v27  ;;  %v4155_v40 = vpack.c.bf16 %v142_v37, %v138_v36  ;;  %v4179_v44 = vpack.c.bf16 %v144_v41, %v140_v38  ;;  %v139_v45 = vld [vmem:[%s9972_s29 + $0xd0] sm:$0xff]  ;;  %v146_v47 = vld [vmem:[%s9972_s29 + $0x108] sm:$0xff]  ;;  %v148_v49 = vld [vmem:[%s9972_s29 + $0x118] sm:$0xff]  ;;  %v4157_v51 = vpack.c.bf16 %v141_v43, %v137_v42 }
  0x13   :  { %4176 = vmatprep.subr.bf16.mxu1 %v4175_v31  ;;  %v143_v46 = vld [vmem:[%s9972_s29 + $0xf0] sm:$0xff]  ;;  %v150_v48 = vld [vmem:[%s9972_s29 + $0x128] sm:$0xff]  ;;  %v152_v50 = vld [vmem:[%s9972_s29 + $0x138] sm:$0xff] }
  0x14   :  { %v4181_v52 = vpack.c.bf16 %v143_v46, %v139_v45  ;;  %v4159_v53 = vpack.c.bf16 %v150_v48, %v146_v47  ;;  %v145_v54 = vld [vmem:[%s9972_s29 + $0x100] sm:$0xff]  ;;  %v147_v56 = vld [vmem:[%s9972_s29 + $0x110] sm:$0xff]  ;;  %v4183_v57 = vpack.c.bf16 %v152_v50, %v148_v49  ;;  %v154_v59 = vld [vmem:[%s9972_s29 + $0x148] sm:$0xff] }
  0x15   :  { %4154 = vmatpush1.bf16.msra.mxu0 %v4153_v35  ;;  %v149_v55 = vld [vmem:[%s9972_s29 + $0x120] sm:$0xff]  ;;  %v151_v58 = vld [vmem:[%s9972_s29 + $0x130] sm:$0xff]  ;;  %v158_v60 = vld [vmem:[%s9972_s29 + $0x168] sm:$0xff] }
  0x16   :  { %4178 = vmatpush1.bf16.msra.mxu1 %v4177_v39  ;;  %4156 = vmatprep.subr.bf16.mxu0 %v4155_v40  ;;  %v156_v61 = vld [vmem:[%s9972_s29 + $0x158] sm:$0xff]  ;;  %v4161_v63 = vpack.c.bf16 %v149_v55, %v145_v54  ;;  %v4185_v0 = vpack.c.bf16 %v151_v58, %v147_v56  ;;  %v4163_v1 = vpack.c.bf16 %v158_v60, %v154_v59  ;;  %v153_v2 = vld [vmem:[%s9972_s29 + $0x140] sm:$0xff]  ;;  %v155_v5 = vld [vmem:[%s9972_s29 + $0x150] sm:$0xff] }
  0x17   :  { %4180 = vmatprep.subr.bf16.mxu1 %v4179_v44  ;;  %v160_v62 = vld [vmem:[%s9972_s29 + $0x178] sm:$0xff]  ;;  %v157_v4 = vld [vmem:[%s9972_s29 + $0x160] sm:$0xff]  ;;  %v159_v7 = vld [vmem:[%s9972_s29 + $0x170] sm:$0xff]  ;;  %s9974_s29 = sld [smem:[#allocation6_spill]] }
  0x18   :  { %v4187_v6 = vpack.c.bf16 %v160_v62, %v156_v61  ;;  %v66_v8 = vld [vmem:[%s9973_s27 + $0x8] sm:$0xff]  ;;  %v68_v10 = vld [vmem:[%s9973_s27 + $0x18] sm:$0xff]  ;;  %v4165_v12 = vpack.c.bf16 %v157_v4, %v153_v2  ;;  %v4189_v13 = vpack.c.bf16 %v159_v7, %v155_v5  ;;  %v65_v15 = vld [vmem:[%s9973_s27] sm:$0xff] }
  0x19   :  { %4158 = vmatpush1.bf16.msra.mxu0 %v4157_v51  ;;  %v70_v9 = vld [vmem:[%s9973_s27 + $0x28] sm:$0xff]  ;;  %v72_v11 = vld [vmem:[%s9973_s27 + $0x38] sm:$0xff]  ;;  %v69_v16 = vld [vmem:[%s9973_s27 + $0x20] sm:$0xff] }
  0x1a   :  { %4182 = vmatpush1.bf16.msra.mxu1 %v4181_v52  ;;  %4160 = vmatprep.subr.bf16.mxu0 %v4159_v53  ;;  %v4191_v14 = vpack.c.bf16 %v70_v9, %v66_v8  ;;  %v4215_v17 = vpack.c.bf16 %v72_v11, %v68_v10  ;;  %v67_v18 = vld [vmem:[%s9973_s27 + $0x10] sm:$0xff]  ;;  %v74_v20 = vld [vmem:[%s9973_s27 + $0x48] sm:$0xff]  ;;  %v4193_v23 = vpack.c.bf16 %v69_v16, %v65_v15  ;;  %v76_v24 = vld [vmem:[%s9973_s27 + $0x58] sm:$0xff] }
  0x1b   :  { %4184 = vmatprep.subr.bf16.mxu1 %v4183_v57  ;;  %v71_v19 = vld [vmem:[%s9973_s27 + $0x30] sm:$0xff]  ;;  %v78_v21 = vld [vmem:[%s9973_s27 + $0x68] sm:$0xff]  ;;  %v80_v25 = vld [vmem:[%s9973_s27 + $0x78] sm:$0xff] }
  0x1c   :  { %v4217_v26 = vpack.c.bf16 %v71_v19, %v67_v18  ;;  %v73_v27 = vld [vmem:[%s9973_s27 + $0x40] sm:$0xff]  ;;  %v75_v29 = vld [vmem:[%s9973_s27 + $0x50] sm:$0xff]  ;;  %v4195_v30 = vpack.c.bf16 %v78_v21, %v74_v20  ;;  %v82_v32 = vld [vmem:[%s9973_s27 + $0x88] sm:$0xff]  ;;  %v4219_v34 = vpack.c.bf16 %v80_v25, %v76_v24  ;;  %v509_v25 = vlaneseq }
  0x1d   :  { %4162 = vmatpush1.bf16.msra.mxu0 %v4161_v63  ;;  %v5735_v22 = vld [vmem:[%s9974_s29] sm:$0xff]  ;;  %v79_v31 = vld [vmem:[%s9973_s27 + $0x70] sm:$0xff]  ;;  %v86_v33 = vld [vmem:[%s9973_s27 + $0xa8] sm:$0xff] }
  0x1e   :  { %4186 = vmatpush1.bf16.msra.mxu1 %v4185_v0  ;;  %4164 = vmatprep.subr.bf16.mxu0 %v4163_v1  ;;  %v77_v28 = vld [vmem:[%s9973_s27 + $0x60] sm:$0xff]  ;;  %v84_v35 = vld [vmem:[%s9973_s27 + $0x98] sm:$0xff]  ;;  %v5774_v37 = vld [vmem:[%s9974_s29 + $0x8] sm:$0xff]  ;;  %v4221_v39 = vpack.c.bf16 %v79_v31, %v75_v29  ;;  %v4199_v40 = vpack.c.bf16 %v86_v33, %v82_v32  ;;  %v5878_v32 = vshrl.u32 %v509_v25, 7 }
  0x1f   :  { %4188 = vmatprep.subr.bf16.mxu1 %v4187_v6  ;;  %v88_v36 = vld [vmem:[%s9973_s27 + $0xb8] sm:$0xff]  ;;  %v4197_v38 = vpack.c.bf16 %v77_v28, %v73_v27  ;;  %v81_v41 = vld [vmem:[%s9973_s27 + $0x80] sm:$0xff]  ;;  %v83_v43 = vld [vmem:[%s9973_s27 + $0x90] sm:$0xff] }
  0x20   :  { %v85_v42 = vld [vmem:[%s9973_s27 + $0xa0] sm:$0xff]  ;;  %v4223_v44 = vpack.c.bf16 %v88_v36, %v84_v35  ;;  %v87_v45 = vld [vmem:[%s9973_s27 + $0xb0] sm:$0xff]  ;;  %v90_v46 = vld [vmem:[%s9973_s27 + $0xc8] sm:$0xff] }
  0x21   :  { %4166 = vmatpush1.bf16.msra.mxu0 %v4165_v12  ;;  %v94_v47 = vld [vmem:[%s9973_s27 + $0xe8] sm:$0xff]  ;;  %v92_v48 = vld [vmem:[%s9973_s27 + $0xd8] sm:$0xff]  ;;  %v4201_v50 = vpack.c.bf16 %v85_v42, %v81_v41  ;;  %v4225_v51 = vpack.c.bf16 %v87_v45, %v83_v43  ;;  %v89_v53 = vld [vmem:[%s9973_s27 + $0xc0] sm:$0xff]  ;;  %v5884_v43 = vand.u32 127, %v509_v25  ;;  %v511_v45 = vadd.s32 8, %v5878_v32 }
  0x22   :  { %4190 = vmatpush1.bf16.msra.mxu1 %v4189_v13  ;;  %4192 = vmatprep.subr.bf16.mxu0 %v4191_v14  ;;  %v96_v49 = vld [vmem:[%s9973_s27 + $0xf8] sm:$0xff]  ;;  %v4203_v52 = vpack.c.bf16 %v94_v47, %v90_v46  ;;  %v93_v54 = vld [vmem:[%s9973_s27 + $0xe0] sm:$0xff]  ;;  %v91_v55 = vld [vmem:[%s9973_s27 + $0xd0] sm:$0xff] }
  0x23   :  { %4216 = vmatprep.subr.bf16.mxu1 %v4215_v17  ;;  %v4227_v56 = vpack.c.bf16 %v96_v49, %v92_v48  ;;  %v95_v57 = vld [vmem:[%s9973_s27 + $0xf0] sm:$0xff]  ;;  %v98_v58 = vld [vmem:[%s9973_s27 + $0x108] sm:$0xff]  ;;  %v100_v60 = vld [vmem:[%s9973_s27 + $0x118] sm:$0xff]  ;;  %v4205_v62 = vpack.c.bf16 %v93_v54, %v89_v53  ;;  %v521_v47 = vshra.s32 %v5884_v43, 6  ;;  %v5895_v48 = vadd.s32 128, %v5884_v43 }
  0x24   :  { %3957 = vmatmul.mubr.msk.f32.vlgmr.msra.gmra.mrb[0].mxu0 %vm161_vm0, %v5735_v22  ;;  %v102_v59 = vld [vmem:[%s9973_s27 + $0x128] sm:$0xff]  ;;  %v104_v61 = vld [vmem:[%s9973_s27 + $0x138] sm:$0xff]  ;;  %v4229_v63 = vpack.c.bf16 %v95_v57, %v91_v55  ;;  %v97_v1 = vld [vmem:[%s9973_s27 + $0x100] sm:$0xff]  ;;  %v5897_v49 = vand.u32 7, %v511_v45  ;;  %v5952_v25 = vadd.s32 384, %v5884_v43 }
  0x25   :  { %3959 = vmatmul.mubr.msk.f32.vlgmr.msra.gmra.mrb[0].mxu1 %vm161_vm0, %v5735_v22  ;;  %4194 = vmatpush1.bf16.msra.mxu0 %v4193_v23  ;;  %v4207_v0 = vpack.c.bf16 %v102_v59, %v98_v58  ;;  %v101_v2 = vld [vmem:[%s9973_s27 + $0x120] sm:$0xff]  ;;  %v99_v4 = vld [vmem:[%s9973_s27 + $0x110] sm:$0xff]  ;;  %v4231_v5 = vpack.c.bf16 %v104_v61, %v100_v60  ;;  %v106_v7 = vld [vmem:[%s9973_s27 + $0x148] sm:$0xff] }
  0x26   :  { %4218 = vmatpush1.bf16.msra.mxu1 %v4217_v26  ;;  %238 = vmatprep.mubr.f32.mxu0 %v5458_v3  ;;  %v103_v6 = vld [vmem:[%s9973_s27 + $0x130] sm:$0xff]  ;;  %v110_v8 = vld [vmem:[%s9973_s27 + $0x168] sm:$0xff]  ;;  %v108_v9 = vld [vmem:[%s9973_s27 + $0x158] sm:$0xff]  ;;  %v4209_v11 = vpack.c.bf16 %v101_v2, %v97_v1  ;;  %v520_v53 = vmul.u32 8, %v5897_v49 }
  0x27   :  { %315 = vmatprep.mubr.f32.mxu1 %v5458_v3  ;;  %4196 = vmatprep.subr.bf16.mxu0 %v4195_v30  ;;  %v112_v10 = vld [vmem:[%s9973_s27 + $0x178] sm:$0xff]  ;;  %v4233_v12 = vpack.c.bf16 %v103_v6, %v99_v4  ;;  %v4211_v13 = vpack.c.bf16 %v110_v8, %v106_v7  ;;  %v105_v14 = vld [vmem:[%s9973_s27 + $0x140] sm:$0xff]  ;;  %v107_v17 = vld [vmem:[%s9973_s27 + $0x150] sm:$0xff] }
  0x28   :  { %3958 = vmatmul.mubr.msk.f32.gmra.mrb[2].mxu0 %vm161_vm0, %v5774_v37  ;;  %4220 = vmatprep.subr.bf16.mxu1 %v4219_v34  ;;  %v109_v15 = vld [vmem:[%s9973_s27 + $0x160] sm:$0xff]  ;;  %v4235_v16 = vpack.c.bf16 %v112_v10, %v108_v9  ;;  %v111_v18 = vld [vmem:[%s9973_s27 + $0x170] sm:$0xff]  ;;  %v529_v1 = vadd.s32 %v521_v47, %v520_v53  ;;  %s5459_s27 = smov 64  }
  0x29   :  { %3960 = vmatmul.mubr.msk.f32.gmra.mrb[2].mxu1 %vm161_vm0, %v5774_v37  ;;  %4198 = vmatpush1.bf16.msra.mxu0 %v4197_v38  ;;  %v4213_v19 = vpack.c.bf16 %v109_v15, %v105_v14  ;;  %v4237_v20 = vpack.c.bf16 %v111_v18, %v107_v17 }
  0x2a   :  { %4222 = vmatpush1.bf16.msra.mxu1 %v4221_v39  ;;  %4200 = vmatprep.subr.bf16.mxu0 %v4199_v40  ;;  %vm537_vm6 = vcmp.lt.s32.totalorder %v529_v1, 62  ;;  %v1026_v1 = vld [vmem:[%s9950_s6 + $0x48] sm:$0xff] }
  0x2b   :  { %4224 = vmatprep.subr.bf16.mxu1 %v4223_v44  ;;  %419 = vmatprep.mubr.f32.mxu0 %v5458_v3  ;;  %v5887_v44 = vand.u32 7, %v5878_v32 }
  0x2c   :  { %496 = vmatprep.mubr.f32.mxu1 %v5458_v3 }
  0x2d   :  { %4202 = vmatpush1.bf16.msra.mxu0 %v4201_v50  ;;  %v5891_v46 = vmul.u32 8, %v5887_v44 }
  0x2e   :  { %4226 = vmatpush1.bf16.msra.mxu1 %v4225_v51  ;;  %4204 = vmatprep.subr.bf16.mxu0 %v4203_v52  ;;  %v522_v51 = vshra.s32 %v5895_v48, 6  ;;  %v5902_v52 = vadd.s32 256, %v5884_v43 }
  0x2f   :  { %4228 = vmatprep.subr.bf16.mxu1 %v4227_v56  ;;  %v525_v50 = vadd.s32 %v521_v47, %v5891_v46 }
  0x30   :  { %v526_v54 = vadd.s32 %v522_v51, %v5891_v46  ;;  %v523_v55 = vshra.s32 %v5902_v52, 6 }
  0x31   :  { %4206 = vmatpush1.bf16.msra.mxu0 %v4205_v62  ;;  %vm533_vm2 = vcmp.lt.s32.totalorder %v525_v50, 62  ;;  %v1018_v50 = vld [vmem:[%s9950_s6 + $0x8] sm:$0xff] }
  0x32   :  { %4230 = vmatpush1.bf16.msra.mxu1 %v4229_v63  ;;  %4208 = vmatprep.subr.bf16.mxu0 %v4207_v0  ;;  %v531_v56 = vadd.s32 %v523_v55, %v520_v53  ;;  %v3965_v58 = vsel %vm533_vm2, 1.0, %v5458_v3  ;;  %vm534_vm3 = vcmp.lt.s32.totalorder %v526_v54, 62 }
  0x33   :  { %4232 = vmatprep.subr.bf16.mxu1 %v4231_v5  ;;  %v530_v5 = vadd.s32 %v522_v51, %v520_v53  ;;  %v3966_v8 = vsel %vm534_vm3, 1.0, %v5458_v3  ;;  %v1022_v51 = vld [vmem:[%s9950_s6 + $0x28] sm:$0xff] }
  0x34   :  { %vm539_vm4 = vcmp.lt.s32.totalorder %v531_v56, 62  ;;  %v4239_v54 = vpack.c.bf16 %v1022_v51, %v1018_v50  ;;  %v1017_v56 = vld [vmem:[%s9950_s6] sm:$0xff]  ;;  %v1035_v50 = vld [vmem:[%s9950_s6 + $0x90] sm:$0xff] }
  0x35   :  { %4210 = vmatpush1.bf16.msra.mxu0 %v4209_v11  ;;  %vm538_vm5 = vcmp.lt.s32.totalorder %v530_v5, 62  ;;  %v1039_v51 = vld [vmem:[%s9950_s6 + $0xb0] sm:$0xff] }
  0x36   :  { %4234 = vmatpush1.bf16.msra.mxu1 %v4233_v12  ;;  %4212 = vmatprep.subr.bf16.mxu0 %v4211_v13 }
  0x37   :  { %4236 = vmatprep.subr.bf16.mxu1 %v4235_v16 }
  0x39   :  { %4214 = vmatpush1.bf16.msra.mxu0 %v4213_v19  ;;  %v3971_v19 = vsel %vm539_vm4, 1.0, %v5458_v3 }
  0x3a   :  { %4238 = vmatpush1.bf16.msra.mxu1 %v4237_v20  ;;  %4240 = vmatprep.subr.bf16.mxu0 %v4239_v54  ;;  %v1042_v54 = vld [vmem:[%s9950_s6 + $0xc8] sm:$0xff] }
  0x3c   :  { %3961 = vmatmul.mubr.msk.f32.vlgmr.msra.gmra.mrb[4].mxu0 %vm161_vm0, %v5735_v22 }
  0x3d   :  { %3963 = vmatmul.mubr.msk.f32.vlgmr.msra.gmra.mrb[4].mxu1 %vm161_vm0, %v5735_v22  ;;  %425 = vmatprep.mubr.f32.mxu0 %v5458_v3 }
  0x3e   :  { %502 = vmatprep.mubr.f32.mxu1 %v5458_v3 }
  0x40   :  { %3962 = vmatmul.mubr.msk.f32.gmra.mrb[6].mxu0 %vm161_vm0, %v5774_v37 }
  0x41   :  { %3964 = vmatmul.mubr.msk.f32.gmra.mrb[6].mxu1 %vm161_vm0, %v5774_v37 }
  0xf7   :  { %v234_v21 = vpop.f32.mrb[0].mxu0 }
  0xf8   :  { %v236_v23 = vpop.f32.mrb[1].mxu0  ;;  %v311_v24 = vpop.f32.mrb[0].mxu1  ;;  %v331_v29 = vrot.slane %v234_v21, 1 }
  0xf9   :  { %v313_v26 = vpop.f32.mrb[1].mxu1  ;;  %v337_v27 = vrot.slane %v311_v24, 1  ;;  %v334_v33 = vrot.slane %v236_v23, 1  ;;  %v527_v24 = vadd.s32 %v523_v55, %v5891_v46  ;;  %v1024_v55 = vld [vmem:[%s9950_s6 + $0x38] sm:$0xff] }
  0xfa   :  { %v340_v38 = vrot.slane %v313_v26, 1  ;;  %v3970_v26 = vsel %vm538_vm5, 1.0, %v5458_v3 }
  0xfb   :  { %v240_v28 = vpop.f32.mrb[2].mxu0  ;;  %vm535_vm7 = vcmp.lt.s32.totalorder %v527_v24, 62  ;;  %v1034_v24 = vld [vmem:[%s9950_s6 + $0x88] sm:$0xff] }
  0xfc   :  { %v332_v22 = vrot.slane %v240_v28, 1  ;;  %v317_v30 = vpop.f32.mrb[2].mxu1  ;;  %v242_v31 = vpop.f32.mrb[3].mxu0 }
  0xfd   :  { %v338_v34 = vrot.slane %v317_v30, 1  ;;  %v335_v35 = vrot.slane %v242_v31, 1  ;;  %v319_v36 = vpop.f32.mrb[3].mxu1  ;;  %v524_v30 = vshra.s32 %v5952_v25, 6  ;;  %v3967_v31 = vsel %vm535_vm7, 1.0, %v5458_v3 }
  0xfe   :  { %v341_v37 = vrot.slane %v319_v36, 1  ;;  %v333_v39 = vsel %vm330_vm1, %v331_v29, %v332_v22  ;;  %v351_v6 = vsel %vm330_vm1, %v332_v22, 0.0 }
  0xff   :  { %v339_v40 = vsel %vm330_vm1, %v337_v27, %v338_v34  ;;  %v336_v41 = vsel %vm330_vm1, %v334_v33, %v335_v35  ;;  %v353_v10 = vsel %vm330_vm1, %v338_v34, 0.0  ;;  %v352_v12 = vsel %vm330_vm1, %v335_v35, 0.0 }
 0x100   :  { %v342_v42 = vsel %vm330_vm1, %v340_v38, %v341_v37  ;;  %v354_v17 = vsel %vm330_vm1, %v341_v37, 0.0  ;;  %v3969_v27 = vsel %vm537_vm6, 1.0, %v5458_v3  ;;  %v528_v34 = vadd.s32 %v524_v30, %v5891_v46 }
 0x101   :  { %v532_v36 = vadd.s32 %v524_v30, %v520_v53  ;;  %v1020_v53 = vld [vmem:[%s9950_s6 + $0x18] sm:$0xff] }
 0x102   :  { %vm536_vm8 = vcmp.lt.s32.totalorder %v528_v34, 62  ;;  %v1040_v34 = vld [vmem:[%s9950_s6 + $0xb8] sm:$0xff] }
 0x103   :  { %vm540_vm9 = vcmp.lt.s32.totalorder %v532_v36, 62  ;;  %v1033_v36 = vld [vmem:[%s9950_s6 + $0x80] sm:$0xff] }
 0x10f   :  { %v421_v57 = vpop.f32.mrb[4].mxu0 }
 0x110   :  { %v5908_v59 = vadd.f32 %v421_v57, %v333_v39  ;;  %v498_v60 = vpop.f32.mrb[4].mxu1  ;;  %v423_v61 = vpop.f32.mrb[5].mxu0  ;;  %v3968_v39 = vsel %vm536_vm8, 1.0, %v5458_v3  ;;  %v1021_v57 = vld [vmem:[%s9950_s6 + $0x20] sm:$0xff] }
 0x111   :  { %v5910_v62 = vadd.f32 %v498_v60, %v339_v40  ;;  %v5912_v63 = vadd.f32 %v423_v61, %v336_v41  ;;  %v500_v0 = vpop.f32.mrb[5].mxu1  ;;  %v3972_v41 = vsel %vm540_vm9, 1.0, %v5458_v3  ;;  %v4241_v60 = vpack.c.bf16 %v1021_v57, %v1017_v56  ;;  %v1019_v61 = vld [vmem:[%s9950_s6 + $0x10] sm:$0xff]  ;;  %v1044_v56 = vld [vmem:[%s9950_s6 + $0xd8] sm:$0xff] }
 0x112   :  { %v5914_v2 = vadd.f32 %v500_v0, %v342_v42  ;;  %v5917_v4 = vmul.f32 %v3965_v58, %v5908_v59  ;;  %v4367_v58 = vpack.c.bf16 %v1024_v55, %v1020_v53  ;;  %v1023_v0 = vld [vmem:[%s9950_s6 + $0x30] sm:$0xff]  ;;  %v1046_v55 = vld [vmem:[%s9950_s6 + $0xe8] sm:$0xff]  ;;  %v4377_v57 = vpack.c.bf16 %v1039_v51, %v1035_v50  ;;  %v1057_v51 = vld [vmem:[%s9950_s6 + $0x140] sm:$0xff] }
 0x113   :  { %v427_v7 = vpop.f32.mrb[6].mxu0  ;;  %v5943_v21 = vmul.f32 %v3966_v8, %v5912_v63  ;;  %v5984_v35 = vmul.f32 %v3967_v31, %v5910_v62  ;;  %v4369_v5 = vpack.c.bf16 %v1023_v0, %v1019_v61  ;;  %v1032_v8 = vld [vmem:[%s9950_s6 + $0x78] sm:$0xff]  ;;  %4242 = vmatpush1.bf16.msra.mxu0 %v4241_v60  ;;  %v1041_v61 = vld [vmem:[%s9950_s6 + $0xc0] sm:$0xff] }
 0x114   :  { %v5921_v9 = vadd.f32 %v427_v7, %v351_v6  ;;  %v504_v11 = vpop.f32.mrb[6].mxu1  ;;  %v429_v13 = vpop.f32.mrb[7].mxu0  ;;  %575 = vrot.lane.b32.xlu0 %v5917_v4, %s5459_s27  ;;  %v5929_v14 = vmul.f32 %v5917_v4, %v5908_v59  ;;  %v6009_v42 = vmul.f32 %v3968_v39, %v5914_v2  ;;  %v1030_v6 = vld [vmem:[%s9950_s6 + $0x68] sm:$0xff]  ;;  %v1028_v7 = vld [vmem:[%s9950_s6 + $0x58] sm:$0xff]  ;;  %4368 = vmatprep.subr.bf16.mxu1 %v4367_v58  ;;  %v1045_v0 = vld [vmem:[%s9950_s6 + $0xe0] sm:$0xff] }
 0x115   :  { %v5931_v15 = vadd.f32 %v504_v11, %v353_v10  ;;  %v5933_v16 = vadd.f32 %v429_v13, %v352_v12  ;;  %v506_v18 = vpop.f32.mrb[7].mxu1  ;;  %v5960_v28 = vmul.f32 %v5943_v21, %v5912_v63  ;;  %v5996_v37 = vmul.f32 %v5984_v35, %v5910_v62  ;;  %v1025_v12 = vld [vmem:[%s9950_s6 + $0x40] sm:$0xff]  ;;  %4370 = vmatpush1.bf16.msra.mxu1 %v4369_v5  ;;  %v1036_v31 = vld [vmem:[%s9950_s6 + $0x98] sm:$0xff]  ;;  %v1043_v5 = vld [vmem:[%s9950_s6 + $0xd0] sm:$0xff] }
 0x116   :  { %v5938_v20 = vadd.f32 %v506_v18, %v354_v17  ;;  %585 = vrot.lane.b32.xlu1 %v5929_v14, %s5459_s27  ;;  %v5968_v22 = vmul.f32 %v3969_v27, %v5921_v9  ;;  %v6020_v46 = vmul.f32 %v6009_v42, %v5914_v2  ;;  %v4243_v10 = vpack.c.bf16 %v1030_v6, %v1026_v1  ;;  %v1029_v13 = vld [vmem:[%s9950_s6 + $0x60] sm:$0xff]  ;;  %v1027_v17 = vld [vmem:[%s9950_s6 + $0x50] sm:$0xff]  ;;  %v1048_v60 = vld [vmem:[%s9950_s6 + $0xf8] sm:$0xff] }
 0x117   :  { %v5948_v23 = vmul.f32 %v3971_v19, %v5931_v15  ;;  %v5965_v29 = vmul.f32 %v3970_v26, %v5933_v16  ;;  %v4371_v11 = vpack.c.bf16 %v1032_v8, %v1028_v7  ;;  %v4245_v18 = vpack.c.bf16 %v1029_v13, %v1025_v12  ;;  %v1031_v19 = vld [vmem:[%s9950_s6 + $0x70] sm:$0xff]  ;;  %v1038_v26 = vld [vmem:[%s9950_s6 + $0xa8] sm:$0xff] }
 0x118   :  { %599 = vrot.lane.b32.xlu0 %v5943_v21, %s5459_s27  ;;  %v5978_v33 = vmul.f32 %v5968_v22, %v5921_v9  ;;  %v6014_v45 = vmul.f32 %v3972_v41, %v5938_v20  ;;  %4244 = vmatprep.subr.bf16.mxu0 %v4243_v10  ;;  %v4373_v27 = vpack.c.bf16 %v1031_v19, %v1027_v17  ;;  %v1037_v41 = vld [vmem:[%s9950_s6 + $0xa0] sm:$0xff]  ;;  %v1047_v6 = vld [vmem:[%s9950_s6 + $0xf0] sm:$0xff]  ;;  %v1050_v7 = vld [vmem:[%s9950_s6 + $0x108] sm:$0xff] }
 0x119   :  { %v5990_v38 = vmul.f32 %v5948_v23, %v5931_v15  ;;  %v6003_v40 = vmul.f32 %v5965_v29, %v5933_v16  ;;  %4372 = vmatprep.subr.bf16.mxu1 %v4371_v11  ;;  %v4247_v30 = vpack.c.bf16 %v1038_v26, %v1034_v24  ;;  %v4375_v39 = vpack.c.bf16 %v1040_v34, %v1036_v31  ;;  %v1054_v8 = vld [vmem:[%s9950_s6 + $0x128] sm:$0xff]  ;;  %v1052_v10 = vld [vmem:[%s9950_s6 + $0x118] sm:$0xff]  ;;  %v1053_v19 = vld [vmem:[%s9950_s6 + $0x120] sm:$0xff] }
 0x11a   :  { %625 = vrot.lane.b32.xlu1 %v5948_v23, %s5459_s27  ;;  %v6026_v47 = vmul.f32 %v6014_v45, %v5938_v20  ;;  %4246 = vmatpush1.bf16.msra.mxu0 %v4245_v18  ;;  %v4249_v53 = vpack.c.bf16 %v1037_v41, %v1033_v36  ;;  %v4251_v58 = vpack.c.bf16 %v1046_v55, %v1042_v54  ;;  %v1056_v11 = vld [vmem:[%s9950_s6 + $0x138] sm:$0xff]  ;;  %v1049_v18 = vld [vmem:[%s9950_s6 + $0x100] sm:$0xff]  ;;  %v1051_v24 = vld [vmem:[%s9950_s6 + $0x110] sm:$0xff] }
 0x11b   :  { %4374 = vmatpush1.bf16.msra.mxu1 %v4373_v27  ;;  %4248 = vmatprep.subr.bf16.mxu0 %v4247_v30  ;;  %v4379_v1 = vpack.c.bf16 %v1048_v60, %v1044_v56  ;;  %v4253_v12 = vpack.c.bf16 %v1045_v0, %v1041_v61  ;;  %v4381_v13 = vpack.c.bf16 %v1047_v6, %v1043_v5  ;;  %v1055_v27 = vld [vmem:[%s9950_s6 + $0x130] sm:$0xff]  ;;  %v1058_v30 = vld [vmem:[%s9950_s6 + $0x148] sm:$0xff]  ;;  %v1060_v34 = vld [vmem:[%s9950_s6 + $0x158] sm:$0xff] }
 0x11c   :  { %609 = vrot.lane.b32.xlu0 %v5960_v28, %s5459_s27  ;;  %4376 = vmatprep.subr.bf16.mxu1 %v4375_v39  ;;  %v4255_v17 = vpack.c.bf16 %v1054_v8, %v1050_v7  ;;  %v4383_v26 = vpack.c.bf16 %v1056_v11, %v1052_v10  ;;  %v1062_v31 = vld [vmem:[%s9950_s6 + $0x168] sm:$0xff]  ;;  %v1064_v36 = vld [vmem:[%s9950_s6 + $0x178] sm:$0xff]  ;;  %v4257_v39 = vpack.c.bf16 %v1053_v19, %v1049_v18  ;;  %v1059_v54 = vld [vmem:[%s9950_s6 + $0x150] sm:$0xff] }
 0x11d   :  { %v4385_v41 = vpack.c.bf16 %v1055_v27, %v1051_v24  ;;  %v4259_v50 = vpack.c.bf16 %v1062_v31, %v1058_v30  ;;  %v4387_v55 = vpack.c.bf16 %v1064_v36, %v1060_v34  ;;  %v1063_v56 = vld [vmem:[%s9950_s6 + $0x170] sm:$0xff]  ;;  %v1068_v60 = vld [vmem:[%s9950_s6 + $0x198] sm:$0xff]  ;;  %v1065_v6 = vld [vmem:[%s9950_s6 + $0x180] sm:$0xff] }
 0x11e   :  { %601 = vrot.lane.b32.xlu1 %v5965_v29, %s5459_s27  ;;  %4250 = vmatpush1.bf16.msra.mxu0 %v4249_v53  ;;  %v1061_v53 = vld [vmem:[%s9950_s6 + $0x160] sm:$0xff]  ;;  %v1072_v61 = vld [vmem:[%s9950_s6 + $0x1b8] sm:$0xff]  ;;  %v1067_v8 = vld [vmem:[%s9950_s6 + $0x190] sm:$0xff] }
 0x11f   :  { %4378 = vmatpush1.bf16.msra.mxu1 %v4377_v57  ;;  %4252 = vmatprep.subr.bf16.mxu0 %v4251_v58  ;;  %v1066_v57 = vld [vmem:[%s9950_s6 + $0x188] sm:$0xff]  ;;  %v4261_v0 = vpack.c.bf16 %v1061_v53, %v1057_v51  ;;  %v1069_v7 = vld [vmem:[%s9950_s6 + $0x1a0] sm:$0xff]  ;;  %v4391_v10 = vpack.c.bf16 %v1072_v61, %v1068_v60  ;;  %v1071_v11 = vld [vmem:[%s9950_s6 + $0x1b0] sm:$0xff] }
 0x120   :  { %577 = vrot.lane.b32.xlu0 %v5968_v22, %s5459_s27  ;;  %4380 = vmatprep.subr.bf16.mxu1 %v4379_v1  ;;  %v1070_v58 = vld [vmem:[%s9950_s6 + $0x1a8] sm:$0xff]  ;;  %v4389_v1 = vpack.c.bf16 %v1063_v56, %v1059_v54  ;;  %v1080_v18 = vld [vmem:[%s9950_s6 + $0x1f8] sm:$0xff]  ;;  %v4265_v19 = vpack.c.bf16 %v1069_v7, %v1065_v6  ;;  %v4393_v24 = vpack.c.bf16 %v1071_v11, %v1067_v8  ;;  %v1073_v27 = vld [vmem:[%s9950_s6 + $0x1c0] sm:$0xff] }
 0x121   :  { %v4263_v5 = vpack.c.bf16 %v1070_v58, %v1066_v57  ;;  %v1077_v30 = vld [vmem:[%s9950_s6 + $0x1e0] sm:$0xff]  ;;  %v1075_v31 = vld [vmem:[%s9950_s6 + $0x1d0] sm:$0xff]  ;;  %v1088_v51 = vld [vmem:[%s9950_s6 + $0x238] sm:$0xff] }
 0x122   :  { %587 = vrot.lane.b32.xlu1 %v5978_v33, %s5459_s27  ;;  %4254 = vmatpush1.bf16.msra.mxu0 %v4253_v12  ;;  %v1074_v12 = vld [vmem:[%s9950_s6 + $0x1c8] sm:$0xff]  ;;  %v1079_v36 = vld [vmem:[%s9950_s6 + $0x1f0] sm:$0xff]  ;;  %v4269_v53 = vpack.c.bf16 %v1077_v30, %v1073_v27  ;;  %v1081_v56 = vld [vmem:[%s9950_s6 + $0x200] sm:$0xff] }
 0x123   :  { %4382 = vmatpush1.bf16.msra.mxu1 %v4381_v13  ;;  %4256 = vmatprep.subr.bf16.mxu0 %v4255_v17  ;;  %v1078_v13 = vld [vmem:[%s9950_s6 + $0x1e8] sm:$0xff]  ;;  %v1076_v17 = vld [vmem:[%s9950_s6 + $0x1d8] sm:$0xff]  ;;  %v4397_v54 = vpack.c.bf16 %v1079_v36, %v1075_v31  ;;  %v1085_v57 = vld [vmem:[%s9950_s6 + $0x220] sm:$0xff] }
 0x124   :  { %623 = vrot.lane.b32.xlu0 %v5984_v35, %s5459_s27  ;;  %4384 = vmatprep.subr.bf16.mxu1 %v4383_v26  ;;  %v4267_v26 = vpack.c.bf16 %v1078_v13, %v1074_v12  ;;  %v4395_v34 = vpack.c.bf16 %v1080_v18, %v1076_v17  ;;  %v1083_v58 = vld [vmem:[%s9950_s6 + $0x210] sm:$0xff]  ;;  %v1096_v6 = vld [vmem:[%s9950_s6 + $0x278] sm:$0xff]  ;;  %v4273_v7 = vpack.c.bf16 %v1085_v57, %v1081_v56  ;;  %v1089_v11 = vld [vmem:[%s9950_s6 + $0x240] sm:$0xff] }
 0x125   :  { %v1087_v61 = vld [vmem:[%s9950_s6 + $0x230] sm:$0xff]  ;;  %v1093_v12 = vld [vmem:[%s9950_s6 + $0x260] sm:$0xff]  ;;  %v1104_v27 = vld [vmem:[%s9950_s6 + $0x2b8] sm:$0xff] }
 0x126   :  { %635 = vrot.lane.b32.xlu1 %v5990_v38, %s5459_s27  ;;  %4258 = vmatpush1.bf16.msra.mxu0 %v4257_v39  ;;  %v1082_v39 = vld [vmem:[%s9950_s6 + $0x208] sm:$0xff]  ;;  %v4401_v8 = vpack.c.bf16 %v1087_v61, %v1083_v58  ;;  %v1091_v13 = vld [vmem:[%s9950_s6 + $0x250] sm:$0xff]  ;;  %v4277_v30 = vpack.c.bf16 %v1093_v12, %v1089_v11  ;;  %v1097_v36 = vld [vmem:[%s9950_s6 + $0x280] sm:$0xff] }
 0x127   :  { %4386 = vmatpush1.bf16.msra.mxu1 %v4385_v41  ;;  %4260 = vmatprep.subr.bf16.mxu0 %v4259_v50  ;;  %v1086_v41 = vld [vmem:[%s9950_s6 + $0x228] sm:$0xff]  ;;  %v1084_v50 = vld [vmem:[%s9950_s6 + $0x218] sm:$0xff]  ;;  %v1095_v18 = vld [vmem:[%s9950_s6 + $0x270] sm:$0xff] }
 0x128   :  { %633 = vrot.lane.b32.xlu0 %v5996_v37, %s5459_s27  ;;  %4388 = vmatprep.subr.bf16.mxu1 %v4387_v55  ;;  %v4271_v55 = vpack.c.bf16 %v1086_v41, %v1082_v39  ;;  %v4399_v60 = vpack.c.bf16 %v1088_v51, %v1084_v50  ;;  %v4405_v31 = vpack.c.bf16 %v1095_v18, %v1091_v13  ;;  %v1101_v39 = vld [vmem:[%s9950_s6 + $0x2a0] sm:$0xff]  ;;  %v1099_v41 = vld [vmem:[%s9950_s6 + $0x290] sm:$0xff]  ;;  %v1112_v56 = vld [vmem:[%s9950_s6 + $0x2f8] sm:$0xff] }
 0x129   :  { %v1103_v51 = vld [vmem:[%s9950_s6 + $0x2b0] sm:$0xff]  ;;  %v4281_v57 = vpack.c.bf16 %v1101_v39, %v1097_v36  ;;  %v1105_v61 = vld [vmem:[%s9950_s6 + $0x2c0] sm:$0xff]  ;;  %v1120_v11 = vld [vmem:[%s9950_s6 + $0x338] sm:$0xff] }
 0x12a   :  { %611 = vrot.lane.b32.xlu1 %v6003_v40, %s5459_s27  ;;  %4262 = vmatpush1.bf16.msra.mxu0 %v4261_v0  ;;  %v1090_v0 = vld [vmem:[%s9950_s6 + $0x248] sm:$0xff]  ;;  %v4409_v58 = vpack.c.bf16 %v1103_v51, %v1099_v41  ;;  %v1113_v18 = vld [vmem:[%s9950_s6 + $0x300] sm:$0xff] }
 0x12b   :  { %4390 = vmatpush1.bf16.msra.mxu1 %v4389_v1  ;;  %4264 = vmatprep.subr.bf16.mxu0 %v4263_v5  ;;  %v1094_v1 = vld [vmem:[%s9950_s6 + $0x268] sm:$0xff]  ;;  %v1092_v5 = vld [vmem:[%s9950_s6 + $0x258] sm:$0xff] }
 0x12c   :  { %647 = vrot.lane.b32.xlu0 %v6009_v42, %s5459_s27  ;;  %4392 = vmatprep.subr.bf16.mxu1 %v4391_v10  ;;  %v4275_v10 = vpack.c.bf16 %v1094_v1, %v1090_v0  ;;  %v4403_v17 = vpack.c.bf16 %v1096_v6, %v1092_v5  ;;  %v1109_v0 = vld [vmem:[%s9950_s6 + $0x2e0] sm:$0xff]  ;;  %v1107_v1 = vld [vmem:[%s9950_s6 + $0x2d0] sm:$0xff] }
 0x12d   :  { %v1111_v6 = vld [vmem:[%s9950_s6 + $0x2f0] sm:$0xff]  ;;  %v4285_v12 = vpack.c.bf16 %v1109_v0, %v1105_v61 }
 0x12e   :  { %649 = vrot.lane.b32.xlu1 %v6014_v45, %s5459_s27  ;;  %4266 = vmatpush1.bf16.msra.mxu0 %v4265_v19  ;;  %v1098_v19 = vld [vmem:[%s9950_s6 + $0x288] sm:$0xff]  ;;  %v4413_v13 = vpack.c.bf16 %v1111_v6, %v1107_v1 }
 0x12f   :  { %4394 = vmatpush1.bf16.msra.mxu1 %v4393_v24  ;;  %4268 = vmatprep.subr.bf16.mxu0 %v4267_v26  ;;  %v1102_v24 = vld [vmem:[%s9950_s6 + $0x2a8] sm:$0xff]  ;;  %v1100_v26 = vld [vmem:[%s9950_s6 + $0x298] sm:$0xff] }
 0x130   :  { %657 = vrot.lane.b32.xlu0 %v6020_v46, %s5459_s27  ;;  %4396 = vmatprep.subr.bf16.mxu1 %v4395_v34  ;;  %v4279_v34 = vpack.c.bf16 %v1102_v24, %v1098_v19  ;;  %v4407_v50 = vpack.c.bf16 %v1104_v27, %v1100_v26  ;;  %v1117_v19 = vld [vmem:[%s9950_s6 + $0x320] sm:$0xff]  ;;  %v1115_v26 = vld [vmem:[%s9950_s6 + $0x310] sm:$0xff] }
 0x131   :  { %v1119_v27 = vld [vmem:[%s9950_s6 + $0x330] sm:$0xff] }
 0x132   :  { %659 = vrot.lane.b32.xlu1 %v6026_v47, %s5459_s27  ;;  %4270 = vmatpush1.bf16.msra.mxu0 %v4269_v53  ;;  %v1106_v53 = vld [vmem:[%s9950_s6 + $0x2c8] sm:$0xff] }
 0x133   :  { %4398 = vmatpush1.bf16.msra.mxu1 %v4397_v54  ;;  %4272 = vmatprep.subr.bf16.mxu0 %v4271_v55  ;;  %v1110_v54 = vld [vmem:[%s9950_s6 + $0x2e8] sm:$0xff]  ;;  %v1108_v55 = vld [vmem:[%s9950_s6 + $0x2d8] sm:$0xff] }
 0x134   :  { %4400 = vmatprep.subr.bf16.mxu1 %v4399_v60  ;;  %v4283_v60 = vpack.c.bf16 %v1110_v54, %v1106_v53  ;;  %v4411_v5 = vpack.c.bf16 %v1112_v56, %v1108_v55 }
 0x136   :  { %4274 = vmatpush1.bf16.msra.mxu0 %v4273_v7  ;;  %v1114_v7 = vld [vmem:[%s9950_s6 + $0x308] sm:$0xff] }
 0x137   :  { %4402 = vmatpush1.bf16.msra.mxu1 %v4401_v8  ;;  %4276 = vmatprep.subr.bf16.mxu0 %v4275_v10  ;;  %v1118_v8 = vld [vmem:[%s9950_s6 + $0x328] sm:$0xff]  ;;  %v1116_v10 = vld [vmem:[%s9950_s6 + $0x318] sm:$0xff] }
 0x138   :  { %4404 = vmatprep.subr.bf16.mxu1 %v4403_v17  ;;  %v4287_v17 = vpack.c.bf16 %v1118_v8, %v1114_v7  ;;  %v4415_v24 = vpack.c.bf16 %v1120_v11, %v1116_v10 }
 0x13a   :  { %4278 = vmatpush1.bf16.msra.mxu0 %v4277_v30  ;;  %v4289_v30 = vpack.c.bf16 %v1117_v19, %v1113_v18 }
 0x13b   :  { %4406 = vmatpush1.bf16.msra.mxu1 %v4405_v31  ;;  %4280 = vmatprep.subr.bf16.mxu0 %v4279_v34  ;;  %v4417_v31 = vpack.c.bf16 %v1119_v27, %v1115_v26 }
 0x13c   :  { %4408 = vmatprep.subr.bf16.mxu1 %v4407_v50 }
 0x13e   :  { %4282 = vmatpush1.bf16.msra.mxu0 %v4281_v57 }
 0x13f   :  { %4410 = vmatpush1.bf16.msra.mxu1 %v4409_v58  ;;  %4284 = vmatprep.subr.bf16.mxu0 %v4283_v60 }
 0x140   :  { %4412 = vmatprep.subr.bf16.mxu1 %v4411_v5 }
 0x142   :  { %4286 = vmatpush1.bf16.msra.mxu0 %v4285_v12 }
 0x143   :  { %4414 = vmatpush1.bf16.msra.mxu1 %v4413_v13  ;;  %4288 = vmatprep.subr.bf16.mxu0 %v4287_v17 }
 0x144   :  { %4416 = vmatprep.subr.bf16.mxu1 %v4415_v24 }
 0x146   :  { %4290 = vmatpush1.bf16.msra.mxu0 %v4289_v30 }
 0x147   :  { %4418 = vmatpush1.bf16.msra.mxu1 %v4417_v31 }
 0x186   :  { %v576_v34 = vpop.permute.xlu0 %575 }
 0x187   :  { %v581_v41 = vadd.f32 %v576_v34, %v5917_v4 }
 0x188   :  { %v586_v36 = vpop.permute.xlu1 %585 }
 0x189   :  { %v593_v53 = vadd.f32 %v581_v41, %v5943_v21  ;;  %v591_v55 = vadd.f32 %v586_v36, %v5929_v14 }
 0x18a   :  { %v600_v39 = vpop.permute.xlu0 %599 }
 0x18b   :  { %v605_v57 = vadd.f32 %v600_v39, %v593_v53  ;;  %v595_v61 = vadd.f32 %v591_v55, %v5960_v28 }
 0x18c   :  { %v626_v50 = vpop.permute.xlu1 %625 }
 0x18d   :  { %v617_v7 = vadd.f32 %v605_v57, %v5984_v35 }
 0x18e   :  { %v610_v51 = vpop.permute.xlu0 %609 }
 0x18f   :  { %v615_v5 = vadd.f32 %v610_v51, %v595_v61 }
 0x190   :  { %v602_v54 = vpop.permute.xlu1 %601 }
 0x191   :  { %v619_v11 = vadd.f32 %v615_v5, %v5996_v37 }
 0x192   :  { %v578_v56 = vpop.permute.xlu0 %577 }
 0x193   :  { %v582_v58 = vadd.f32 %v578_v56, %v5968_v22 }
 0x194   :  { %v588_v60 = vpop.permute.xlu1 %587 }
 0x195   :  { %v594_v0 = vadd.f32 %v582_v58, %v5965_v29  ;;  %v592_v4 = vadd.f32 %v588_v60, %v5978_v33 }
 0x196   :  { %v624_v1 = vpop.permute.xlu0 %623 }
 0x197   :  { %v606_v6 = vadd.f32 %v602_v54, %v594_v0  ;;  %v629_v8 = vadd.f32 %v624_v1, %v617_v7  ;;  %v596_v22 = vadd.f32 %v592_v4, %v6003_v40  ;;  %v1122_v7 = vld [vmem:[%s9950_s6 + $0x348] sm:$0xff] }
 0x198   :  { %v636_v21 = vpop.permute.xlu1 %635 }
 0x199   :  { %v618_v14 = vadd.f32 %v606_v6, %v5948_v23  ;;  %v641_v17 = vadd.f32 %v629_v8, %v6009_v42  ;;  %v1124_v8 = vld [vmem:[%s9950_s6 + $0x358] sm:$0xff] }
 0x19a   :  { %v634_v10 = vpop.permute.xlu0 %633 }
 0x19b   :  { %v630_v12 = vadd.f32 %v626_v50, %v618_v14  ;;  %v639_v13 = vadd.f32 %v634_v10, %v619_v11  ;;  %v1128_v10 = vld [vmem:[%s9950_s6 + $0x378] sm:$0xff]  ;;  %v1121_v11 = vld [vmem:[%s9950_s6 + $0x340] sm:$0xff] }
 0x19c   :  { %v612_v28 = vpop.permute.xlu1 %611 }
 0x19d   :  { %v616_v29 = vadd.f32 %v612_v28, %v596_v22  ;;  %v642_v35 = vadd.f32 %v630_v12, %v6014_v45  ;;  %v643_v26 = vadd.f32 %v639_v13, %v6020_v46  ;;  %v1125_v22 = vld [vmem:[%s9950_s6 + $0x360] sm:$0xff]  ;;  %v4419_v12 = vpack.c.bf16 %v1128_v10, %v1124_v8  ;;  %v1123_v13 = vld [vmem:[%s9950_s6 + $0x350] sm:$0xff] }
 0x19e   :  { %v648_v18 = vpop.permute.xlu0 %647  ;;  %v4293_v28 = vpack.c.bf16 %v1125_v22, %v1121_v11 }
 0x19f   :  { %v620_v33 = vadd.f32 %v616_v29, %v5990_v38  ;;  %v653_v19 = vadd.f32 %v648_v18, %v641_v17  ;;  %v1127_v29 = vld [vmem:[%s9950_s6 + $0x370] sm:$0xff]  ;;  %4420 = vmatprep.subr.bf16.mxu1 %v4419_v12  ;;  %v1130_v18 = vld [vmem:[%s9950_s6 + $0x388] sm:$0xff] }
 0x1a0   :  { %v650_v24 = vpop.permute.xlu1 %649  ;;  %v4421_v17 = vpack.c.bf16 %v1127_v29, %v1123_v13 }
 0x1a1   :  { %v654_v23 = vadd.f32 %v650_v24, %v642_v35  ;;  %v640_v37 = vadd.f32 %v636_v21, %v620_v33  ;;  %v666_v40 = vsel %vm665_vm10, %v653_v19, 0.0  ;;  %v1126_v21 = vld [vmem:[%s9950_s6 + $0x368] sm:$0xff]  ;;  %v1132_v19 = vld [vmem:[%s9950_s6 + $0x398] sm:$0xff] }
 0x1a2   :  { %v658_v27 = vpop.permute.xlu0 %657  ;;  %v4291_v14 = vpack.c.bf16 %v1126_v21, %v1122_v7  ;;  %v1134_v33 = vld [vmem:[%s9950_s6 + $0x3a8] sm:$0xff]  ;;  %4422 = vmatpush1.bf16.msra.mxu1 %v4421_v17  ;;  %v1136_v24 = vld [vmem:[%s9950_s6 + $0x3b8] sm:$0xff] }
 0x1a3   :  { %v667_v30 = vsel %vm665_vm10, %v654_v23, 0.0  ;;  %v663_v31 = vadd.f32 %v658_v27, %v643_v26  ;;  %v644_v42 = vadd.f32 %v640_v37, %v6026_v47  ;;  %v4295_v35 = vpack.c.bf16 %v1134_v33, %v1130_v18  ;;  %v1129_v23 = vld [vmem:[%s9950_s6 + $0x380] sm:$0xff]  ;;  %v1152_v7 = vld [vmem:[%s9950_s6 + $0x438] sm:$0xff] }
 0x1a4   :  { %v668_v34 = vadd.f32 %v667_v30, %v666_v40  ;;  %v660_v36 = vpop.permute.xlu1 %659  ;;  %4292 = vmatprep.subr.bf16.mxu0 %v4291_v14  ;;  %v1133_v26 = vld [vmem:[%s9950_s6 + $0x3a0] sm:$0xff]  ;;  %v4423_v27 = vpack.c.bf16 %v1136_v24, %v1132_v19  ;;  %v1131_v30 = vld [vmem:[%s9950_s6 + $0x390] sm:$0xff] }
 0x1a5   :  { %v664_v38 = vadd.f32 %v660_v36, %v644_v42  ;;  %v676_v45 = vsel %vm665_vm10, %v663_v31, 0.0  ;;  %4294 = vmatpush1.bf16.msra.mxu0 %v4293_v28  ;;  %v688_v37 = vld [vmem:[%s9951_s3] sm:$0x1]  ;;  %v4297_v40 = vpack.c.bf16 %v1133_v26, %v1129_v23  ;;  %v1135_v31 = vld [vmem:[%s9950_s6 + $0x3b0] sm:$0xff]  ;;  %v1142_v36 = vld [vmem:[%s9950_s6 + $0x3e8] sm:$0xff] }
 0x1a6   :  { %v669_v39 = vrot.slane %v668_v34, 4  ;;  %4296 = vmatprep.subr.bf16.mxu0 %v4295_v35  ;;  %v4425_v42 = vpack.c.bf16 %v1135_v31, %v1131_v30  ;;  %4424 = vmatprep.subr.bf16.mxu1 %v4423_v27  ;;  %v1145_v18 = vld [vmem:[%s9950_s6 + $0x400] sm:$0xff]  ;;  %v1151_v26 = vld [vmem:[%s9950_s6 + $0x430] sm:$0xff]  ;;  %v1160_v27 = vld [vmem:[%s9950_s6 + $0x478] sm:$0xff] }
 0x1a7   :  { %v677_v41 = vsel %vm665_vm10, %v664_v38, 0.0  ;;  %v1140_v38 = vld [vmem:[%s9950_s6 + $0x3d8] sm:$0xff]  ;;  %v1149_v33 = vld [vmem:[%s9950_s6 + $0x420] sm:$0xff] }
 0x1a8   :  { %v670_v50 = vadd.f32 %v669_v39, %v668_v34  ;;  %v678_v51 = vadd.f32 %v677_v41, %v676_v45  ;;  %v1138_v34 = vld [vmem:[%s9950_s6 + $0x3c8] sm:$0xff]  ;;  %v1144_v45 = vld [vmem:[%s9950_s6 + $0x3f8] sm:$0xff]  ;;  %v1137_v41 = vld [vmem:[%s9950_s6 + $0x3c0] sm:$0xff]  ;;  %4426 = vmatpush1.bf16.msra.mxu1 %v4425_v42 }
 0x1a9   :  { %4298 = vmatpush1.bf16.msra.mxu0 %v4297_v40  ;;  %v4299_v39 = vpack.c.bf16 %v1142_v36, %v1138_v34  ;;  %v4305_v36 = vpack.c.bf16 %v1149_v33, %v1145_v18 }
 0x1aa   :  { %v671_v46 = vrot.slane %v670_v50, 2  ;;  %v679_v53 = vrot.slane %v678_v51, 4 }
 0x1ab   :  { %4300 = vmatprep.subr.bf16.mxu0 %v4299_v39 }
 0x1ac   :  { %v672_v54 = vadd.f32 %v671_v46, %v670_v50  ;;  %v680_v55 = vadd.f32 %v679_v53, %v678_v51  ;;  %v1141_v50 = vld [vmem:[%s9950_s6 + $0x3e0] sm:$0xff]  ;;  %v6436_v51 = vsub.s32 0, %v5878_v32  ;;  %v4427_v46 = vpack.c.bf16 %v1144_v45, %v1140_v38 }
 0x1ad   :  { %v4301_v53 = vpack.c.bf16 %v1141_v50, %v1137_v41  ;;  %v1153_v45 = vld [vmem:[%s9950_s6 + $0x440] sm:$0xff] }
 0x1ae   :  { %v673_v56 = vrot.slane %v672_v54, 1  ;;  %v681_v57 = vrot.slane %v680_v55, 2  ;;  %4428 = vmatprep.subr.bf16.mxu1 %v4427_v46 }
 0x1af   :  { %4302 = vmatpush1.bf16.msra.mxu0 %v4301_v53  ;;  %v1157_v53 = vld [vmem:[%s9950_s6 + $0x460] sm:$0xff] }
 0x1b0   :  { %v674_v58 = vadd.f32 %v673_v56, %v672_v54  ;;  %v682_v60 = vadd.f32 %v681_v57, %v680_v55  ;;  %v1139_v54 = vld [vmem:[%s9950_s6 + $0x3d0] sm:$0xff] }
 0x1b1   :  { %v1143_v55 = vld [vmem:[%s9950_s6 + $0x3f0] sm:$0xff] }
 0x1b2   :  { %v6362_v61 = vmul.f32 0.008064516, %v674_v58  ;;  %v683_v47 = vrot.slane %v682_v60, 1  ;;  %v4429_v57 = vpack.c.bf16 %v1143_v55, %v1139_v54  ;;  %v1155_v54 = vld [vmem:[%s9950_s6 + $0x450] sm:$0xff] }
 0x1b3   :  { %v1159_v55 = vld [vmem:[%s9950_s6 + $0x470] sm:$0xff] }
 0x1b4   :  { %v684_v0 = vadd.f32 %v683_v47, %v682_v60  ;;  %v686_v1 = vmul.f32 %v6362_v61, %v6362_v61  ;;  %v692_v60 = vld [vmem:[%s9952_s4] sm:$0x1]  ;;  %v1146_v47 = vld [vmem:[%s9950_s6 + $0x408] sm:$0xff]  ;;  %4430 = vmatpush1.bf16.msra.mxu1 %v4429_v57 }
 0x1b6   :  { %v685_v5 = vmul.f32 0.008064516, %v684_v0  ;;  %v1150_v0 = vld [vmem:[%s9950_s6 + $0x428] sm:$0xff] }
 0x1b8   :  { %v687_v6 = vsub.f32 %v685_v5, %v686_v1  ;;  %v1148_v1 = vld [vmem:[%s9950_s6 + $0x418] sm:$0xff] }
 0x1b9   :  { %v4431_v21 = vpack.c.bf16 %v1152_v7, %v1148_v1  ;;  %v1168_v1 = vld [vmem:[%s9950_s6 + $0x4b8] sm:$0xff] }
 0x1ba   :  { %v689_v4 = vadd.f32 1e-05, %v687_v6 }
 0x1bb   :  { %4432 = vmatprep.subr.bf16.mxu1 %v4431_v21  ;;  %v1161_v21 = vld [vmem:[%s9950_s6 + $0x480] sm:$0xff] }
 0x1bc   :  { %5442 = vrsqrt.f32 %v689_v4  ;;  %v4303_v4 = vpack.c.bf16 %v1150_v0, %v1146_v47  ;;  %v1166_v47 = vld [vmem:[%s9950_s6 + $0x4a8] sm:$0xff]  ;;  %v1164_v0 = vld [vmem:[%s9950_s6 + $0x498] sm:$0xff] }
 0x1be   :  { %4304 = vmatprep.subr.bf16.mxu0 %v4303_v4  ;;  %v4437_v4 = vpack.c.bf16 %v1159_v55, %v1155_v54  ;;  %v1185_v55 = vld [vmem:[%s9950_s6 + $0x540] sm:$0xff] }
 0x1c6   :  { %v5443_v56 = vpop.eup %5442 }
 0x1c7   :  { %v691_v58 = vmul.f32 %v5443_v56, %v688_v37 }
 0x1c9   :  { %v699_v5 = vrot.slane %v691_v58, %v6436_v51  ;;  %v693_v6 = vmul.f32 %v691_v58, %v6362_v61 }
 0x1cb   :  { %700 = vrot.lane.b32.xlu0 %v699_v5, %s5459_s27  ;;  %v694_v8 = vsub.f32 %v692_v60, %v693_v6  ;;  %v1162_v60 = vld [vmem:[%s9950_s6 + $0x488] sm:$0xff]  ;;  %v4309_v6 = vpack.c.bf16 %v1157_v53, %v1153_v45  ;;  %v1188_v45 = vld [vmem:[%s9950_s6 + $0x558] sm:$0xff] }
 0x1cd   :  { %v708_v14 = vrot.slane %v694_v8, %v6436_v51 }
 0x1cf   :  { %709 = vrot.lane.b32.xlu1 %v708_v14, %s5459_s27  ;;  %v1163_v14 = vld [vmem:[%s9950_s6 + $0x490] sm:$0xff] }
 0x23d   :  { %v701_v10 = vpop.permute.xlu0 %700 }
 0x23e   :  { %v703_v11 = vsel %vm665_vm10, %v691_v58, %v701_v10  ;;  %v1167_v10 = vld [vmem:[%s9950_s6 + $0x4b0] sm:$0xff] }
 0x23f   :  { %v716_v61 = vrot.slane %v703_v11, %v6436_v51  ;;  %v1170_v11 = vld [vmem:[%s9950_s6 + $0x4c8] sm:$0xff]  ;;  %v4441_v33 = vpack.c.bf16 %v1167_v10, %v1163_v14  ;;  %v1197_v14 = vld [vmem:[%s9950_s6 + $0x5a0] sm:$0xff] }
 0x241   :  { %v710_v22 = vpop.permute.xlu1 %709  ;;  %v718_v13 = vmul.f32 %v716_v61, %v5912_v63  ;;  %v717_v29 = vmul.f32 %v716_v61, %v5908_v59  ;;  %v722_v17 = vmul.f32 %v716_v61, %v5933_v16  ;;  %v721_v19 = vmul.f32 %v716_v61, %v5921_v9  ;;  %v1147_v16 = vld [vmem:[%s9950_s6 + $0x410] sm:$0xff]  ;;  %v1154_v9 = vld [vmem:[%s9950_s6 + $0x448] sm:$0xff] }
 0x242   :  { %v712_v12 = vsel %vm665_vm10, %v694_v8, %v710_v22  ;;  %v719_v35 = vmul.f32 %v716_v61, %v5910_v62  ;;  %v724_v24 = vmul.f32 %v716_v61, %v5938_v20  ;;  %v723_v63 = vmul.f32 %v716_v61, %v5931_v15  ;;  %v1158_v15 = vld [vmem:[%s9950_s6 + $0x468] sm:$0xff]  ;;  %v1156_v20 = vld [vmem:[%s9950_s6 + $0x458] sm:$0xff]  ;;  %v1165_v8 = vld [vmem:[%s9950_s6 + $0x4a0] sm:$0xff] }
 0x243   :  { %v728_v28 = vrot.slane %v712_v12, %v6436_v51  ;;  %v720_v62 = vmul.f32 %v716_v61, %v5914_v2  ;;  %v4433_v38 = vpack.c.bf16 %v1151_v26, %v1147_v16  ;;  %v4307_v56 = vpack.c.bf16 %v1158_v15, %v1154_v9  ;;  %v1178_v16 = vld [vmem:[%s9950_s6 + $0x508] sm:$0xff]  ;;  %v1184_v9 = vld [vmem:[%s9950_s6 + $0x538] sm:$0xff] }
 0x244   :  { %v4435_v57 = vpack.c.bf16 %v1160_v27, %v1156_v20  ;;  %v4311_v22 = vpack.c.bf16 %v1166_v47, %v1162_v60  ;;  %v4439_v12 = vpack.c.bf16 %v1168_v1, %v1164_v0  ;;  %v4313_v18 = vpack.c.bf16 %v1165_v8, %v1161_v21  ;;  %v1182_v26 = vld [vmem:[%s9950_s6 + $0x528] sm:$0xff]  ;;  %v1177_v20 = vld [vmem:[%s9950_s6 + $0x500] sm:$0xff]  ;;  %v1187_v60 = vld [vmem:[%s9950_s6 + $0x550] sm:$0xff] }
 0x245   :  { %v730_v23 = vadd.f32 %v728_v28, %v718_v13  ;;  %v729_v59 = vadd.f32 %v728_v28, %v717_v29  ;;  %v734_v37 = vadd.f32 %v728_v28, %v722_v17  ;;  %v733_v40 = vadd.f32 %v728_v28, %v721_v19  ;;  %v1172_v13 = vld [vmem:[%s9950_s6 + $0x4d8] sm:$0xff]  ;;  %v1169_v19 = vld [vmem:[%s9950_s6 + $0x4c0] sm:$0xff]  ;;  %v1191_v47 = vld [vmem:[%s9950_s6 + $0x570] sm:$0xff] }
 0x246   :  { %v6500_v30 = vadd.f32 %v728_v28, %v719_v35  ;;  %v6502_v31 = vadd.f32 %v728_v28, %v724_v24  ;;  %v6504_v42 = vadd.f32 %v728_v28, %v723_v63  ;;  %v732_v41 = vadd.f32 %v728_v28, %v720_v62  ;;  %v1174_v28 = vld [vmem:[%s9950_s6 + $0x4e8] sm:$0xff]  ;;  %v1176_v29 = vld [vmem:[%s9950_s6 + $0x4f8] sm:$0xff]  ;;  %v1173_v35 = vld [vmem:[%s9950_s6 + $0x4e0] sm:$0xff] }
 0x247   :  { %vm738_vm11 = vcmp.gt.f32.partialorder %v730_v23, 0.0  ;;  %v746_v2 = vmul.f32 0.2, %v730_v23  ;;  %vm737_vm12 = vcmp.gt.f32.partialorder %v729_v59, 0.0  ;;  %v745_v34 = vmul.f32 0.2, %v729_v59 }
 0x248   :  { %v750_v39 = vmul.f32 0.2, %v734_v37  ;;  %vm742_vm13 = vcmp.gt.f32.partialorder %v734_v37, 0.0  ;;  %v749_v58 = vmul.f32 0.2, %v733_v40  ;;  %vm741_vm14 = vcmp.gt.f32.partialorder %v733_v40, 0.0 }
 0x249   :  { %v6509_v50 = vsel %vm738_vm11, %v730_v23, %v746_v2  ;;  %v6511_v46 = vsel %vm737_vm12, %v729_v59, %v745_v34  ;;  %v748_v7 = vmul.f32 0.2, %v732_v41  ;;  %vm740_vm15 = vcmp.gt.f32.partialorder %v732_v41, 0.0  ;;  %v1171_v23 = vld [vmem:[%s9950_s6 + $0x4d0] sm:$0xff]  ;;  %v1181_v27 = vld [vmem:[%s9950_s6 + $0x520] sm:$0xff]  ;;  %v1194_v0 = vld [vmem:[%s9950_s6 + $0x588] sm:$0xff] }
 0x24a   :  { %1337 = vmatprep.mubr.f32.mxu0 %v6509_v50  ;;  %1491 = vmatprep.mubr.f32.mxu1 %v6509_v50  ;;  %v6539_v5 = vsel %vm742_vm13, %v734_v37, %v750_v39  ;;  %v6559_v61 = vsel %vm741_vm14, %v733_v40, %v749_v58  ;;  %v4315_v24 = vpack.c.bf16 %v1174_v28, %v1170_v11  ;;  %v1175_v59 = vld [vmem:[%s9950_s6 + $0x4f0] sm:$0xff]  ;;  %v1180_v37 = vld [vmem:[%s9950_s6 + $0x518] sm:$0xff]  ;;  %v1190_v39 = vld [vmem:[%s9950_s6 + $0x568] sm:$0xff]  ;;  %vm739_vm0 = vcmp.gt.f32.partialorder %v6500_v30, 0.0 }
 0x24b   :  { %1338 = vmatmul.mubr.f32.vlgmr.msra.gmra.mrb[8].mxu0 %v6511_v46  ;;  %1492 = vmatmul.mubr.f32.vlgmr.msra.gmra.mrb[8].mxu1 %v6511_v46  ;;  %v6573_v17 = vsel %vm740_vm15, %v732_v41, %v748_v7  ;;  %v4443_v63 = vpack.c.bf16 %v1176_v29, %v1172_v13  ;;  %v4317_v62 = vpack.c.bf16 %v1173_v35, %v1169_v19  ;;  %v1179_v34 = vld [vmem:[%s9950_s6 + $0x510] sm:$0xff]  ;;  %v1192_v41 = vld [vmem:[%s9950_s6 + $0x578] sm:$0xff]  ;;  %v1198_v1 = vld [vmem:[%s9950_s6 + $0x5a8] sm:$0xff]  ;;  %vm744_vm2 = vcmp.gt.f32.partialorder %v6502_v31, 0.0 }
 0x24c   :  { %4306 = vmatpush1.bf16.msra.mxu0 %v4305_v36  ;;  %4434 = vmatpush1.bf16.msra.mxu1 %v4433_v38  ;;  %v4445_v15 = vpack.c.bf16 %v1175_v59, %v1171_v23  ;;  %v4319_v40 = vpack.c.bf16 %v1182_v26, %v1178_v16  ;;  %v4447_v2 = vpack.c.bf16 %v1184_v9, %v1180_v37  ;;  %v1183_v36 = vld [vmem:[%s9950_s6 + $0x530] sm:$0xff]  ;;  %v1186_v38 = vld [vmem:[%s9950_s6 + $0x548] sm:$0xff]  ;;  %v1193_v8 = vld [vmem:[%s9950_s6 + $0x580] sm:$0xff]  ;;  %vm743_vm3 = vcmp.gt.f32.partialorder %v6504_v42, 0.0 }
 0x24d   :  { %1343 = vmatprep.mubr.f32.mxu0 %v6539_v5  ;;  %1497 = vmatprep.mubr.f32.mxu1 %v6539_v5  ;;  %v4321_v53 = vpack.c.bf16 %v1181_v27, %v1177_v20  ;;  %v4449_v54 = vpack.c.bf16 %v1183_v36, %v1179_v34  ;;  %v4451_v58 = vpack.c.bf16 %v1192_v41, %v1188_v45  ;;  %v1202_v28 = vld [vmem:[%s9950_s6 + $0x5c8] sm:$0xff]  ;;  %v1204_v29 = vld [vmem:[%s9950_s6 + $0x5d8] sm:$0xff]  ;;  %v1201_v35 = vld [vmem:[%s9950_s6 + $0x5c0] sm:$0xff] }
 0x24e   :  { %4308 = vmatprep.subr.bf16.mxu0 %v4307_v56  ;;  %4436 = vmatprep.subr.bf16.mxu1 %v4435_v57  ;;  %v1189_v56 = vld [vmem:[%s9950_s6 + $0x560] sm:$0xff]  ;;  %v4323_v57 = vpack.c.bf16 %v1190_v39, %v1186_v38  ;;  %v4453_v21 = vpack.c.bf16 %v1191_v47, %v1187_v60  ;;  %v4327_v10 = vpack.c.bf16 %v1198_v1, %v1194_v0  ;;  %v1206_v13 = vld [vmem:[%s9950_s6 + $0x5e8] sm:$0xff]  ;;  %v1203_v59 = vld [vmem:[%s9950_s6 + $0x5d0] sm:$0xff] }
 0x24f   :  { %1344 = vmatmul.mubr.f32.gmra.mrb[10].mxu0 %v6559_v61  ;;  %1498 = vmatmul.mubr.f32.gmra.mrb[10].mxu1 %v6559_v61  ;;  %v4325_v7 = vpack.c.bf16 %v1189_v56, %v1185_v55  ;;  %v1207_v16 = vld [vmem:[%s9950_s6 + $0x5f0] sm:$0xff]  ;;  %v1210_v26 = vld [vmem:[%s9950_s6 + $0x608] sm:$0xff]  ;;  %v1212_v9 = vld [vmem:[%s9950_s6 + $0x618] sm:$0xff] }
 0x250   :  { %4310 = vmatpush1.bf16.msra.mxu0 %v4309_v6  ;;  %4438 = vmatpush1.bf16.msra.mxu1 %v4437_v4  ;;  %v1196_v6 = vld [vmem:[%s9950_s6 + $0x598] sm:$0xff]  ;;  %v1214_v37 = vld [vmem:[%s9950_s6 + $0x628] sm:$0xff]  ;;  %v4461_v20 = vpack.c.bf16 %v1207_v16, %v1203_v59  ;;  %v1209_v27 = vld [vmem:[%s9950_s6 + $0x600] sm:$0xff] }
 0x251   :  { %1414 = vmatprep.mubr.f32.mxu0 %v6573_v17  ;;  %1568 = vmatprep.mubr.f32.mxu1 %v6573_v17  ;;  %v1200_v4 = vld [vmem:[%s9950_s6 + $0x5b8] sm:$0xff]  ;;  %v1211_v36 = vld [vmem:[%s9950_s6 + $0x610] sm:$0xff]  ;;  %v1218_v39 = vld [vmem:[%s9950_s6 + $0x648] sm:$0xff] }
 0x252   :  { %4312 = vmatprep.subr.bf16.mxu0 %v4311_v22  ;;  %4440 = vmatprep.subr.bf16.mxu1 %v4439_v12  ;;  %v4455_v11 = vpack.c.bf16 %v1200_v4, %v1196_v6  ;;  %v1195_v22 = vld [vmem:[%s9950_s6 + $0x590] sm:$0xff]  ;;  %v1222_v45 = vld [vmem:[%s9950_s6 + $0x668] sm:$0xff]  ;;  %v1220_v41 = vld [vmem:[%s9950_s6 + $0x658] sm:$0xff] }
 0x253   :  { %v1199_v12 = vld [vmem:[%s9950_s6 + $0x5b0] sm:$0xff]  ;;  %v1217_v56 = vld [vmem:[%s9950_s6 + $0x640] sm:$0xff]  ;;  %v1226_v1 = vld [vmem:[%s9950_s6 + $0x688] sm:$0xff] }
 0x254   :  { %4314 = vmatpush1.bf16.msra.mxu0 %v4313_v18  ;;  %4442 = vmatpush1.bf16.msra.mxu1 %v4441_v33  ;;  %v1208_v18 = vld [vmem:[%s9950_s6 + $0x5f8] sm:$0xff]  ;;  %v4329_v33 = vpack.c.bf16 %v1197_v14, %v1193_v8  ;;  %v4457_v19 = vpack.c.bf16 %v1199_v12, %v1195_v22  ;;  %v1215_v38 = vld [vmem:[%s9950_s6 + $0x630] sm:$0xff]  ;;  %v1230_v6 = vld [vmem:[%s9950_s6 + $0x6a8] sm:$0xff] }
 0x255   :  { %4316 = vmatprep.subr.bf16.mxu0 %v4315_v24  ;;  %4444 = vmatprep.subr.bf16.mxu1 %v4443_v63  ;;  %v1205_v24 = vld [vmem:[%s9950_s6 + $0x5e0] sm:$0xff]  ;;  %v4331_v63 = vpack.c.bf16 %v1206_v13, %v1202_v28  ;;  %v4459_v23 = vpack.c.bf16 %v1208_v18, %v1204_v29  ;;  %v4465_v55 = vpack.c.bf16 %v1215_v38, %v1211_v36  ;;  %v1219_v47 = vld [vmem:[%s9950_s6 + $0x650] sm:$0xff]  ;;  %v1228_v4 = vld [vmem:[%s9950_s6 + $0x698] sm:$0xff] }
 0x256   :  { %v1223_v0 = vld [vmem:[%s9950_s6 + $0x670] sm:$0xff]  ;;  %v1225_v14 = vld [vmem:[%s9950_s6 + $0x680] sm:$0xff]  ;;  %v1234_v13 = vld [vmem:[%s9950_s6 + $0x6c8] sm:$0xff] }
 0x257   :  { %v4469_v8 = vpack.c.bf16 %v1223_v0, %v1219_v47  ;;  %v1227_v12 = vld [vmem:[%s9950_s6 + $0x690] sm:$0xff]  ;;  %v1238_v29 = vld [vmem:[%s9950_s6 + $0x6e8] sm:$0xff]  ;;  %v1236_v18 = vld [vmem:[%s9950_s6 + $0x6d8] sm:$0xff] }
 0x258   :  { %4318 = vmatpush1.bf16.msra.mxu0 %v4317_v62  ;;  %4446 = vmatpush1.bf16.msra.mxu1 %v4445_v15  ;;  %v1216_v62 = vld [vmem:[%s9950_s6 + $0x638] sm:$0xff]  ;;  %v4333_v15 = vpack.c.bf16 %v1205_v24, %v1201_v35  ;;  %v1231_v28 = vld [vmem:[%s9950_s6 + $0x6b0] sm:$0xff]  ;;  %v1233_v24 = vld [vmem:[%s9950_s6 + $0x6c0] sm:$0xff] }
 0x259   :  { %4320 = vmatprep.subr.bf16.mxu0 %v4319_v40  ;;  %4448 = vmatprep.subr.bf16.mxu1 %v4447_v2  ;;  %v1213_v40 = vld [vmem:[%s9950_s6 + $0x620] sm:$0xff]  ;;  %v4335_v2 = vpack.c.bf16 %v1214_v37, %v1210_v26  ;;  %v4463_v34 = vpack.c.bf16 %v1216_v62, %v1212_v9  ;;  %v4473_v35 = vpack.c.bf16 %v1231_v28, %v1227_v12  ;;  %v1235_v16 = vld [vmem:[%s9950_s6 + $0x6d0] sm:$0xff]  ;;  %v1242_v37 = vld [vmem:[%s9950_s6 + $0x708] sm:$0xff] }
 0x25a   :  { %v1239_v26 = vld [vmem:[%s9950_s6 + $0x6f0] sm:$0xff]  ;;  %v1246_v9 = vld [vmem:[%s9950_s6 + $0x728] sm:$0xff]  ;;  %v1244_v62 = vld [vmem:[%s9950_s6 + $0x718] sm:$0xff] }
 0x25b   :  { %v1243_v38 = vld [vmem:[%s9950_s6 + $0x710] sm:$0xff] }
 0x25c   :  { %4322 = vmatpush1.bf16.msra.mxu0 %v4321_v53  ;;  %4450 = vmatpush1.bf16.msra.mxu1 %v4449_v54  ;;  %v1224_v53 = vld [vmem:[%s9950_s6 + $0x678] sm:$0xff]  ;;  %v4337_v54 = vpack.c.bf16 %v1213_v40, %v1209_v27  ;;  %v4477_v27 = vpack.c.bf16 %v1239_v26, %v1235_v16  ;;  %v1241_v40 = vld [vmem:[%s9950_s6 + $0x700] sm:$0xff]  ;;  %v1251_v0 = vld [vmem:[%s9950_s6 + $0x750] sm:$0xff] }
 0x25d   :  { %4324 = vmatprep.subr.bf16.mxu0 %v4323_v57  ;;  %4452 = vmatprep.subr.bf16.mxu1 %v4451_v58  ;;  %v1221_v57 = vld [vmem:[%s9950_s6 + $0x660] sm:$0xff]  ;;  %v4339_v58 = vpack.c.bf16 %v1222_v45, %v1218_v39  ;;  %v4467_v60 = vpack.c.bf16 %v1224_v53, %v1220_v41  ;;  %v1247_v39 = vld [vmem:[%s9950_s6 + $0x730] sm:$0xff]  ;;  %v1250_v45 = vld [vmem:[%s9950_s6 + $0x748] sm:$0xff] }
 0x25e   :  { %v1254_v41 = vld [vmem:[%s9950_s6 + $0x768] sm:$0xff]  ;;  %v1252_v53 = vld [vmem:[%s9950_s6 + $0x758] sm:$0xff]  ;;  %v1259_v28 = vld [vmem:[%s9950_s6 + $0x790] sm:$0xff] }
 0x25f   :  { %v1267_v26 = vld [vmem:[%s9950_s6 + $0x7d0] sm:$0xff] }
 0x260   :  { %4326 = vmatpush1.bf16.msra.mxu0 %v4325_v7  ;;  %4454 = vmatpush1.bf16.msra.mxu1 %v4453_v21  ;;  %v1232_v7 = vld [vmem:[%s9950_s6 + $0x6b8] sm:$0xff]  ;;  %v4341_v21 = vpack.c.bf16 %v1221_v57, %v1217_v56  ;;  %v4481_v56 = vpack.c.bf16 %v1247_v39, %v1243_v38  ;;  %v1249_v57 = vld [vmem:[%s9950_s6 + $0x740] sm:$0xff]  ;;  %v747_v39 = vmul.f32 0.2, %v6500_v30 }
 0x261   :  { %4328 = vmatprep.subr.bf16.mxu0 %v4327_v10  ;;  %4456 = vmatprep.subr.bf16.mxu1 %v4455_v11  ;;  %v1229_v10 = vld [vmem:[%s9950_s6 + $0x6a0] sm:$0xff]  ;;  %v4343_v11 = vpack.c.bf16 %v1230_v6, %v1226_v1  ;;  %v4471_v22 = vpack.c.bf16 %v1232_v7, %v1228_v4  ;;  %v1255_v1 = vld [vmem:[%s9950_s6 + $0x770] sm:$0xff]  ;;  %v1258_v6 = vld [vmem:[%s9950_s6 + $0x788] sm:$0xff] }
 0x262   :  { %v1262_v4 = vld [vmem:[%s9950_s6 + $0x7a8] sm:$0xff]  ;;  %v1260_v7 = vld [vmem:[%s9950_s6 + $0x798] sm:$0xff]  ;;  %v765_v38 = vld [vmem:[%s9953_s5 + $0x20] sm:$0xff] }
 0x264   :  { %4330 = vmatpush1.bf16.msra.mxu0 %v4329_v33  ;;  %4458 = vmatpush1.bf16.msra.mxu1 %v4457_v19  ;;  %v1240_v33 = vld [vmem:[%s9950_s6 + $0x6f8] sm:$0xff]  ;;  %v4345_v19 = vpack.c.bf16 %v1229_v10, %v1225_v14  ;;  %v4485_v14 = vpack.c.bf16 %v1255_v1, %v1251_v0  ;;  %v1257_v10 = vld [vmem:[%s9950_s6 + $0x780] sm:$0xff]  ;;  %v6924_v1 = vsel %vm739_vm0, %v6500_v30, %v747_v39 }
 0x265   :  { %4332 = vmatprep.subr.bf16.mxu0 %v4331_v63  ;;  %4460 = vmatprep.subr.bf16.mxu1 %v4459_v23  ;;  %v1237_v63 = vld [vmem:[%s9950_s6 + $0x6e0] sm:$0xff]  ;;  %v4347_v23 = vpack.c.bf16 %v1238_v29, %v1234_v13  ;;  %v4475_v59 = vpack.c.bf16 %v1240_v33, %v1236_v18  ;;  %v1263_v13 = vld [vmem:[%s9950_s6 + $0x7b0] sm:$0xff]  ;;  %v1266_v29 = vld [vmem:[%s9950_s6 + $0x7c8] sm:$0xff] }
 0x266   :  { %v1270_v18 = vld [vmem:[%s9950_s6 + $0x7e8] sm:$0xff]  ;;  %v1268_v33 = vld [vmem:[%s9950_s6 + $0x7d8] sm:$0xff]  ;;  %v773_v0 = vld [vmem:[%s9953_s5 + $0x60] sm:$0xff] }
 0x267   :  { %v797_v39 = vld [vmem:[%s9953_s5 + $0x120] sm:$0xff] }
 0x268   :  { %4334 = vmatpush1.bf16.msra.mxu0 %v4333_v15  ;;  %4462 = vmatpush1.bf16.msra.mxu1 %v4461_v20  ;;  %v1248_v15 = vld [vmem:[%s9950_s6 + $0x738] sm:$0xff]  ;;  %v4349_v20 = vpack.c.bf16 %v1237_v63, %v1233_v24  ;;  %v4489_v24 = vpack.c.bf16 %v1263_v13, %v1259_v28  ;;  %v1265_v63 = vld [vmem:[%s9950_s6 + $0x7c0] sm:$0xff] }
 0x269   :  { %4336 = vmatprep.subr.bf16.mxu0 %v4335_v2  ;;  %4464 = vmatprep.subr.bf16.mxu1 %v4463_v34  ;;  %v1245_v2 = vld [vmem:[%s9950_s6 + $0x720] sm:$0xff]  ;;  %v4351_v34 = vpack.c.bf16 %v1246_v9, %v1242_v37  ;;  %v4479_v36 = vpack.c.bf16 %v1248_v15, %v1244_v62  ;;  %v1271_v37 = vld [vmem:[%s9950_s6 + $0x7f0] sm:$0xff]  ;;  %v762_v9 = vld [vmem:[%s9953_s5 + $0x8] sm:$0xff] }
 0x26a   :  { %v766_v62 = vld [vmem:[%s9953_s5 + $0x28] sm:$0xff]  ;;  %v764_v15 = vld [vmem:[%s9953_s5 + $0x18] sm:$0xff]  ;;  %v777_v28 = vld [vmem:[%s9953_s5 + $0x80] sm:$0xff] }
 0x26b   :  { %v781_v13 = vld [vmem:[%s9953_s5 + $0xa0] sm:$0xff] }
 0x26c   :  { %4338 = vmatpush1.bf16.msra.mxu0 %v4337_v54  ;;  %4466 = vmatpush1.bf16.msra.mxu1 %v4465_v55  ;;  %v1256_v54 = vld [vmem:[%s9950_s6 + $0x778] sm:$0xff]  ;;  %v4353_v55 = vpack.c.bf16 %v1245_v2, %v1241_v40  ;;  %v4493_v40 = vpack.c.bf16 %v1271_v37, %v1267_v26  ;;  %v4495_v2 = vpack.c.bf16 %v766_v62, %v762_v9  ;;  %v785_v26 = vld [vmem:[%s9953_s5 + $0xc0] sm:$0xff] }
 0x26d   :  { %4340 = vmatprep.subr.bf16.mxu0 %v4339_v58  ;;  %4468 = vmatprep.subr.bf16.mxu1 %v4467_v60  ;;  %v1253_v58 = vld [vmem:[%s9950_s6 + $0x760] sm:$0xff]  ;;  %v4355_v60 = vpack.c.bf16 %v1254_v41, %v1250_v45  ;;  %v4483_v47 = vpack.c.bf16 %v1256_v54, %v1252_v53  ;;  %v763_v45 = vld [vmem:[%s9953_s5 + $0x10] sm:$0xff]  ;;  %v770_v53 = vld [vmem:[%s9953_s5 + $0x48] sm:$0xff]  ;;  %v752_v54 = vmul.f32 0.2, %v6502_v31 }
 0x26e   :  { %v767_v41 = vld [vmem:[%s9953_s5 + $0x30] sm:$0xff]  ;;  %v789_v37 = vld [vmem:[%s9953_s5 + $0xe0] sm:$0xff] }
 0x26f   :  { %v6941_v30 = vsel %vm744_vm2, %v6502_v31, %v752_v54  ;;  %v799_v54 = vld [vmem:[%s9953_s5 + $0x130] sm:$0xff] }
 0x270   :  { %4342 = vmatpush1.bf16.msra.mxu0 %v4341_v21  ;;  %4470 = vmatpush1.bf16.msra.mxu1 %v4469_v8  ;;  %v1264_v21 = vld [vmem:[%s9950_s6 + $0x7b8] sm:$0xff]  ;;  %v4357_v8 = vpack.c.bf16 %v1253_v58, %v1249_v57 }
 0x271   :  { %4344 = vmatprep.subr.bf16.mxu0 %v4343_v11  ;;  %4472 = vmatprep.subr.bf16.mxu1 %v4471_v22  ;;  %v1261_v11 = vld [vmem:[%s9950_s6 + $0x7a0] sm:$0xff]  ;;  %v4359_v22 = vpack.c.bf16 %v1262_v4, %v1258_v6  ;;  %v4487_v12 = vpack.c.bf16 %v1264_v21, %v1260_v7  ;;  %v776_v57 = vld [vmem:[%s9953_s5 + $0x78] sm:$0xff]  ;;  %v751_v6 = vmul.f32 0.2, %v6504_v42  ;;  %v771_v21 = vld [vmem:[%s9953_s5 + $0x50] sm:$0xff] }
 0x274   :  { %4346 = vmatpush1.bf16.msra.mxu0 %v4345_v19  ;;  %4474 = vmatpush1.bf16.msra.mxu1 %v4473_v35  ;;  %v1272_v19 = vld [vmem:[%s9950_s6 + $0x7f8] sm:$0xff]  ;;  %v4361_v35 = vpack.c.bf16 %v1261_v11, %v1257_v10  ;;  %v782_v10 = vld [vmem:[%s9953_s5 + $0xa8] sm:$0xff] }
 0x275   :  { %4348 = vmatprep.subr.bf16.mxu0 %v4347_v23  ;;  %4476 = vmatprep.subr.bf16.mxu1 %v4475_v59  ;;  %v1269_v23 = vld [vmem:[%s9950_s6 + $0x7e0] sm:$0xff]  ;;  %v4363_v59 = vpack.c.bf16 %v1270_v18, %v1266_v29  ;;  %v4491_v16 = vpack.c.bf16 %v1272_v19, %v1268_v33  ;;  %v780_v11 = vld [vmem:[%s9953_s5 + $0x98] sm:$0xff]  ;;  %v6962_v29 = vsel %vm743_vm3, %v6504_v42, %v751_v6  ;;  %v779_v19 = vld [vmem:[%s9953_s5 + $0x90] sm:$0xff] }
 0x276   :  { %v790_v42 = vld [vmem:[%s9953_s5 + $0xe8] sm:$0xff]  ;;  %v805_v6 = vld [vmem:[%s9953_s5 + $0x160] sm:$0xff] }
 0x278   :  { %4350 = vmatpush1.bf16.msra.mxu0 %v4349_v20  ;;  %4478 = vmatpush1.bf16.msra.mxu1 %v4477_v27  ;;  %v768_v20 = vld [vmem:[%s9953_s5 + $0x38] sm:$0xff]  ;;  %v4365_v27 = vpack.c.bf16 %v1269_v23, %v1265_v63 }
 0x279   :  { %4352 = vmatprep.subr.bf16.mxu0 %v4351_v34  ;;  %4480 = vmatprep.subr.bf16.mxu1 %v4479_v36  ;;  %v4623_v34 = vpack.c.bf16 %v768_v20, %v764_v15  ;;  %v761_v36 = vld [vmem:[%s9953_s5] sm:$0xff]  ;;  %v788_v63 = vld [vmem:[%s9953_s5 + $0xd8] sm:$0xff]  ;;  %v791_v15 = vld [vmem:[%s9953_s5 + $0xf0] sm:$0xff] }
 0x27a   :  { %v4497_v58 = vpack.c.bf16 %v765_v38, %v761_v36  ;;  %v792_v23 = vld [vmem:[%s9953_s5 + $0xf8] sm:$0xff]  ;;  %v794_v20 = vld [vmem:[%s9953_s5 + $0x108] sm:$0xff]  ;;  %v793_v38 = vld [vmem:[%s9953_s5 + $0x100] sm:$0xff] }
 0x27b   :  { %v4635_v62 = vpack.c.bf16 %v792_v23, %v788_v63  ;;  %v820_v63 = vld [vmem:[%s9953_s5 + $0x1d8] sm:$0xff] }
 0x27c   :  { %4354 = vmatpush1.bf16.msra.mxu0 %v4353_v55  ;;  %4482 = vmatpush1.bf16.msra.mxu1 %v4481_v56  ;;  %v774_v55 = vld [vmem:[%s9953_s5 + $0x68] sm:$0xff]  ;;  %v772_v56 = vld [vmem:[%s9953_s5 + $0x58] sm:$0xff] }
 0x27d   :  { %4356 = vmatprep.subr.bf16.mxu0 %v4355_v60  ;;  %4484 = vmatprep.subr.bf16.mxu1 %v4483_v47  ;;  %v4625_v60 = vpack.c.bf16 %v767_v41, %v763_v45  ;;  %v769_v47 = vld [vmem:[%s9953_s5 + $0x40] sm:$0xff]  ;;  %v4499_v4 = vpack.c.bf16 %v774_v55, %v770_v53  ;;  %v4627_v7 = vpack.c.bf16 %v776_v57, %v772_v56  ;;  %v795_v53 = vld [vmem:[%s9953_s5 + $0x110] sm:$0xff]  ;;  %v802_v55 = vld [vmem:[%s9953_s5 + $0x148] sm:$0xff] }
 0x27e   :  { %v4501_v31 = vpack.c.bf16 %v773_v0, %v769_v47  ;;  %v806_v56 = vld [vmem:[%s9953_s5 + $0x168] sm:$0xff]  ;;  %v804_v57 = vld [vmem:[%s9953_s5 + $0x158] sm:$0xff]  ;;  %v4641_v47 = vpack.c.bf16 %v799_v54, %v795_v53  ;;  %v801_v0 = vld [vmem:[%s9953_s5 + $0x140] sm:$0xff] }
 0x27f   :  { %v824_v23 = vld [vmem:[%s9953_s5 + $0x1f8] sm:$0xff]  ;;  %v827_v53 = vld [vmem:[%s9953_s5 + $0x210] sm:$0xff] }
 0x280   :  { %4358 = vmatpush1.bf16.msra.mxu0 %v4357_v8  ;;  %4486 = vmatpush1.bf16.msra.mxu1 %v4485_v14  ;;  %v775_v8 = vld [vmem:[%s9953_s5 + $0x70] sm:$0xff]  ;;  %v778_v14 = vld [vmem:[%s9953_s5 + $0x88] sm:$0xff] }
 0x281   :  { %4360 = vmatprep.subr.bf16.mxu0 %v4359_v22  ;;  %4488 = vmatprep.subr.bf16.mxu1 %v4487_v12  ;;  %v784_v22 = vld [vmem:[%s9953_s5 + $0xb8] sm:$0xff]  ;;  %v4629_v12 = vpack.c.bf16 %v775_v8, %v771_v21  ;;  %v4503_v18 = vpack.c.bf16 %v782_v10, %v778_v14  ;;  %v803_v21 = vld [vmem:[%s9953_s5 + $0x150] sm:$0xff]  ;;  %v810_v14 = vld [vmem:[%s9953_s5 + $0x188] sm:$0xff] }
 0x282   :  { %v4631_v33 = vpack.c.bf16 %v784_v22, %v780_v11  ;;  %v807_v8 = vld [vmem:[%s9953_s5 + $0x170] sm:$0xff]  ;;  %v814_v10 = vld [vmem:[%s9953_s5 + $0x1a8] sm:$0xff]  ;;  %v812_v11 = vld [vmem:[%s9953_s5 + $0x198] sm:$0xff] }
 0x283   :  { %v816_v22 = vld [vmem:[%s9953_s5 + $0x1b8] sm:$0xff]  ;;  %v831_v54 = vld [vmem:[%s9953_s5 + $0x230] sm:$0xff] }
 0x284   :  { %4362 = vmatpush1.bf16.msra.mxu0 %v4361_v35  ;;  %4490 = vmatpush1.bf16.msra.mxu1 %v4489_v24  ;;  %v783_v35 = vld [vmem:[%s9953_s5 + $0xb0] sm:$0xff]  ;;  %v786_v24 = vld [vmem:[%s9953_s5 + $0xc8] sm:$0xff] }
 0x285   :  { %4364 = vmatprep.subr.bf16.mxu0 %v4363_v59  ;;  %4492 = vmatprep.subr.bf16.mxu1 %v4491_v16  ;;  %v4505_v59 = vpack.c.bf16 %v781_v13, %v777_v28  ;;  %v4633_v16 = vpack.c.bf16 %v783_v35, %v779_v19  ;;  %v4507_v9 = vpack.c.bf16 %v790_v42, %v786_v24  ;;  %v809_v28 = vld [vmem:[%s9953_s5 + $0x180] sm:$0xff]  ;;  %v811_v19 = vld [vmem:[%s9953_s5 + $0x190] sm:$0xff]  ;;  %v818_v24 = vld [vmem:[%s9953_s5 + $0x1c8] sm:$0xff] }
 0x286   :  { %v813_v13 = vld [vmem:[%s9953_s5 + $0x1a0] sm:$0xff]  ;;  %v815_v35 = vld [vmem:[%s9953_s5 + $0x1b0] sm:$0xff]  ;;  %v822_v42 = vld [vmem:[%s9953_s5 + $0x1e8] sm:$0xff] }
 0x288   :  { %4366 = vmatpush1.bf16.msra.mxu0 %v4365_v27  ;;  %4494 = vmatpush1.bf16.msra.mxu1 %v4493_v40  ;;  %v798_v27 = vld [vmem:[%s9953_s5 + $0x128] sm:$0xff]  ;;  %v796_v40 = vld [vmem:[%s9953_s5 + $0x118] sm:$0xff] }
 0x289   :  { %4496 = vmatprep.subr.bf16.mxu0 %v4495_v2  ;;  %4624 = vmatprep.subr.bf16.mxu1 %v4623_v34  ;;  %v800_v2 = vld [vmem:[%s9953_s5 + $0x138] sm:$0xff]  ;;  %v4509_v34 = vpack.c.bf16 %v789_v37, %v785_v26  ;;  %v4511_v45 = vpack.c.bf16 %v798_v27, %v794_v20  ;;  %v817_v26 = vld [vmem:[%s9953_s5 + $0x1c0] sm:$0xff]  ;;  %v826_v20 = vld [vmem:[%s9953_s5 + $0x208] sm:$0xff] }
 0x28a   :  { %v4639_v41 = vpack.c.bf16 %v800_v2, %v796_v40  ;;  %v821_v37 = vld [vmem:[%s9953_s5 + $0x1e0] sm:$0xff]  ;;  %v830_v27 = vld [vmem:[%s9953_s5 + $0x228] sm:$0xff]  ;;  %v828_v40 = vld [vmem:[%s9953_s5 + $0x218] sm:$0xff] }
 0x28b   :  { %1415 = vmatmul.mubr.f32.vlgmr.msra.gmra.mrb[8].mxu0 %v6924_v1  ;;  %1569 = vmatmul.mubr.f32.vlgmr.msra.gmra.mrb[8].mxu1 %v6924_v1  ;;  %v832_v2 = vld [vmem:[%s9953_s5 + $0x238] sm:$0xff] }
 0x28c   :  { %1420 = vmatprep.mubr.f32.mxu0 %v6941_v30  ;;  %1574 = vmatprep.mubr.f32.mxu1 %v6941_v30 }
 0x28d   :  { %4498 = vmatpush1.bf16.msra.mxu0 %v4497_v58  ;;  %4626 = vmatpush1.bf16.msra.mxu1 %v4625_v60  ;;  %v808_v58 = vld [vmem:[%s9953_s5 + $0x178] sm:$0xff]  ;;  %v4513_v60 = vpack.c.bf16 %v797_v39, %v793_v38  ;;  %v825_v38 = vld [vmem:[%s9953_s5 + $0x200] sm:$0xff] }
 0x28e   :  { %4500 = vmatprep.subr.bf16.mxu0 %v4499_v4  ;;  %4628 = vmatprep.subr.bf16.mxu1 %v4627_v7  ;;  %v4515_v4 = vpack.c.bf16 %v806_v56, %v802_v55  ;;  %v4643_v7 = vpack.c.bf16 %v808_v58, %v804_v57  ;;  %v829_v39 = vld [vmem:[%s9953_s5 + $0x220] sm:$0xff]  ;;  %v834_v55 = vld [vmem:[%s9953_s5 + $0x248] sm:$0xff]  ;;  %v836_v57 = vld [vmem:[%s9953_s5 + $0x258] sm:$0xff] }
 0x28f   :  { %1421 = vmatmul.mubr.f32.gmra.mrb[10].mxu0 %v6962_v29  ;;  %1575 = vmatmul.mubr.f32.gmra.mrb[10].mxu1 %v6962_v29  ;;  %v838_v56 = vld [vmem:[%s9953_s5 + $0x268] sm:$0xff]  ;;  %v840_v58 = vld [vmem:[%s9953_s5 + $0x278] sm:$0xff] }
 0x290   :  { %1677 = vmatprep.mubr.f32.mxu0 %v6509_v50  ;;  %1831 = vmatprep.mubr.f32.mxu1 %v6509_v50  ;;  %v787_v50 = vld [vmem:[%s9953_s5 + $0xd0] sm:$0xff] }
 0x291   :  { %4502 = vmatpush1.bf16.msra.mxu0 %v4501_v31  ;;  %4630 = vmatpush1.bf16.msra.mxu1 %v4629_v12  ;;  %v4637_v36 = vpack.c.bf16 %v791_v15, %v787_v50  ;;  %v4517_v31 = vpack.c.bf16 %v805_v6, %v801_v0  ;;  %v4645_v12 = vpack.c.bf16 %v807_v8, %v803_v21  ;;  %v819_v50 = vld [vmem:[%s9953_s5 + $0x1d0] sm:$0xff]  ;;  %v833_v0 = vld [vmem:[%s9953_s5 + $0x240] sm:$0xff] }
 0x292   :  { %4504 = vmatprep.subr.bf16.mxu0 %v4503_v18  ;;  %4632 = vmatprep.subr.bf16.mxu1 %v4631_v33  ;;  %v4519_v18 = vpack.c.bf16 %v814_v10, %v810_v14  ;;  %v4647_v33 = vpack.c.bf16 %v816_v22, %v812_v11  ;;  %v823_v15 = vld [vmem:[%s9953_s5 + $0x1f0] sm:$0xff]  ;;  %v837_v6 = vld [vmem:[%s9953_s5 + $0x260] sm:$0xff]  ;;  %v842_v14 = vld [vmem:[%s9953_s5 + $0x288] sm:$0xff] }
 0x293   :  { %v835_v21 = vld [vmem:[%s9953_s5 + $0x250] sm:$0xff]  ;;  %v846_v10 = vld [vmem:[%s9953_s5 + $0x2a8] sm:$0xff]  ;;  %v844_v11 = vld [vmem:[%s9953_s5 + $0x298] sm:$0xff] }
 0x294   :  { %v839_v8 = vld [vmem:[%s9953_s5 + $0x270] sm:$0xff]  ;;  %v848_v22 = vld [vmem:[%s9953_s5 + $0x2b8] sm:$0xff] }
 0x295   :  { %4506 = vmatpush1.bf16.msra.mxu0 %v4505_v59  ;;  %4634 = vmatpush1.bf16.msra.mxu1 %v4633_v16  ;;  %v4521_v59 = vpack.c.bf16 %v813_v13, %v809_v28  ;;  %v4649_v16 = vpack.c.bf16 %v815_v35, %v811_v19  ;;  %v841_v28 = vld [vmem:[%s9953_s5 + $0x280] sm:$0xff]  ;;  %v843_v19 = vld [vmem:[%s9953_s5 + $0x290] sm:$0xff] }
 0x296   :  { %4508 = vmatprep.subr.bf16.mxu0 %v4507_v9  ;;  %4636 = vmatprep.subr.bf16.mxu1 %v4635_v62  ;;  %v4523_v9 = vpack.c.bf16 %v822_v42, %v818_v24  ;;  %v4651_v62 = vpack.c.bf16 %v824_v23, %v820_v63  ;;  %v845_v13 = vld [vmem:[%s9953_s5 + $0x2a0] sm:$0xff]  ;;  %v847_v35 = vld [vmem:[%s9953_s5 + $0x2b0] sm:$0xff]  ;;  %v850_v24 = vld [vmem:[%s9953_s5 + $0x2c8] sm:$0xff] }
 0x297   :  { %v854_v42 = vld [vmem:[%s9953_s5 + $0x2e8] sm:$0xff]  ;;  %v852_v63 = vld [vmem:[%s9953_s5 + $0x2d8] sm:$0xff] }
 0x298   :  { %v856_v23 = vld [vmem:[%s9953_s5 + $0x2f8] sm:$0xff] }
 0x299   :  { %4510 = vmatpush1.bf16.msra.mxu0 %v4509_v34  ;;  %4638 = vmatpush1.bf16.msra.mxu1 %v4637_v36  ;;  %v4525_v34 = vpack.c.bf16 %v821_v37, %v817_v26  ;;  %v4653_v36 = vpack.c.bf16 %v823_v15, %v819_v50  ;;  %v849_v26 = vld [vmem:[%s9953_s5 + $0x2c0] sm:$0xff]  ;;  %v851_v50 = vld [vmem:[%s9953_s5 + $0x2d0] sm:$0xff] }
 0x29a   :  { %4512 = vmatprep.subr.bf16.mxu0 %v4511_v45  ;;  %4640 = vmatprep.subr.bf16.mxu1 %v4639_v41  ;;  %v4527_v45 = vpack.c.bf16 %v830_v27, %v826_v20  ;;  %v4655_v41 = vpack.c.bf16 %v832_v2, %v828_v40  ;;  %v853_v37 = vld [vmem:[%s9953_s5 + $0x2e0] sm:$0xff]  ;;  %v855_v15 = vld [vmem:[%s9953_s5 + $0x2f0] sm:$0xff]  ;;  %v858_v20 = vld [vmem:[%s9953_s5 + $0x308] sm:$0xff] }
 0x29b   :  { %v862_v27 = vld [vmem:[%s9953_s5 + $0x328] sm:$0xff]  ;;  %v860_v40 = vld [vmem:[%s9953_s5 + $0x318] sm:$0xff] }
 0x29c   :  { %v864_v2 = vld [vmem:[%s9953_s5 + $0x338] sm:$0xff] }
 0x29d   :  { %4514 = vmatpush1.bf16.msra.mxu0 %v4513_v60  ;;  %4642 = vmatpush1.bf16.msra.mxu1 %v4641_v47  ;;  %v4529_v60 = vpack.c.bf16 %v829_v39, %v825_v38  ;;  %v4657_v47 = vpack.c.bf16 %v831_v54, %v827_v53  ;;  %v857_v38 = vld [vmem:[%s9953_s5 + $0x300] sm:$0xff]  ;;  %v859_v53 = vld [vmem:[%s9953_s5 + $0x310] sm:$0xff] }
 0x29e   :  { %4516 = vmatprep.subr.bf16.mxu0 %v4515_v4  ;;  %4644 = vmatprep.subr.bf16.mxu1 %v4643_v7  ;;  %v4531_v4 = vpack.c.bf16 %v838_v56, %v834_v55  ;;  %v4659_v7 = vpack.c.bf16 %v840_v58, %v836_v57  ;;  %v861_v39 = vld [vmem:[%s9953_s5 + $0x320] sm:$0xff]  ;;  %v863_v54 = vld [vmem:[%s9953_s5 + $0x330] sm:$0xff]  ;;  %v866_v55 = vld [vmem:[%s9953_s5 + $0x348] sm:$0xff] }
 0x29f   :  { %v870_v56 = vld [vmem:[%s9953_s5 + $0x368] sm:$0xff]  ;;  %v868_v57 = vld [vmem:[%s9953_s5 + $0x358] sm:$0xff] }
 0x2a0   :  { %v872_v58 = vld [vmem:[%s9953_s5 + $0x378] sm:$0xff] }
 0x2a1   :  { %4518 = vmatpush1.bf16.msra.mxu0 %v4517_v31  ;;  %4646 = vmatpush1.bf16.msra.mxu1 %v4645_v12  ;;  %v4533_v31 = vpack.c.bf16 %v837_v6, %v833_v0  ;;  %v4661_v12 = vpack.c.bf16 %v839_v8, %v835_v21  ;;  %v865_v0 = vld [vmem:[%s9953_s5 + $0x340] sm:$0xff]  ;;  %v867_v21 = vld [vmem:[%s9953_s5 + $0x350] sm:$0xff] }
 0x2a2   :  { %4520 = vmatprep.subr.bf16.mxu0 %v4519_v18  ;;  %4648 = vmatprep.subr.bf16.mxu1 %v4647_v33  ;;  %v4535_v18 = vpack.c.bf16 %v846_v10, %v842_v14  ;;  %v4663_v33 = vpack.c.bf16 %v848_v22, %v844_v11  ;;  %v869_v6 = vld [vmem:[%s9953_s5 + $0x360] sm:$0xff]  ;;  %v871_v8 = vld [vmem:[%s9953_s5 + $0x370] sm:$0xff]  ;;  %v874_v14 = vld [vmem:[%s9953_s5 + $0x388] sm:$0xff] }
 0x2a3   :  { %v878_v10 = vld [vmem:[%s9953_s5 + $0x3a8] sm:$0xff]  ;;  %v876_v11 = vld [vmem:[%s9953_s5 + $0x398] sm:$0xff] }
 0x2a4   :  { %v880_v22 = vld [vmem:[%s9953_s5 + $0x3b8] sm:$0xff] }
 0x2a5   :  { %4522 = vmatpush1.bf16.msra.mxu0 %v4521_v59  ;;  %4650 = vmatpush1.bf16.msra.mxu1 %v4649_v16  ;;  %v4537_v59 = vpack.c.bf16 %v845_v13, %v841_v28  ;;  %v4665_v16 = vpack.c.bf16 %v847_v35, %v843_v19  ;;  %v873_v28 = vld [vmem:[%s9953_s5 + $0x380] sm:$0xff]  ;;  %v875_v19 = vld [vmem:[%s9953_s5 + $0x390] sm:$0xff] }
 0x2a6   :  { %4524 = vmatprep.subr.bf16.mxu0 %v4523_v9  ;;  %4652 = vmatprep.subr.bf16.mxu1 %v4651_v62  ;;  %v4539_v9 = vpack.c.bf16 %v854_v42, %v850_v24  ;;  %v4667_v62 = vpack.c.bf16 %v856_v23, %v852_v63  ;;  %v877_v13 = vld [vmem:[%s9953_s5 + $0x3a0] sm:$0xff]  ;;  %v879_v35 = vld [vmem:[%s9953_s5 + $0x3b0] sm:$0xff]  ;;  %v882_v24 = vld [vmem:[%s9953_s5 + $0x3c8] sm:$0xff] }
 0x2a7   :  { %v886_v42 = vld [vmem:[%s9953_s5 + $0x3e8] sm:$0xff]  ;;  %v884_v63 = vld [vmem:[%s9953_s5 + $0x3d8] sm:$0xff] }
 0x2a8   :  { %v888_v23 = vld [vmem:[%s9953_s5 + $0x3f8] sm:$0xff] }
 0x2a9   :  { %4526 = vmatpush1.bf16.msra.mxu0 %v4525_v34  ;;  %4654 = vmatpush1.bf16.msra.mxu1 %v4653_v36  ;;  %v4541_v34 = vpack.c.bf16 %v853_v37, %v849_v26  ;;  %v4669_v36 = vpack.c.bf16 %v855_v15, %v851_v50  ;;  %v881_v26 = vld [vmem:[%s9953_s5 + $0x3c0] sm:$0xff]  ;;  %v883_v50 = vld [vmem:[%s9953_s5 + $0x3d0] sm:$0xff] }
 0x2aa   :  { %4528 = vmatprep.subr.bf16.mxu0 %v4527_v45  ;;  %4656 = vmatprep.subr.bf16.mxu1 %v4655_v41  ;;  %v4543_v45 = vpack.c.bf16 %v862_v27, %v858_v20  ;;  %v4671_v41 = vpack.c.bf16 %v864_v2, %v860_v40  ;;  %v885_v37 = vld [vmem:[%s9953_s5 + $0x3e0] sm:$0xff]  ;;  %v887_v15 = vld [vmem:[%s9953_s5 + $0x3f0] sm:$0xff]  ;;  %v890_v20 = vld [vmem:[%s9953_s5 + $0x408] sm:$0xff] }
 0x2ab   :  { %v894_v27 = vld [vmem:[%s9953_s5 + $0x428] sm:$0xff]  ;;  %v892_v40 = vld [vmem:[%s9953_s5 + $0x418] sm:$0xff] }
 0x2ac   :  { %v896_v2 = vld [vmem:[%s9953_s5 + $0x438] sm:$0xff] }
 0x2ad   :  { %4530 = vmatpush1.bf16.msra.mxu0 %v4529_v60  ;;  %4658 = vmatpush1.bf16.msra.mxu1 %v4657_v47  ;;  %v4545_v60 = vpack.c.bf16 %v861_v39, %v857_v38  ;;  %v4673_v47 = vpack.c.bf16 %v863_v54, %v859_v53  ;;  %v4559_v38 = vpack.c.bf16 %v894_v27, %v890_v20  ;;  %v891_v53 = vld [vmem:[%s9953_s5 + $0x410] sm:$0xff] }
 0x2ae   :  { %4532 = vmatprep.subr.bf16.mxu0 %v4531_v4  ;;  %4660 = vmatprep.subr.bf16.mxu1 %v4659_v7  ;;  %v4547_v4 = vpack.c.bf16 %v870_v56, %v866_v55  ;;  %v4675_v7 = vpack.c.bf16 %v872_v58, %v868_v57  ;;  %v4687_v39 = vpack.c.bf16 %v896_v2, %v892_v40  ;;  %v895_v54 = vld [vmem:[%s9953_s5 + $0x430] sm:$0xff]  ;;  %v898_v55 = vld [vmem:[%s9953_s5 + $0x448] sm:$0xff]  ;;  %v900_v57 = vld [vmem:[%s9953_s5 + $0x458] sm:$0xff] }
 0x2af   :  { %v902_v56 = vld [vmem:[%s9953_s5 + $0x468] sm:$0xff]  ;;  %v904_v58 = vld [vmem:[%s9953_s5 + $0x478] sm:$0xff]  ;;  %v921_v2 = vld [vmem:[%s9953_s5 + $0x500] sm:$0xff] }
 0x2b1   :  { %4534 = vmatpush1.bf16.msra.mxu0 %v4533_v31  ;;  %4662 = vmatpush1.bf16.msra.mxu1 %v4661_v12  ;;  %v4549_v31 = vpack.c.bf16 %v869_v6, %v865_v0  ;;  %v4677_v12 = vpack.c.bf16 %v871_v8, %v867_v21  ;;  %v897_v0 = vld [vmem:[%s9953_s5 + $0x440] sm:$0xff]  ;;  %v899_v21 = vld [vmem:[%s9953_s5 + $0x450] sm:$0xff] }
 0x2b2   :  { %4536 = vmatprep.subr.bf16.mxu0 %v4535_v18  ;;  %4664 = vmatprep.subr.bf16.mxu1 %v4663_v33  ;;  %v4551_v18 = vpack.c.bf16 %v878_v10, %v874_v14  ;;  %v4679_v33 = vpack.c.bf16 %v880_v22, %v876_v11  ;;  %v901_v6 = vld [vmem:[%s9953_s5 + $0x460] sm:$0xff]  ;;  %v903_v8 = vld [vmem:[%s9953_s5 + $0x470] sm:$0xff]  ;;  %v906_v14 = vld [vmem:[%s9953_s5 + $0x488] sm:$0xff] }
 0x2b3   :  { %v910_v10 = vld [vmem:[%s9953_s5 + $0x4a8] sm:$0xff]  ;;  %v908_v11 = vld [vmem:[%s9953_s5 + $0x498] sm:$0xff] }
 0x2b4   :  { %v912_v22 = vld [vmem:[%s9953_s5 + $0x4b8] sm:$0xff] }
 0x2b5   :  { %4538 = vmatpush1.bf16.msra.mxu0 %v4537_v59  ;;  %4666 = vmatpush1.bf16.msra.mxu1 %v4665_v16  ;;  %v4553_v59 = vpack.c.bf16 %v877_v13, %v873_v28  ;;  %v4681_v16 = vpack.c.bf16 %v879_v35, %v875_v19  ;;  %v909_v28 = vld [vmem:[%s9953_s5 + $0x4a0] sm:$0xff]  ;;  %v907_v13 = vld [vmem:[%s9953_s5 + $0x490] sm:$0xff]  ;;  %v914_v19 = vld [vmem:[%s9953_s5 + $0x4c8] sm:$0xff] }
 0x2b6   :  { %4540 = vmatprep.subr.bf16.mxu0 %v4539_v9  ;;  %4668 = vmatprep.subr.bf16.mxu1 %v4667_v62  ;;  %v4555_v9 = vpack.c.bf16 %v886_v42, %v882_v24  ;;  %v4683_v62 = vpack.c.bf16 %v888_v23, %v884_v63  ;;  %v918_v35 = vld [vmem:[%s9953_s5 + $0x4e8] sm:$0xff]  ;;  %v916_v24 = vld [vmem:[%s9953_s5 + $0x4d8] sm:$0xff] }
 0x2b7   :  { %v920_v42 = vld [vmem:[%s9953_s5 + $0x4f8] sm:$0xff] }
 0x2b9   :  { %4542 = vmatpush1.bf16.msra.mxu0 %v4541_v34  ;;  %4670 = vmatpush1.bf16.msra.mxu1 %v4669_v36  ;;  %v4557_v34 = vpack.c.bf16 %v885_v37, %v881_v26  ;;  %v4685_v36 = vpack.c.bf16 %v887_v15, %v883_v50  ;;  %v915_v26 = vld [vmem:[%s9953_s5 + $0x4d0] sm:$0xff]  ;;  %v4699_v37 = vpack.c.bf16 %v920_v42, %v916_v24  ;;  %v924_v50 = vld [vmem:[%s9953_s5 + $0x518] sm:$0xff]  ;;  %v945_v42 = vld [vmem:[%s9953_s5 + $0x5c0] sm:$0xff] }
 0x2ba   :  { %4544 = vmatprep.subr.bf16.mxu0 %v4543_v45  ;;  %4672 = vmatprep.subr.bf16.mxu1 %v4671_v41  ;;  %v889_v45 = vld [vmem:[%s9953_s5 + $0x400] sm:$0xff]  ;;  %v928_v15 = vld [vmem:[%s9953_s5 + $0x538] sm:$0xff] }
 0x2bb   :  { %v893_v41 = vld [vmem:[%s9953_s5 + $0x420] sm:$0xff] }
 0x2bd   :  { %4546 = vmatpush1.bf16.msra.mxu0 %v4545_v60  ;;  %4674 = vmatpush1.bf16.msra.mxu1 %v4673_v47  ;;  %v4561_v60 = vpack.c.bf16 %v893_v41, %v889_v45  ;;  %v4689_v47 = vpack.c.bf16 %v895_v54, %v891_v53  ;;  %v930_v45 = vld [vmem:[%s9953_s5 + $0x548] sm:$0xff]  ;;  %v932_v53 = vld [vmem:[%s9953_s5 + $0x558] sm:$0xff] }
 0x2be   :  { %4548 = vmatprep.subr.bf16.mxu0 %v4547_v4  ;;  %4676 = vmatprep.subr.bf16.mxu1 %v4675_v7  ;;  %v4563_v4 = vpack.c.bf16 %v902_v56, %v898_v55  ;;  %v4691_v7 = vpack.c.bf16 %v904_v58, %v900_v57  ;;  %v934_v41 = vld [vmem:[%s9953_s5 + $0x568] sm:$0xff]  ;;  %v936_v54 = vld [vmem:[%s9953_s5 + $0x578] sm:$0xff]  ;;  %v929_v58 = vld [vmem:[%s9953_s5 + $0x540] sm:$0xff] }
 0x2bf   :  { %v4579_v57 = vpack.c.bf16 %v934_v41, %v930_v45 }
 0x2c1   :  { %4550 = vmatpush1.bf16.msra.mxu0 %v4549_v31  ;;  %4678 = vmatpush1.bf16.msra.mxu1 %v4677_v12  ;;  %v4565_v31 = vpack.c.bf16 %v901_v6, %v897_v0  ;;  %v905_v12 = vld [vmem:[%s9953_s5 + $0x480] sm:$0xff]  ;;  %v4707_v0 = vpack.c.bf16 %v936_v54, %v932_v53  ;;  %v935_v6 = vld [vmem:[%s9953_s5 + $0x570] sm:$0xff] }
 0x2c2   :  { %4552 = vmatprep.subr.bf16.mxu0 %v4551_v18  ;;  %4680 = vmatprep.subr.bf16.mxu1 %v4679_v33  ;;  %v4567_v18 = vpack.c.bf16 %v910_v10, %v906_v14  ;;  %v4695_v33 = vpack.c.bf16 %v912_v22, %v908_v11  ;;  %v4569_v63 = vpack.c.bf16 %v909_v28, %v905_v12  ;;  %v937_v22 = vld [vmem:[%s9953_s5 + $0x580] sm:$0xff]  ;;  %v943_v28 = vld [vmem:[%s9953_s5 + $0x5b0] sm:$0xff] }
 0x2c3   :  { %v961_v54 = vld [vmem:[%s9953_s5 + $0x640] sm:$0xff] }
 0x2c5   :  { %4554 = vmatpush1.bf16.msra.mxu0 %v4553_v59  ;;  %4682 = vmatpush1.bf16.msra.mxu1 %v4681_v16  ;;  %v4571_v59 = vpack.c.bf16 %v918_v35, %v914_v19  ;;  %v917_v16 = vld [vmem:[%s9953_s5 + $0x4e0] sm:$0xff] }
 0x2c6   :  { %4556 = vmatprep.subr.bf16.mxu0 %v4555_v9  ;;  %4684 = vmatprep.subr.bf16.mxu1 %v4683_v62  ;;  %v922_v9 = vld [vmem:[%s9953_s5 + $0x508] sm:$0xff] }
 0x2c7   :  { %v926_v62 = vld [vmem:[%s9953_s5 + $0x528] sm:$0xff] }
 0x2c8   :  { %v4575_v40 = vpack.c.bf16 %v926_v62, %v922_v9 }
 0x2c9   :  { %4558 = vmatpush1.bf16.msra.mxu0 %v4557_v34  ;;  %4686 = vmatpush1.bf16.msra.mxu1 %v4685_v36  ;;  %v925_v34 = vld [vmem:[%s9953_s5 + $0x520] sm:$0xff]  ;;  %v923_v36 = vld [vmem:[%s9953_s5 + $0x510] sm:$0xff] }
 0x2ca   :  { %4560 = vmatprep.subr.bf16.mxu0 %v4559_v38  ;;  %4688 = vmatprep.subr.bf16.mxu1 %v4687_v39  ;;  %v4703_v38 = vpack.c.bf16 %v928_v15, %v924_v50  ;;  %v927_v39 = vld [vmem:[%s9953_s5 + $0x530] sm:$0xff]  ;;  %v4577_v55 = vpack.c.bf16 %v925_v34, %v921_v2  ;;  %v953_v15 = vld [vmem:[%s9953_s5 + $0x600] sm:$0xff]  ;;  %v962_v34 = vld [vmem:[%s9953_s5 + $0x648] sm:$0xff] }
 0x2cb   :  { %v4705_v56 = vpack.c.bf16 %v927_v39, %v923_v36  ;;  %v959_v2 = vld [vmem:[%s9953_s5 + $0x630] sm:$0xff]  ;;  %v966_v36 = vld [vmem:[%s9953_s5 + $0x668] sm:$0xff]  ;;  %v968_v39 = vld [vmem:[%s9953_s5 + $0x678] sm:$0xff] }
 0x2cc   :  { %1678 = vmatmul.mubr.f32.vlgmr.msra.gmra.mrb[12].mxu0 %v6511_v46  ;;  %1832 = vmatmul.mubr.f32.vlgmr.msra.gmra.mrb[12].mxu1 %v6511_v46  ;;  %v4693_v46 = vpack.c.bf16 %v903_v8, %v899_v21  ;;  %v940_v21 = vld [vmem:[%s9953_s5 + $0x598] sm:$0xff]  ;;  %v4595_v53 = vpack.c.bf16 %v966_v36, %v962_v34 }
 0x2cd   :  { %1683 = vmatprep.mubr.f32.mxu0 %v6539_v5  ;;  %4562 = vmatpush1.bf16.msra.mxu0 %v4561_v60  ;;  %v933_v60 = vld [vmem:[%s9953_s5 + $0x560] sm:$0xff]  ;;  %v944_v8 = vld [vmem:[%s9953_s5 + $0x5b8] sm:$0xff] }
 0x2ce   :  { %1837 = vmatprep.mubr.f32.mxu1 %v6539_v5  ;;  %4690 = vmatpush1.bf16.msra.mxu1 %v4689_v47  ;;  %v911_v5 = vld [vmem:[%s9953_s5 + $0x4b0] sm:$0xff]  ;;  %v4581_v14 = vpack.c.bf16 %v933_v60, %v929_v58  ;;  %v4711_v12 = vpack.c.bf16 %v944_v8, %v940_v21  ;;  %v970_v60 = vld [vmem:[%s9953_s5 + $0x688] sm:$0xff]  ;;  %v969_v8 = vld [vmem:[%s9953_s5 + $0x680] sm:$0xff] }
 0x2cf   :  { %4564 = vmatprep.subr.bf16.mxu0 %v4563_v4  ;;  %4692 = vmatprep.subr.bf16.mxu1 %v4691_v7  ;;  %v4697_v23 = vpack.c.bf16 %v911_v5, %v907_v13  ;;  %v931_v47 = vld [vmem:[%s9953_s5 + $0x550] sm:$0xff]  ;;  %v938_v4 = vld [vmem:[%s9953_s5 + $0x588] sm:$0xff]  ;;  %v952_v5 = vld [vmem:[%s9953_s5 + $0x5f8] sm:$0xff] }
 0x2d0   :  { %1684 = vmatmul.mubr.f32.gmra.mrb[14].mxu0 %v6559_v61  ;;  %1838 = vmatmul.mubr.f32.gmra.mrb[14].mxu1 %v6559_v61  ;;  %v913_v61 = vld [vmem:[%s9953_s5 + $0x4c0] sm:$0xff]  ;;  %v942_v7 = vld [vmem:[%s9953_s5 + $0x5a8] sm:$0xff]  ;;  %v4709_v10 = vpack.c.bf16 %v935_v6, %v931_v47  ;;  %v967_v58 = vld [vmem:[%s9953_s5 + $0x670] sm:$0xff] }
 0x2d1   :  { %4566 = vmatpush1.bf16.msra.mxu0 %v4565_v31  ;;  %1754 = vmatprep.mubr.f32.mxu0 %v6573_v17  ;;  %v4573_v20 = vpack.c.bf16 %v917_v16, %v913_v61  ;;  %v4583_v11 = vpack.c.bf16 %v942_v7, %v938_v4  ;;  %v941_v31 = vld [vmem:[%s9953_s5 + $0x5a0] sm:$0xff]  ;;  %v946_v13 = vld [vmem:[%s9953_s5 + $0x5c8] sm:$0xff]  ;;  %v951_v61 = vld [vmem:[%s9953_s5 + $0x5f0] sm:$0xff] }
 0x2d2   :  { %4694 = vmatpush1.bf16.msra.mxu1 %v4693_v46  ;;  %1908 = vmatprep.mubr.f32.mxu1 %v6573_v17  ;;  %v919_v17 = vld [vmem:[%s9953_s5 + $0x4f0] sm:$0xff]  ;;  %v4585_v19 = vpack.c.bf16 %v941_v31, %v937_v22  ;;  %v954_v16 = vld [vmem:[%s9953_s5 + $0x608] sm:$0xff]  ;;  %v976_v6 = vld [vmem:[%s9953_s5 + $0x6b8] sm:$0xff] }
 0x2d3   :  { %4568 = vmatprep.subr.bf16.mxu0 %v4567_v18  ;;  %4696 = vmatprep.subr.bf16.mxu1 %v4695_v33  ;;  %v4701_v27 = vpack.c.bf16 %v919_v17, %v915_v26  ;;  %v939_v46 = vld [vmem:[%s9953_s5 + $0x590] sm:$0xff]  ;;  %v950_v18 = vld [vmem:[%s9953_s5 + $0x5e8] sm:$0xff]  ;;  %v948_v33 = vld [vmem:[%s9953_s5 + $0x5d8] sm:$0xff] }
 0x2d4   :  { %v4713_v35 = vpack.c.bf16 %v943_v28, %v939_v46  ;;  %v4587_v24 = vpack.c.bf16 %v950_v18, %v946_v13  ;;  %v958_v26 = vld [vmem:[%s9953_s5 + $0x628] sm:$0xff]  ;;  %v960_v17 = vld [vmem:[%s9953_s5 + $0x638] sm:$0xff]  ;;  %v975_v22 = vld [vmem:[%s9953_s5 + $0x6b0] sm:$0xff] }
 0x2d5   :  { %4570 = vmatpush1.bf16.msra.mxu0 %v4569_v63  ;;  %v949_v63 = vld [vmem:[%s9953_s5 + $0x5e0] sm:$0xff]  ;;  %v4591_v50 = vpack.c.bf16 %v958_v26, %v954_v16  ;;  %v974_v47 = vld [vmem:[%s9953_s5 + $0x6a8] sm:$0xff]  ;;  %v984_v28 = vld [vmem:[%s9953_s5 + $0x6f8] sm:$0xff] }
 0x2d6   :  { %4698 = vmatpush1.bf16.msra.mxu1 %v4697_v23  ;;  %4572 = vmatprep.subr.bf16.mxu0 %v4571_v59  ;;  %v947_v23 = vld [vmem:[%s9953_s5 + $0x5d0] sm:$0xff]  ;;  %v4715_v59 = vpack.c.bf16 %v952_v5, %v948_v33  ;;  %v4589_v9 = vpack.c.bf16 %v949_v63, %v945_v42  ;;  %v4599_v21 = vpack.c.bf16 %v974_v47, %v970_v60  ;;  %v978_v31 = vld [vmem:[%s9953_s5 + $0x6c8] sm:$0xff]  ;;  %v977_v5 = vld [vmem:[%s9953_s5 + $0x6c0] sm:$0xff] }
 0x2d7   :  { %4700 = vmatprep.subr.bf16.mxu1 %v4699_v37  ;;  %v956_v37 = vld [vmem:[%s9953_s5 + $0x618] sm:$0xff]  ;;  %v4717_v62 = vpack.c.bf16 %v951_v61, %v947_v23  ;;  %v982_v46 = vld [vmem:[%s9953_s5 + $0x6e8] sm:$0xff]  ;;  %v983_v42 = vld [vmem:[%s9953_s5 + $0x6f0] sm:$0xff] }
 0x2d8   :  { %v4603_v33 = vpack.c.bf16 %v982_v46, %v978_v31  ;;  %v986_v63 = vld [vmem:[%s9953_s5 + $0x708] sm:$0xff]  ;;  %v992_v61 = vld [vmem:[%s9953_s5 + $0x738] sm:$0xff] }
 0x2d9   :  { %4574 = vmatpush1.bf16.msra.mxu0 %v4573_v20  ;;  %v957_v20 = vld [vmem:[%s9953_s5 + $0x620] sm:$0xff]  ;;  %v990_v23 = vld [vmem:[%s9953_s5 + $0x728] sm:$0xff] }
 0x2da   :  { %4702 = vmatpush1.bf16.msra.mxu1 %v4701_v27  ;;  %4576 = vmatprep.subr.bf16.mxu0 %v4575_v40  ;;  %v955_v27 = vld [vmem:[%s9953_s5 + $0x610] sm:$0xff]  ;;  %v4719_v40 = vpack.c.bf16 %v960_v17, %v956_v37  ;;  %v4593_v45 = vpack.c.bf16 %v957_v20, %v953_v15  ;;  %v4607_v37 = vpack.c.bf16 %v990_v23, %v986_v63  ;;  %v985_v17 = vld [vmem:[%s9953_s5 + $0x700] sm:$0xff]  ;;  %v994_v20 = vld [vmem:[%s9953_s5 + $0x748] sm:$0xff] }
 0x2db   :  { %4704 = vmatprep.subr.bf16.mxu1 %v4703_v38  ;;  %v964_v38 = vld [vmem:[%s9953_s5 + $0x658] sm:$0xff]  ;;  %v4721_v41 = vpack.c.bf16 %v959_v2, %v955_v27  ;;  %v991_v15 = vld [vmem:[%s9953_s5 + $0x730] sm:$0xff]  ;;  %v998_v27 = vld [vmem:[%s9953_s5 + $0x768] sm:$0xff] }
 0x2dc   :  { %v1000_v2 = vld [vmem:[%s9953_s5 + $0x778] sm:$0xff] }
 0x2dd   :  { %4578 = vmatpush1.bf16.msra.mxu0 %v4577_v55  ;;  %v965_v55 = vld [vmem:[%s9953_s5 + $0x660] sm:$0xff] }
 0x2de   :  { %4706 = vmatpush1.bf16.msra.mxu1 %v4705_v56  ;;  %4580 = vmatprep.subr.bf16.mxu0 %v4579_v57  ;;  %v963_v56 = vld [vmem:[%s9953_s5 + $0x650] sm:$0xff]  ;;  %v4723_v57 = vpack.c.bf16 %v968_v39, %v964_v38  ;;  %v4597_v4 = vpack.c.bf16 %v965_v55, %v961_v54  ;;  %v4611_v38 = vpack.c.bf16 %v998_v27, %v994_v20  ;;  %v993_v39 = vld [vmem:[%s9953_s5 + $0x740] sm:$0xff]  ;;  %v1002_v55 = vld [vmem:[%s9953_s5 + $0x788] sm:$0xff] }
 0x2df   :  { %4708 = vmatprep.subr.bf16.mxu1 %v4707_v0  ;;  %v972_v0 = vld [vmem:[%s9953_s5 + $0x698] sm:$0xff]  ;;  %v4725_v7 = vpack.c.bf16 %v967_v58, %v963_v56  ;;  %v999_v54 = vld [vmem:[%s9953_s5 + $0x770] sm:$0xff]  ;;  %v1006_v56 = vld [vmem:[%s9953_s5 + $0x7a8] sm:$0xff] }
 0x2e0   :  { %v1008_v58 = vld [vmem:[%s9953_s5 + $0x7b8] sm:$0xff] }
 0x2e1   :  { %4582 = vmatpush1.bf16.msra.mxu0 %v4581_v14  ;;  %v973_v14 = vld [vmem:[%s9953_s5 + $0x6a0] sm:$0xff] }
 0x2e2   :  { %4710 = vmatpush1.bf16.msra.mxu1 %v4709_v10  ;;  %4584 = vmatprep.subr.bf16.mxu0 %v4583_v11  ;;  %v971_v10 = vld [vmem:[%s9953_s5 + $0x690] sm:$0xff]  ;;  %v4727_v11 = vpack.c.bf16 %v976_v6, %v972_v0  ;;  %v4601_v13 = vpack.c.bf16 %v973_v14, %v969_v8  ;;  %v4615_v0 = vpack.c.bf16 %v1006_v56, %v1002_v55  ;;  %v1001_v6 = vld [vmem:[%s9953_s5 + $0x780] sm:$0xff]  ;;  %v1010_v14 = vld [vmem:[%s9953_s5 + $0x7c8] sm:$0xff] }
 0x2e3   :  { %4712 = vmatprep.subr.bf16.mxu1 %v4711_v12  ;;  %v980_v12 = vld [vmem:[%s9953_s5 + $0x6d8] sm:$0xff]  ;;  %v4729_v18 = vpack.c.bf16 %v975_v22, %v971_v10  ;;  %v1007_v8 = vld [vmem:[%s9953_s5 + $0x7b0] sm:$0xff]  ;;  %v1014_v10 = vld [vmem:[%s9953_s5 + $0x7e8] sm:$0xff] }
 0x2e4   :  { %v1016_v22 = vld [vmem:[%s9953_s5 + $0x7f8] sm:$0xff]  ;;  %v2324_v56 = vld [vmem:[%s9954_s10 + $0x40] sm:$0xff] }
 0x2e5   :  { %4586 = vmatpush1.bf16.msra.mxu0 %v4585_v19  ;;  %v981_v19 = vld [vmem:[%s9953_s5 + $0x6e0] sm:$0xff]  ;;  %v2331_v55 = vld [vmem:[%s9954_s10 + $0x78] sm:$0xff] }
 0x2e6   :  { %4714 = vmatpush1.bf16.msra.mxu1 %v4713_v35  ;;  %4588 = vmatprep.subr.bf16.mxu0 %v4587_v24  ;;  %v979_v35 = vld [vmem:[%s9953_s5 + $0x6d0] sm:$0xff]  ;;  %v4731_v24 = vpack.c.bf16 %v984_v28, %v980_v12  ;;  %v4605_v16 = vpack.c.bf16 %v981_v19, %v977_v5  ;;  %v4619_v12 = vpack.c.bf16 %v1014_v10, %v1010_v14  ;;  %v1009_v28 = vld [vmem:[%s9953_s5 + $0x7c0] sm:$0xff]  ;;  %v2317_v19 = vld [vmem:[%s9954_s10 + $0x8] sm:$0xff] }
 0x2e7   :  { %4716 = vmatprep.subr.bf16.mxu1 %v4715_v59  ;;  %v988_v59 = vld [vmem:[%s9953_s5 + $0x718] sm:$0xff]  ;;  %v4733_v26 = vpack.c.bf16 %v983_v42, %v979_v35  ;;  %v1015_v5 = vld [vmem:[%s9953_s5 + $0x7f0] sm:$0xff]  ;;  %v2321_v35 = vld [vmem:[%s9954_s10 + $0x28] sm:$0xff] }
 0x2e8   :  { %v2323_v42 = vld [vmem:[%s9954_s10 + $0x38] sm:$0xff] }
 0x2e9   :  { %4590 = vmatpush1.bf16.msra.mxu0 %v4589_v9  ;;  %v989_v9 = vld [vmem:[%s9953_s5 + $0x720] sm:$0xff]  ;;  %v2335_v14 = vld [vmem:[%s9954_s10 + $0x98] sm:$0xff] }
 0x2ea   :  { %4718 = vmatpush1.bf16.msra.mxu1 %v4717_v62  ;;  %4592 = vmatprep.subr.bf16.mxu0 %v4591_v50  ;;  %v987_v62 = vld [vmem:[%s9953_s5 + $0x710] sm:$0xff]  ;;  %v4735_v50 = vpack.c.bf16 %v992_v61, %v988_v59  ;;  %v4609_v34 = vpack.c.bf16 %v989_v9, %v985_v17  ;;  %v4751_v59 = vpack.c.bf16 %v2321_v35, %v2317_v19 }
 0x2eb   :  { %4720 = vmatprep.subr.bf16.mxu1 %v4719_v40  ;;  %v996_v40 = vld [vmem:[%s9953_s5 + $0x758] sm:$0xff]  ;;  %v4737_v36 = vpack.c.bf16 %v991_v15, %v987_v62  ;;  %v2322_v17 = vld [vmem:[%s9954_s10 + $0x30] sm:$0xff] }
 0x2ed   :  { %4594 = vmatpush1.bf16.msra.mxu0 %v4593_v45  ;;  %v997_v45 = vld [vmem:[%s9953_s5 + $0x760] sm:$0xff] }
 0x2ee   :  { %4722 = vmatpush1.bf16.msra.mxu1 %v4721_v41  ;;  %4596 = vmatprep.subr.bf16.mxu0 %v4595_v53  ;;  %v995_v41 = vld [vmem:[%s9953_s5 + $0x750] sm:$0xff]  ;;  %v4739_v53 = vpack.c.bf16 %v1000_v2, %v996_v40  ;;  %v4613_v60 = vpack.c.bf16 %v997_v45, %v993_v39  ;;  %v2325_v40 = vld [vmem:[%s9954_s10 + $0x48] sm:$0xff]  ;;  %v2327_v39 = vld [vmem:[%s9954_s10 + $0x58] sm:$0xff] }
 0x2ef   :  { %4724 = vmatprep.subr.bf16.mxu1 %v4723_v57  ;;  %v1004_v57 = vld [vmem:[%s9953_s5 + $0x798] sm:$0xff]  ;;  %v4741_v47 = vpack.c.bf16 %v999_v54, %v995_v41 }
 0x2f1   :  { %4598 = vmatpush1.bf16.msra.mxu0 %v4597_v4  ;;  %v1005_v4 = vld [vmem:[%s9953_s5 + $0x7a0] sm:$0xff] }
 0x2f2   :  { %4726 = vmatpush1.bf16.msra.mxu1 %v4725_v7  ;;  %4600 = vmatprep.subr.bf16.mxu0 %v4599_v21  ;;  %v1003_v7 = vld [vmem:[%s9953_s5 + $0x790] sm:$0xff]  ;;  %v4743_v21 = vpack.c.bf16 %v1008_v58, %v1004_v57  ;;  %v4617_v31 = vpack.c.bf16 %v1005_v4, %v1001_v6 }
 0x2f3   :  { %4728 = vmatprep.subr.bf16.mxu1 %v4727_v11  ;;  %v1012_v11 = vld [vmem:[%s9953_s5 + $0x7d8] sm:$0xff]  ;;  %v4745_v46 = vpack.c.bf16 %v1007_v8, %v1003_v7  ;;  %v2330_v6 = vld [vmem:[%s9954_s10 + $0x70] sm:$0xff]  ;;  %v2337_v8 = vld [vmem:[%s9954_s10 + $0xa8] sm:$0xff] }
 0x2f5   :  { %4602 = vmatpush1.bf16.msra.mxu0 %v4601_v13  ;;  %v1013_v13 = vld [vmem:[%s9953_s5 + $0x7e0] sm:$0xff] }
 0x2f6   :  { %4730 = vmatpush1.bf16.msra.mxu1 %v4729_v18  ;;  %4604 = vmatprep.subr.bf16.mxu0 %v4603_v33  ;;  %v1011_v18 = vld [vmem:[%s9953_s5 + $0x7d0] sm:$0xff]  ;;  %v4747_v33 = vpack.c.bf16 %v1016_v22, %v1012_v11  ;;  %v4621_v63 = vpack.c.bf16 %v1013_v13, %v1009_v28  ;;  %v2339_v22 = vld [vmem:[%s9954_s10 + $0xb8] sm:$0xff] }
 0x2f7   :  { %4732 = vmatprep.subr.bf16.mxu1 %v4731_v24  ;;  %v2319_v24 = vld [vmem:[%s9954_s10 + $0x18] sm:$0xff]  ;;  %v4749_v23 = vpack.c.bf16 %v1015_v5, %v1011_v18  ;;  %v2334_v18 = vld [vmem:[%s9954_s10 + $0x90] sm:$0xff]  ;;  %v4887_v19 = vpack.c.bf16 %v2339_v22, %v2335_v14  ;;  %v2360_v14 = vld [vmem:[%s9954_s10 + $0x160] sm:$0xff] }
 0x2f8   :  { %v4879_v61 = vpack.c.bf16 %v2323_v42, %v2319_v24  ;;  %v2341_v24 = vld [vmem:[%s9954_s10 + $0xc8] sm:$0xff] }
 0x2f9   :  { %4606 = vmatpush1.bf16.msra.mxu0 %v4605_v16  ;;  %v2316_v16 = vld [vmem:[%s9954_s10] sm:$0xff]  ;;  %v2345_v42 = vld [vmem:[%s9954_s10 + $0xe8] sm:$0xff] }
 0x2fa   :  { %4734 = vmatpush1.bf16.msra.mxu1 %v4733_v26  ;;  %4608 = vmatprep.subr.bf16.mxu0 %v4607_v37  ;;  %v2320_v26 = vld [vmem:[%s9954_s10 + $0x20] sm:$0xff]  ;;  %v2318_v37 = vld [vmem:[%s9954_s10 + $0x10] sm:$0xff] }
 0x2fb   :  { %4736 = vmatprep.subr.bf16.mxu1 %v4735_v50  ;;  %v4753_v9 = vpack.c.bf16 %v2320_v26, %v2316_v16  ;;  %v4881_v62 = vpack.c.bf16 %v2322_v17, %v2318_v37  ;;  %v4763_v16 = vpack.c.bf16 %v2345_v42, %v2341_v24  ;;  %v2344_v37 = vld [vmem:[%s9954_s10 + $0xe0] sm:$0xff]  ;;  %v2342_v17 = vld [vmem:[%s9954_s10 + $0xd0] sm:$0xff] }
 0x2fc   :  { %v2368_v24 = vld [vmem:[%s9954_s10 + $0x1a0] sm:$0xff] }
 0x2fd   :  { %4610 = vmatpush1.bf16.msra.mxu0 %v4609_v34 }
 0x2fe   :  { %4738 = vmatpush1.bf16.msra.mxu1 %v4737_v36  ;;  %4612 = vmatprep.subr.bf16.mxu0 %v4611_v38 }
 0x2ff   :  { %4740 = vmatprep.subr.bf16.mxu1 %v4739_v53 }
 0x301   :  { %4614 = vmatpush1.bf16.msra.mxu0 %v4613_v60 }
 0x302   :  { %4742 = vmatpush1.bf16.msra.mxu1 %v4741_v47  ;;  %4616 = vmatprep.subr.bf16.mxu0 %v4615_v0  ;;  %v2328_v47 = vld [vmem:[%s9954_s10 + $0x60] sm:$0xff]  ;;  %v2326_v0 = vld [vmem:[%s9954_s10 + $0x50] sm:$0xff] }
 0x303   :  { %4744 = vmatprep.subr.bf16.mxu1 %v4743_v21  ;;  %v2333_v21 = vld [vmem:[%s9954_s10 + $0x88] sm:$0xff]  ;;  %v4757_v28 = vpack.c.bf16 %v2328_v47, %v2324_v56  ;;  %v4885_v13 = vpack.c.bf16 %v2330_v6, %v2326_v0  ;;  %v2359_v47 = vld [vmem:[%s9954_s10 + $0x158] sm:$0xff] }
 0x304   :  { %v4759_v5 = vpack.c.bf16 %v2337_v8, %v2333_v21  ;;  %v2357_v56 = vld [vmem:[%s9954_s10 + $0x148] sm:$0xff]  ;;  %v2363_v21 = vld [vmem:[%s9954_s10 + $0x178] sm:$0xff]  ;;  %v2356_v8 = vld [vmem:[%s9954_s10 + $0x140] sm:$0xff] }
 0x305   :  { %4618 = vmatpush1.bf16.msra.mxu0 %v4617_v31  ;;  %v2332_v31 = vld [vmem:[%s9954_s10 + $0x80] sm:$0xff]  ;;  %v4899_v22 = vpack.c.bf16 %v2363_v21, %v2359_v47  ;;  %v2382_v47 = vld [vmem:[%s9954_s10 + $0x210] sm:$0xff]  ;;  %v2389_v21 = vld [vmem:[%s9954_s10 + $0x248] sm:$0xff] }
 0x306   :  { %4746 = vmatpush1.bf16.msra.mxu1 %v4745_v46  ;;  %4620 = vmatprep.subr.bf16.mxu0 %v4619_v12  ;;  %v2336_v46 = vld [vmem:[%s9954_s10 + $0xa0] sm:$0xff]  ;;  %v4883_v12 = vpack.c.bf16 %v2331_v55, %v2327_v39  ;;  %v2354_v39 = vld [vmem:[%s9954_s10 + $0x130] sm:$0xff] }
 0x307   :  { %4748 = vmatprep.subr.bf16.mxu1 %v4747_v33  ;;  %v2338_v33 = vld [vmem:[%s9954_s10 + $0xb0] sm:$0xff]  ;;  %v4761_v35 = vpack.c.bf16 %v2336_v46, %v2332_v31 }
 0x308   :  { %v2358_v31 = vld [vmem:[%s9954_s10 + $0x150] sm:$0xff] }
 0x309   :  { %4622 = vmatpush1.bf16.msra.mxu0 %v4621_v63  ;;  %v2343_v63 = vld [vmem:[%s9954_s10 + $0xd8] sm:$0xff]  ;;  %v2362_v46 = vld [vmem:[%s9954_s10 + $0x170] sm:$0xff] }
 0x30a   :  { %4750 = vmatpush1.bf16.msra.mxu1 %v4749_v23  ;;  %4752 = vmatprep.subr.bf16.mxu0 %v4751_v59  ;;  %v2347_v23 = vld [vmem:[%s9954_s10 + $0xf8] sm:$0xff]  ;;  %v2340_v59 = vld [vmem:[%s9954_s10 + $0xc0] sm:$0xff] }
 0x30b   :  { %4880 = vmatprep.subr.bf16.mxu1 %v4879_v61  ;;  %v4889_v61 = vpack.c.bf16 %v2338_v33, %v2334_v18  ;;  %v4891_v26 = vpack.c.bf16 %v2347_v23, %v2343_v63  ;;  %v2367_v18 = vld [vmem:[%s9954_s10 + $0x198] sm:$0xff]  ;;  %v4901_v33 = vpack.c.bf16 %v2362_v46, %v2358_v31  ;;  %v2366_v63 = vld [vmem:[%s9954_s10 + $0x190] sm:$0xff] }
 0x30c   :  { %1755 = vmatmul.mubr.f32.vlgmr.msra.gmra.mrb[12].mxu0 %v6924_v1  ;;  %v2370_v23 = vld [vmem:[%s9954_s10 + $0x1b0] sm:$0xff]  ;;  %v2395_v46 = vld [vmem:[%s9954_s10 + $0x278] sm:$0xff] }
 0x30d   :  { %1909 = vmatmul.mubr.f32.vlgmr.msra.gmra.mrb[12].mxu1 %v6924_v1  ;;  %1760 = vmatprep.mubr.f32.mxu0 %v6941_v30  ;;  %v2329_v1 = vld [vmem:[%s9954_s10 + $0x68] sm:$0xff] }
 0x30e   :  { %1914 = vmatprep.mubr.f32.mxu1 %v6941_v30  ;;  %4754 = vmatpush1.bf16.msra.mxu0 %v4753_v9  ;;  %v2346_v9 = vld [vmem:[%s9954_s10 + $0xf0] sm:$0xff] }
 0x30f   :  { %4882 = vmatpush1.bf16.msra.mxu1 %v4881_v62  ;;  %v2349_v62 = vld [vmem:[%s9954_s10 + $0x108] sm:$0xff] }
 0x310   :  { %1761 = vmatmul.mubr.f32.gmra.mrb[14].mxu0 %v6962_v29  ;;  %4884 = vmatprep.subr.bf16.mxu1 %v4883_v12  ;;  %v4773_v12 = vpack.c.bf16 %v2360_v14, %v2356_v8  ;;  %v2393_v8 = vld [vmem:[%s9954_s10 + $0x268] sm:$0xff]  ;;  %v2391_v14 = vld [vmem:[%s9954_s10 + $0x258] sm:$0xff] }
 0x311   :  { %1915 = vmatmul.mubr.f32.gmra.mrb[14].mxu1 %v6962_v29  ;;  %v4755_v29 = vpack.c.bf16 %v2329_v1, %v2325_v40  ;;  %v2351_v40 = vld [vmem:[%s9954_s10 + $0x118] sm:$0xff]  ;;  %v4787_v31 = vpack.c.bf16 %v2393_v8, %v2389_v21  ;;  %v2416_v21 = vld [vmem:[%s9954_s10 + $0x320] sm:$0xff] }
 0x312   :  { %v2355_v1 = vld [vmem:[%s9954_s10 + $0x138] sm:$0xff] }
 0x313   :  { %4756 = vmatprep.subr.bf16.mxu0 %v4755_v29  ;;  %4886 = vmatpush1.bf16.msra.mxu1 %v4885_v13  ;;  %v2350_v29 = vld [vmem:[%s9954_s10 + $0x110] sm:$0xff]  ;;  %v2369_v13 = vld [vmem:[%s9954_s10 + $0x1a8] sm:$0xff] }
 0x314   :  { %4758 = vmatpush1.bf16.msra.mxu0 %v4757_v28  ;;  %4888 = vmatprep.subr.bf16.mxu1 %v4887_v19  ;;  %v4897_v0 = vpack.c.bf16 %v2354_v39, %v2350_v29  ;;  %v2365_v28 = vld [vmem:[%s9954_s10 + $0x188] sm:$0xff]  ;;  %v2371_v19 = vld [vmem:[%s9954_s10 + $0x1b8] sm:$0xff] }
 0x315   :  { %4760 = vmatprep.subr.bf16.mxu0 %v4759_v5  ;;  %v4775_v5 = vpack.c.bf16 %v2369_v13, %v2365_v28  ;;  %v4903_v42 = vpack.c.bf16 %v2371_v19, %v2367_v18  ;;  %v2387_v39 = vld [vmem:[%s9954_s10 + $0x238] sm:$0xff]  ;;  %v4915_v28 = vpack.c.bf16 %v2395_v46, %v2391_v14  ;;  %v2392_v13 = vld [vmem:[%s9954_s10 + $0x260] sm:$0xff]  ;;  %v2390_v18 = vld [vmem:[%s9954_s10 + $0x250] sm:$0xff] }
 0x316   :  { %v2397_v19 = vld [vmem:[%s9954_s10 + $0x288] sm:$0xff]  ;;  %v2414_v14 = vld [vmem:[%s9954_s10 + $0x310] sm:$0xff] }
 0x317   :  { %4890 = vmatpush1.bf16.msra.mxu1 %v4889_v61  ;;  %v2373_v61 = vld [vmem:[%s9954_s10 + $0x1c8] sm:$0xff] }
 0x318   :  { %4762 = vmatpush1.bf16.msra.mxu0 %v4761_v35  ;;  %4892 = vmatprep.subr.bf16.mxu1 %v4891_v26  ;;  %v2364_v35 = vld [vmem:[%s9954_s10 + $0x180] sm:$0xff]  ;;  %v2375_v26 = vld [vmem:[%s9954_s10 + $0x1d8] sm:$0xff]  ;;  %v2421_v46 = vld [vmem:[%s9954_s10 + $0x348] sm:$0xff] }
 0x319   :  { %4764 = vmatprep.subr.bf16.mxu0 %v4763_v16  ;;  %v2377_v16 = vld [vmem:[%s9954_s10 + $0x1e8] sm:$0xff] }
 0x35e   :  { %v1416_v50 = vpop.f32.mrb[8].mxu0  ;;  %v1570_v15 = vpop.f32.mrb[8].mxu1 }
 0x35f   :  { %v1418_v20 = vpop.f32.mrb[9].mxu0  ;;  %v1572_v27 = vpop.f32.mrb[9].mxu1  ;;  %v1589_v2 = vrot.slane %v1416_v50, 1  ;;  %v1595_v30 = vrot.slane %v1570_v15, 1  ;;  %v2353_v50 = vld [vmem:[%s9954_s10 + $0x128] sm:$0xff]  ;;  %v4765_v15 = vpack.c.bf16 %v2344_v37, %v2340_v59  ;;  %v4777_v59 = vpack.c.bf16 %v2368_v24, %v2364_v35  ;;  %v2399_v24 = vld [vmem:[%s9954_s10 + $0x298] sm:$0xff] }
 0x360   :  { %v1592_v34 = vrot.slane %v1418_v20, 1  ;;  %v1598_v57 = vrot.slane %v1572_v27, 1  ;;  %v4893_v20 = vpack.c.bf16 %v2346_v9, %v2342_v17  ;;  %v4767_v27 = vpack.c.bf16 %v2353_v50, %v2349_v62  ;;  %v2379_v9 = vld [vmem:[%s9954_s10 + $0x1f8] sm:$0xff]  ;;  %v2372_v62 = vld [vmem:[%s9954_s10 + $0x1c0] sm:$0xff]  ;;  %v2401_v35 = vld [vmem:[%s9954_s10 + $0x2a8] sm:$0xff] }
 0x361   :  { %4766 = vmatpush1.bf16.msra.mxu0 %v4765_v15  ;;  %v4905_v37 = vpack.c.bf16 %v2370_v23, %v2366_v63  ;;  %v4779_v17 = vpack.c.bf16 %v2377_v16, %v2373_v61  ;;  %v2376_v50 = vld [vmem:[%s9954_s10 + $0x1e0] sm:$0xff]  ;;  %v4907_v15 = vpack.c.bf16 %v2379_v9, %v2375_v26  ;;  %v4791_v63 = vpack.c.bf16 %v2401_v35, %v2397_v19  ;;  %v2403_v23 = vld [vmem:[%s9954_s10 + $0x2b8] sm:$0xff]  ;;  %v2398_v26 = vld [vmem:[%s9954_s10 + $0x290] sm:$0xff] }
 0x362   :  { %v7714_v36 = vpop.f32.mrb[10].mxu0  ;;  %v7716_v38 = vpop.f32.mrb[10].mxu1  ;;  %4894 = vmatpush1.bf16.msra.mxu1 %v4893_v20  ;;  %4768 = vmatprep.subr.bf16.mxu0 %v4767_v27  ;;  %v2374_v20 = vld [vmem:[%s9954_s10 + $0x1d0] sm:$0xff]  ;;  %v2400_v61 = vld [vmem:[%s9954_s10 + $0x2a0] sm:$0xff]  ;;  %v4919_v16 = vpack.c.bf16 %v2403_v23, %v2399_v24  ;;  %v2405_v9 = vld [vmem:[%s9954_s10 + $0x2c8] sm:$0xff] }
 0x363   :  { %v1590_v45 = vrot.slane %v7714_v36, 1  ;;  %v1596_v41 = vrot.slane %v7716_v38, 1  ;;  %v7723_v53 = vpop.f32.mrb[11].mxu0  ;;  %v7725_v54 = vpop.f32.mrb[11].mxu1  ;;  %v2378_v27 = vld [vmem:[%s9954_s10 + $0x1f0] sm:$0xff]  ;;  %v2424_v35 = vld [vmem:[%s9954_s10 + $0x360] sm:$0xff] }
 0x364   :  { %v1593_v58 = vrot.slane %v7723_v53, 1  ;;  %v1599_v60 = vrot.slane %v7725_v54, 1  ;;  %v2422_v24 = vld [vmem:[%s9954_s10 + $0x350] sm:$0xff]  ;;  %v2429_v23 = vld [vmem:[%s9954_s10 + $0x388] sm:$0xff] }
 0x365   :  { %v7747_v4 = vsel %vm330_vm1, %v1589_v2, %v1590_v45  ;;  %v7752_v7 = vsel %vm330_vm1, %v1595_v30, %v1596_v41  ;;  %v2348_v2 = vld [vmem:[%s9954_s10 + $0x100] sm:$0xff]  ;;  %v4895_v30 = vpack.c.bf16 %v2355_v1, %v2351_v40  ;;  %v4781_v40 = vpack.c.bf16 %v2376_v50, %v2372_v62  ;;  %v2381_v1 = vld [vmem:[%s9954_s10 + $0x208] sm:$0xff]  ;;  %v2407_v50 = vld [vmem:[%s9954_s10 + $0x2d8] sm:$0xff] }
 0x366   :  { %v7766_v10 = vsel %vm330_vm1, %v1592_v34, %v1593_v58  ;;  %v7771_v11 = vsel %vm330_vm1, %v1598_v57, %v1599_v60  ;;  %v2352_v34 = vld [vmem:[%s9954_s10 + $0x120] sm:$0xff]  ;;  %v2361_v57 = vld [vmem:[%s9954_s10 + $0x168] sm:$0xff]  ;;  %v1610_v38 = vsel %vm330_vm1, %v1593_v58, 0.0 }
 0x367   :  { %v4769_v55 = vpack.c.bf16 %v2352_v34, %v2348_v2  ;;  %v4771_v6 = vpack.c.bf16 %v2361_v57, %v2357_v56  ;;  %4896 = vmatprep.subr.bf16.mxu1 %v4895_v30  ;;  %v2385_v2 = vld [vmem:[%s9954_s10 + $0x228] sm:$0xff]  ;;  %v2383_v30 = vld [vmem:[%s9954_s10 + $0x218] sm:$0xff]  ;;  %v4909_v34 = vpack.c.bf16 %v2378_v27, %v2374_v20  ;;  %v2384_v56 = vld [vmem:[%s9954_s10 + $0x220] sm:$0xff] }
 0x368   :  { %4898 = vmatpush1.bf16.msra.mxu1 %v4897_v0  ;;  %v4783_v29 = vpack.c.bf16 %v2385_v2, %v2381_v1  ;;  %v4911_v57 = vpack.c.bf16 %v2387_v39, %v2383_v30  ;;  %v2386_v0 = vld [vmem:[%s9954_s10 + $0x230] sm:$0xff]  ;;  %v2409_v62 = vld [vmem:[%s9954_s10 + $0x2e8] sm:$0xff]  ;;  %v2411_v27 = vld [vmem:[%s9954_s10 + $0x2f8] sm:$0xff] }
 0x369   :  { %4770 = vmatpush1.bf16.msra.mxu0 %v4769_v55  ;;  %4900 = vmatprep.subr.bf16.mxu1 %v4899_v22  ;;  %v2380_v55 = vld [vmem:[%s9954_s10 + $0x200] sm:$0xff]  ;;  %v4913_v22 = vpack.c.bf16 %v2386_v0, %v2382_v47  ;;  %v4795_v20 = vpack.c.bf16 %v2409_v62, %v2405_v9  ;;  %v4923_v2 = vpack.c.bf16 %v2411_v27, %v2407_v50  ;;  %v2406_v30 = vld [vmem:[%s9954_s10 + $0x2d0] sm:$0xff]  ;;  %v2413_v39 = vld [vmem:[%s9954_s10 + $0x308] sm:$0xff] }
 0x36a   :  { %4772 = vmatprep.subr.bf16.mxu0 %v4771_v6  ;;  %v4785_v6 = vpack.c.bf16 %v2384_v56, %v2380_v55  ;;  %v2408_v1 = vld [vmem:[%s9954_s10 + $0x2e0] sm:$0xff]  ;;  %v2417_v55 = vld [vmem:[%s9954_s10 + $0x328] sm:$0xff]  ;;  %v2415_v56 = vld [vmem:[%s9954_s10 + $0x318] sm:$0xff] }
 0x36b   :  { %v4799_v47 = vpack.c.bf16 %v2417_v55, %v2413_v39  ;;  %v2419_v0 = vld [vmem:[%s9954_s10 + $0x338] sm:$0xff]  ;;  %v2432_v9 = vld [vmem:[%s9954_s10 + $0x3a0] sm:$0xff]  ;;  %v2430_v50 = vld [vmem:[%s9954_s10 + $0x390] sm:$0xff] }
 0x36c   :  { %4902 = vmatpush1.bf16.msra.mxu1 %v4901_v33  ;;  %v2394_v33 = vld [vmem:[%s9954_s10 + $0x270] sm:$0xff]  ;;  %v4927_v8 = vpack.c.bf16 %v2419_v0, %v2415_v56  ;;  %v2437_v27 = vld [vmem:[%s9954_s10 + $0x3c8] sm:$0xff]  ;;  %v2440_v39 = vld [vmem:[%s9954_s10 + $0x3e0] sm:$0xff] }
 0x36d   :  { %4774 = vmatpush1.bf16.msra.mxu0 %v4773_v12  ;;  %4904 = vmatprep.subr.bf16.mxu1 %v4903_v42  ;;  %v2388_v12 = vld [vmem:[%s9954_s10 + $0x240] sm:$0xff]  ;;  %v4917_v42 = vpack.c.bf16 %v2394_v33, %v2390_v18  ;;  %v2423_v18 = vld [vmem:[%s9954_s10 + $0x358] sm:$0xff]  ;;  %v2438_v56 = vld [vmem:[%s9954_s10 + $0x3d0] sm:$0xff] }
 0x36e   :  { %4776 = vmatprep.subr.bf16.mxu0 %v4775_v5  ;;  %v4789_v5 = vpack.c.bf16 %v2392_v13, %v2388_v12  ;;  %v2425_v12 = vld [vmem:[%s9954_s10 + $0x368] sm:$0xff]  ;;  %v2427_v33 = vld [vmem:[%s9954_s10 + $0x378] sm:$0xff] }
 0x36f   :  { %v4803_v13 = vpack.c.bf16 %v2425_v12, %v2421_v46  ;;  %v4931_v19 = vpack.c.bf16 %v2427_v33, %v2423_v18  ;;  %v2445_v0 = vld [vmem:[%s9954_s10 + $0x408] sm:$0xff]  ;;  %v1921_v46 = vmul.u32 4, %v5887_v44  ;;  %v1923_v12 = vshra.s32 %v5884_v43, 7 }
 0x370   :  { %4906 = vmatpush1.bf16.msra.mxu1 %v4905_v37  ;;  %v2402_v37 = vld [vmem:[%s9954_s10 + $0x2b0] sm:$0xff]  ;;  %v1926_v18 = vshra.s32 %v5952_v25, 7 }
 0x371   :  { %4778 = vmatpush1.bf16.msra.mxu0 %v4777_v59  ;;  %4908 = vmatprep.subr.bf16.mxu1 %v4907_v15  ;;  %v2396_v59 = vld [vmem:[%s9954_s10 + $0x280] sm:$0xff]  ;;  %v4921_v15 = vpack.c.bf16 %v2402_v37, %v2398_v26  ;;  %v2435_v37 = vld [vmem:[%s9954_s10 + $0x3b8] sm:$0xff]  ;;  %v1927_v33 = vadd.s32 %v1923_v12, %v1921_v46 }
 0x372   :  { %4780 = vmatprep.subr.bf16.mxu0 %v4779_v17  ;;  %v4793_v17 = vpack.c.bf16 %v2400_v61, %v2396_v59  ;;  %v2433_v59 = vld [vmem:[%s9954_s10 + $0x3a8] sm:$0xff]  ;;  %v2431_v61 = vld [vmem:[%s9954_s10 + $0x398] sm:$0xff] }
 0x373   :  { %v4807_v26 = vpack.c.bf16 %v2433_v59, %v2429_v23  ;;  %v4935_v62 = vpack.c.bf16 %v2435_v37, %v2431_v61  ;;  %vm1935_vm4 = vcmp.lt.s32.totalorder %v1927_v33, 30 }
 0x374   :  { %4910 = vmatpush1.bf16.msra.mxu1 %v4909_v34  ;;  %v2410_v34 = vld [vmem:[%s9954_s10 + $0x2f0] sm:$0xff]  ;;  %v3973_v59 = vsel %vm1935_vm4, 1.0, %v5458_v3 }
 0x375   :  { %4782 = vmatpush1.bf16.msra.mxu0 %v4781_v40  ;;  %4912 = vmatprep.subr.bf16.mxu1 %v4911_v57  ;;  %v2404_v40 = vld [vmem:[%s9954_s10 + $0x2c0] sm:$0xff]  ;;  %v4925_v57 = vpack.c.bf16 %v2410_v34, %v2406_v30  ;;  %v2443_v34 = vld [vmem:[%s9954_s10 + $0x3f8] sm:$0xff] }
 0x376   :  { %4784 = vmatprep.subr.bf16.mxu0 %v4783_v29  ;;  %v4797_v29 = vpack.c.bf16 %v2408_v1, %v2404_v40  ;;  %v2441_v40 = vld [vmem:[%s9954_s10 + $0x3e8] sm:$0xff]  ;;  %v2439_v1 = vld [vmem:[%s9954_s10 + $0x3d8] sm:$0xff] }
 0x377   :  { %v4811_v30 = vpack.c.bf16 %v2441_v40, %v2437_v27  ;;  %v4939_v55 = vpack.c.bf16 %v2443_v34, %v2439_v1 }
 0x378   :  { %4914 = vmatpush1.bf16.msra.mxu1 %v4913_v22  ;;  %v2418_v22 = vld [vmem:[%s9954_s10 + $0x330] sm:$0xff] }
 0x379   :  { %4786 = vmatpush1.bf16.msra.mxu0 %v4785_v6  ;;  %4916 = vmatprep.subr.bf16.mxu1 %v4915_v28  ;;  %v2412_v6 = vld [vmem:[%s9954_s10 + $0x300] sm:$0xff]  ;;  %v4929_v28 = vpack.c.bf16 %v2418_v22, %v2414_v14  ;;  %v2451_v22 = vld [vmem:[%s9954_s10 + $0x438] sm:$0xff] }
 0x37a   :  { %4788 = vmatprep.subr.bf16.mxu0 %v4787_v31  ;;  %v4801_v31 = vpack.c.bf16 %v2416_v21, %v2412_v6  ;;  %v2449_v6 = vld [vmem:[%s9954_s10 + $0x428] sm:$0xff]  ;;  %v2447_v21 = vld [vmem:[%s9954_s10 + $0x418] sm:$0xff] }
 0x37b   :  { %v4815_v14 = vpack.c.bf16 %v2449_v6, %v2445_v0 }
 0x37c   :  { %4918 = vmatpush1.bf16.msra.mxu1 %v4917_v42  ;;  %v2426_v42 = vld [vmem:[%s9954_s10 + $0x370] sm:$0xff] }
 0x37d   :  { %4790 = vmatpush1.bf16.msra.mxu0 %v4789_v5  ;;  %4920 = vmatprep.subr.bf16.mxu1 %v4919_v16  ;;  %v2420_v5 = vld [vmem:[%s9954_s10 + $0x340] sm:$0xff]  ;;  %v4933_v16 = vpack.c.bf16 %v2426_v42, %v2422_v24  ;;  %v1922_v24 = vmul.u32 4, %v5897_v49 }
 0x37e   :  { %4792 = vmatprep.subr.bf16.mxu0 %v4791_v63  ;;  %v4805_v63 = vpack.c.bf16 %v2424_v35, %v2420_v5  ;;  %v1930_v35 = vadd.s32 %v1926_v18, %v1921_v46 }
 0x37f   :  { %v1931_v42 = vadd.s32 %v1923_v12, %v1922_v24 }
 0x380   :  { %4922 = vmatpush1.bf16.msra.mxu1 %v4921_v15  ;;  %v2434_v15 = vld [vmem:[%s9954_s10 + $0x3b0] sm:$0xff]  ;;  %vm1938_vm7 = vcmp.lt.s32.totalorder %v1930_v35, 30 }
 0x381   :  { %4794 = vmatpush1.bf16.msra.mxu0 %v4793_v17  ;;  %4924 = vmatprep.subr.bf16.mxu1 %v4923_v2  ;;  %v2428_v17 = vld [vmem:[%s9954_s10 + $0x380] sm:$0xff]  ;;  %v4937_v2 = vpack.c.bf16 %v2434_v15, %v2430_v50  ;;  %v3976_v37 = vsel %vm1938_vm7, 1.0, %v5458_v3  ;;  %v1609_v15 = vsel %vm330_vm1, %v1590_v45, 0.0  ;;  %vm1939_vm8 = vcmp.lt.s32.totalorder %v1931_v42, 30 }
 0x382   :  { %4796 = vmatprep.subr.bf16.mxu0 %v4795_v20  ;;  %v4809_v20 = vpack.c.bf16 %v2432_v9, %v2428_v17  ;;  %v1934_v17 = vadd.s32 %v1926_v18, %v1922_v24  ;;  %v1612_v45 = vsel %vm330_vm1, %v1599_v60, 0.0 }
 0x384   :  { %4926 = vmatpush1.bf16.msra.mxu1 %v4925_v57  ;;  %v2442_v57 = vld [vmem:[%s9954_s10 + $0x3f0] sm:$0xff]  ;;  %vm1942_vm11 = vcmp.lt.s32.totalorder %v1934_v17, 30 }
 0x385   :  { %4798 = vmatpush1.bf16.msra.mxu0 %v4797_v29  ;;  %4928 = vmatprep.subr.bf16.mxu1 %v4927_v8  ;;  %v2436_v29 = vld [vmem:[%s9954_s10 + $0x3c0] sm:$0xff]  ;;  %v4941_v8 = vpack.c.bf16 %v2442_v57, %v2438_v56 }
 0x386   :  { %4800 = vmatprep.subr.bf16.mxu0 %v4799_v47  ;;  %v4813_v47 = vpack.c.bf16 %v2440_v39, %v2436_v29 }
 0x388   :  { %4930 = vmatpush1.bf16.msra.mxu1 %v4929_v28  ;;  %v1925_v28 = vshra.s32 %v5902_v52, 7 }
 0x389   :  { %4802 = vmatpush1.bf16.msra.mxu0 %v4801_v31  ;;  %4932 = vmatprep.subr.bf16.mxu1 %v4931_v19  ;;  %v4943_v31 = vpack.c.bf16 %v2451_v22, %v2447_v21 }
 0x38a   :  { %4804 = vmatprep.subr.bf16.mxu0 %v4803_v13  ;;  %v1924_v13 = vshra.s32 %v5895_v48, 7  ;;  %v1929_v5 = vadd.s32 %v1925_v28, %v1921_v46 }
 0x38c   :  { %4934 = vmatpush1.bf16.msra.mxu1 %v4933_v16  ;;  %v1928_v19 = vadd.s32 %v1924_v13, %v1921_v46  ;;  %vm1937_vm5 = vcmp.lt.s32.totalorder %v1929_v5, 30  ;;  %v1932_v23 = vadd.s32 %v1924_v13, %v1922_v24 }
 0x38d   :  { %4806 = vmatpush1.bf16.msra.mxu0 %v4805_v63  ;;  %4936 = vmatprep.subr.bf16.mxu1 %v4935_v62  ;;  %v1933_v63 = vadd.s32 %v1925_v28, %v1922_v24  ;;  %v3975_v16 = vsel %vm1937_vm5, 1.0, %v5458_v3 }
 0x38e   :  { %4808 = vmatprep.subr.bf16.mxu0 %v4807_v26  ;;  %vm1936_vm6 = vcmp.lt.s32.totalorder %v1928_v19, 30  ;;  %vm1940_vm10 = vcmp.lt.s32.totalorder %v1932_v23, 30 }
 0x38f   :  { %v3974_v26 = vsel %vm1936_vm6, 1.0, %v5458_v3  ;;  %vm1941_vm9 = vcmp.lt.s32.totalorder %v1933_v63, 30  ;;  %v3978_v54 = vsel %vm1940_vm10, 1.0, %v5458_v3 }
 0x390   :  { %4938 = vmatpush1.bf16.msra.mxu1 %v4937_v2  ;;  %v3977_v2 = vsel %vm1939_vm8, 1.0, %v5458_v3  ;;  %v3979_v53 = vsel %vm1941_vm9, 1.0, %v5458_v3 }
 0x391   :  { %4810 = vmatpush1.bf16.msra.mxu0 %v4809_v20  ;;  %4940 = vmatprep.subr.bf16.mxu1 %v4939_v55  ;;  %v1611_v20 = vsel %vm330_vm1, %v1596_v41, 0.0 }
 0x392   :  { %4812 = vmatprep.subr.bf16.mxu0 %v4811_v30 }
 0x394   :  { %4942 = vmatpush1.bf16.msra.mxu1 %v4941_v8 }
 0x395   :  { %4814 = vmatpush1.bf16.msra.mxu0 %v4813_v47  ;;  %4944 = vmatprep.subr.bf16.mxu1 %v4943_v31 }
 0x396   :  { %4816 = vmatprep.subr.bf16.mxu0 %v4815_v14  ;;  %v3980_v14 = vsel %vm1942_vm11, 1.0, %v5458_v3 }
 0x3df   :  { %v1756_v61 = vpop.f32.mrb[12].mxu0 }
 0x3e0   :  { %v8123_v9 = vadd.f32 %v1756_v61, %v7747_v4  ;;  %v1910_v62 = vpop.f32.mrb[12].mxu1  ;;  %v1758_v50 = vpop.f32.mrb[13].mxu0 }
 0x3e1   :  { %v8132_v27 = vadd.f32 %v1910_v62, %v7752_v7  ;;  %v8135_v40 = vadd.f32 %v1758_v50, %v7766_v10  ;;  %v1912_v1 = vpop.f32.mrb[13].mxu1 }
 0x3e2   :  { %v1959_v4 = vmul.f32 %v8123_v9, %v3973_v59  ;;  %v8139_v36 = vadd.f32 %v1912_v1, %v7771_v11 }
 0x3e3   :  { %v1961_v41 = vmul.f32 %v8132_v27, %v3975_v16  ;;  %v1960_v7 = vmul.f32 %v8135_v40, %v3974_v26  ;;  %v1762_v10 = vpop.f32.mrb[14].mxu0 }
 0x3e4   :  { %v1967_v30 = vmul.f32 %v8123_v9, %v1959_v4  ;;  %v8151_v11 = vadd.f32 %v1762_v10, %v1609_v15  ;;  %v1916_v34 = vpop.f32.mrb[14].mxu1  ;;  %v1764_v58 = vpop.f32.mrb[15].mxu0  ;;  %v1962_v39 = vmul.f32 %v8139_v36, %v3976_v37 }
 0x3e5   :  { %v1968_v60 = vmul.f32 %v8135_v40, %v1960_v7  ;;  %v1975_v29 = vadd.f32 %v1960_v7, %v1959_v4  ;;  %v8157_v55 = vadd.f32 %v1916_v34, %v1611_v20  ;;  %v1918_v56 = vpop.f32.mrb[15].mxu1  ;;  %v5394_v47 = vadd.f32 %v1764_v58, %v1610_v38  ;;  %v2005_v58 = vld [vmem:[%s9955_s7] sm:$0x1] }
 0x3e6   :  { %v1963_v57 = vmul.f32 %v8151_v11, %v3977_v2  ;;  %v5398_v0 = vadd.f32 %v1918_v56, %v1612_v45  ;;  %v1969_v6 = vmul.f32 %v8132_v27, %v1961_v41  ;;  %v1970_v12 = vmul.f32 %v8139_v36, %v1962_v39 }
 0x3e7   :  { %v1977_v21 = vadd.f32 %v1968_v60, %v1967_v30  ;;  %v1979_v8 = vadd.f32 %v1975_v29, %v1961_v41  ;;  %v1965_v31 = vmul.f32 %v8157_v55, %v3979_v53  ;;  %v1964_v46 = vmul.f32 %v5394_v47, %v3978_v54  ;;  %v2009_v29 = vld [vmem:[%s9956_s8] sm:$0x1] }
 0x3e8   :  { %v1971_v22 = vmul.f32 %v8151_v11, %v1963_v57  ;;  %v1966_v5 = vmul.f32 %v5398_v0, %v3980_v14 }
 0x3e9   :  { %v1981_v28 = vadd.f32 %v1977_v21, %v1969_v6  ;;  %v1983_v13 = vadd.f32 %v1979_v8, %v1962_v39  ;;  %v1972_v18 = vmul.f32 %v5394_v47, %v1964_v46  ;;  %v1976_v33 = vadd.f32 %v1964_v46, %v1963_v57 }
 0x3ea   :  { %v1973_v35 = vmul.f32 %v8157_v55, %v1965_v31  ;;  %v1974_v63 = vmul.f32 %v5398_v0, %v1966_v5 }
 0x3eb   :  { %v1985_v19 = vadd.f32 %v1981_v28, %v1970_v12  ;;  %v1978_v24 = vadd.f32 %v1972_v18, %v1971_v22  ;;  %v1980_v42 = vadd.f32 %v1976_v33, %v1965_v31  ;;  %v2457_v18 = vld [vmem:[%s9954_s10 + $0x468] sm:$0xff]  ;;  %v2455_v33 = vld [vmem:[%s9954_s10 + $0x458] sm:$0xff] }
 0x3ed   :  { %v1982_v23 = vadd.f32 %v1978_v24, %v1973_v35  ;;  %v1984_v59 = vadd.f32 %v1980_v42, %v1966_v5  ;;  %v2459_v5 = vld [vmem:[%s9954_s10 + $0x478] sm:$0xff] }
 0x3ef   :  { %v1986_v61 = vadd.f32 %v1982_v23, %v1974_v63  ;;  %v1987_v16 = vadd.f32 %v1984_v59, %v1983_v13  ;;  %v2444_v13 = vld [vmem:[%s9954_s10 + $0x400] sm:$0xff] }
 0x3f1   :  { %v1988_v26 = vrot.slane %v1987_v16, 4  ;;  %v1995_v37 = vadd.f32 %v1986_v61, %v1985_v19 }
 0x3f3   :  { %v1989_v17 = vadd.f32 %v1988_v26, %v1987_v16  ;;  %v1996_v62 = vrot.slane %v1995_v37, 4  ;;  %v2452_v26 = vld [vmem:[%s9954_s10 + $0x440] sm:$0xff] }
 0x3f5   :  { %v1990_v50 = vrot.slane %v1989_v17, 2  ;;  %v1997_v15 = vadd.f32 %v1996_v62, %v1995_v37  ;;  %v2456_v62 = vld [vmem:[%s9954_s10 + $0x460] sm:$0xff] }
 0x3f7   :  { %v1991_v20 = vadd.f32 %v1990_v50, %v1989_v17  ;;  %v1998_v1 = vrot.slane %v1997_v15, 2  ;;  %v2454_v50 = vld [vmem:[%s9954_s10 + $0x450] sm:$0xff] }
 0x3f9   :  { %v1992_v4 = vrot.slane %v1991_v20, 1  ;;  %v1999_v38 = vadd.f32 %v1998_v1, %v1997_v15  ;;  %v2458_v15 = vld [vmem:[%s9954_s10 + $0x470] sm:$0xff]  ;;  %v4947_v1 = vpack.c.bf16 %v2459_v5, %v2455_v33  ;;  %v2476_v33 = vld [vmem:[%s9954_s10 + $0x500] sm:$0xff] }
 0x3fa   :  { %v2480_v5 = vld [vmem:[%s9954_s10 + $0x520] sm:$0xff] }
 0x3fb   :  { %v1993_v45 = vadd.f32 %v1992_v4, %v1991_v20  ;;  %v2000_v41 = vrot.slane %v1999_v38, 1 }
 0x3fd   :  { %v1994_v7 = vmul.f32 0.016666668, %v1993_v45  ;;  %v2001_v10 = vadd.f32 %v2000_v41, %v1999_v38  ;;  %v2461_v38 = vld [vmem:[%s9954_s10 + $0x488] sm:$0xff]  ;;  %v2463_v41 = vld [vmem:[%s9954_s10 + $0x498] sm:$0xff] }
 0x3fe   :  { %v2465_v45 = vld [vmem:[%s9954_s10 + $0x4a8] sm:$0xff] }
 0x3ff   :  { %v2002_v2 = vmul.f32 0.016666668, %v2001_v10  ;;  %v2003_v30 = vmul.f32 %v1994_v7, %v1994_v7 }
 0x401   :  { %v2004_v34 = vsub.f32 %v2002_v2, %v2003_v30  ;;  %v4821_v2 = vpack.c.bf16 %v2456_v62, %v2452_v26  ;;  %v4949_v30 = vpack.c.bf16 %v2458_v15, %v2454_v50  ;;  %v2491_v26 = vld [vmem:[%s9954_s10 + $0x578] sm:$0xff]  ;;  %v4833_v62 = vpack.c.bf16 %v2480_v5, %v2476_v33  ;;  %v2484_v15 = vld [vmem:[%s9954_s10 + $0x540] sm:$0xff] }
 0x402   :  { %v2508_v5 = vld [vmem:[%s9954_s10 + $0x600] sm:$0xff] }
 0x403   :  { %v2006_v53 = vadd.f32 1e-05, %v2004_v34 }
 0x405   :  { %5444 = vrsqrt.f32 %v2006_v53  ;;  %v2460_v53 = vld [vmem:[%s9954_s10 + $0x480] sm:$0xff] }
 0x40f   :  { %v5445_v54 = vpop.eup %5444 }
 0x410   :  { %v2008_v60 = vmul.f32 %v5445_v54, %v2005_v58  ;;  %v2464_v58 = vld [vmem:[%s9954_s10 + $0x4a0] sm:$0xff]  ;;  %v2462_v54 = vld [vmem:[%s9954_s10 + $0x490] sm:$0xff] }
 0x412   :  { %v2010_v39 = vmul.f32 %v2008_v60, %v1994_v7  ;;  %v2015_v56 = vrot.slane %v2008_v60, %v6436_v51  ;;  %v2467_v7 = vld [vmem:[%s9954_s10 + $0x4b8] sm:$0xff]  ;;  %v2466_v60 = vld [vmem:[%s9954_s10 + $0x4b0] sm:$0xff] }
 0x414   :  { %v2011_v57 = vsub.f32 %v2009_v29, %v2010_v39  ;;  %v2023_v6 = vmul.f32 %v5398_v0, %v2015_v56  ;;  %v2017_v21 = vmul.f32 %v8135_v40, %v2015_v56  ;;  %v2016_v8 = vmul.f32 %v8123_v9, %v2015_v56  ;;  %v2448_v40 = vld [vmem:[%s9954_s10 + $0x420] sm:$0xff]  ;;  %v2453_v0 = vld [vmem:[%s9954_s10 + $0x448] sm:$0xff] }
 0x415   :  { %v2021_v14 = vmul.f32 %v5394_v47, %v2015_v56  ;;  %v2020_v22 = vmul.f32 %v8151_v11, %v2015_v56  ;;  %v2019_v31 = vmul.f32 %v8139_v36, %v2015_v56  ;;  %v2018_v46 = vmul.f32 %v8132_v27, %v2015_v56  ;;  %v2446_v27 = vld [vmem:[%s9954_s10 + $0x410] sm:$0xff]  ;;  %v2469_v29 = vld [vmem:[%s9954_s10 + $0x4c8] sm:$0xff] }
 0x416   :  { %v2027_v12 = vrot.slane %v2011_v57, %v6436_v51  ;;  %v2022_v28 = vmul.f32 %v8157_v55, %v2015_v56  ;;  %v2450_v36 = vld [vmem:[%s9954_s10 + $0x430] sm:$0xff]  ;;  %v4817_v59 = vpack.c.bf16 %v2448_v40, %v2444_v13  ;;  %v4819_v20 = vpack.c.bf16 %v2457_v18, %v2453_v0 }
 0x417   :  { %v4945_v61 = vpack.c.bf16 %v2450_v36, %v2446_v27  ;;  %v4823_v56 = vpack.c.bf16 %v2465_v45, %v2461_v38  ;;  %v4951_v57 = vpack.c.bf16 %v2467_v7, %v2463_v41  ;;  %v2470_v40 = vld [vmem:[%s9954_s10 + $0x4d0] sm:$0xff]  ;;  %v2481_v27 = vld [vmem:[%s9954_s10 + $0x528] sm:$0xff]  ;;  %v2479_v36 = vld [vmem:[%s9954_s10 + $0x518] sm:$0xff] }
 0x418   :  { %v8187_v9 = vadd.f32 %v2027_v12, %v2023_v6  ;;  %v2029_v47 = vadd.f32 %v2027_v12, %v2017_v21  ;;  %v2028_v11 = vadd.f32 %v2027_v12, %v2016_v8  ;;  %v2033_v55 = vadd.f32 %v2027_v12, %v2021_v14  ;;  %v2473_v6 = vld [vmem:[%s9954_s10 + $0x4e8] sm:$0xff]  ;;  %v2471_v21 = vld [vmem:[%s9954_s10 + $0x4d8] sm:$0xff]  ;;  %v2486_v38 = vld [vmem:[%s9954_s10 + $0x550] sm:$0xff] }
 0x419   :  { %v2032_v19 = vadd.f32 %v2027_v12, %v2020_v22  ;;  %v2031_v35 = vadd.f32 %v2027_v12, %v2019_v31  ;;  %v8207_v24 = vadd.f32 %v2027_v12, %v2018_v46  ;;  %v8209_v42 = vadd.f32 %v2027_v12, %v2022_v28  ;;  %v2475_v8 = vld [vmem:[%s9954_s10 + $0x4f8] sm:$0xff]  ;;  %v2468_v46 = vld [vmem:[%s9954_s10 + $0x4c0] sm:$0xff]  ;;  %v2490_v45 = vld [vmem:[%s9954_s10 + $0x570] sm:$0xff] }
 0x41a   :  { %vm2037_vm12 = vcmp.gt.f32.partialorder %v2029_v47, 0.0  ;;  %v2045_v63 = vmul.f32 0.2, %v2029_v47  ;;  %vm2036_vm13 = vcmp.gt.f32.partialorder %v2028_v11, 0.0  ;;  %v2044_v23 = vmul.f32 0.2, %v2028_v11 }
 0x41b   :  { %v2049_v16 = vmul.f32 0.2, %v2033_v55  ;;  %vm2041_vm14 = vcmp.gt.f32.partialorder %v2033_v55, 0.0  ;;  %v2048_v4 = vmul.f32 0.2, %v2032_v19  ;;  %vm2040_vm15 = vcmp.gt.f32.partialorder %v2032_v19, 0.0 }
 0x41c   :  { %v8214_v37 = vsel %vm2037_vm12, %v2029_v47, %v2045_v63  ;;  %v8216_v17 = vsel %vm2036_vm13, %v2028_v11, %v2044_v23  ;;  %v2047_v34 = vmul.f32 0.2, %v2031_v35  ;;  %vm2039_vm0 = vcmp.gt.f32.partialorder %v2031_v35, 0.0  ;;  %v2472_v12 = vld [vmem:[%s9954_s10 + $0x4e0] sm:$0xff]  ;;  %v2474_v47 = vld [vmem:[%s9954_s10 + $0x4f0] sm:$0xff]  ;;  %v2477_v11 = vld [vmem:[%s9954_s10 + $0x508] sm:$0xff] }
 0x41d   :  { %2636 = vmatprep.mubr.f32.mxu0 %v8214_v37  ;;  %2790 = vmatprep.mubr.f32.mxu1 %v8214_v37  ;;  %v8244_v10 = vsel %vm2041_vm14, %v2033_v55, %v2049_v16  ;;  %v8264_v39 = vsel %vm2040_vm15, %v2032_v19, %v2048_v4  ;;  %v4825_v22 = vpack.c.bf16 %v2464_v58, %v2460_v53  ;;  %v2483_v55 = vld [vmem:[%s9954_s10 + $0x538] sm:$0xff]  ;;  %v2478_v63 = vld [vmem:[%s9954_s10 + $0x510] sm:$0xff]  ;;  %v2493_v41 = vld [vmem:[%s9954_s10 + $0x588] sm:$0xff]  ;;  %vm2038_vm2 = vcmp.gt.f32.partialorder %v8207_v24, 0.0 }
 0x41e   :  { %2637 = vmatmul.mubr.f32.vlgmr.msra.gmra.mrb[16].mxu0 %v8216_v17  ;;  %2791 = vmatmul.mubr.f32.vlgmr.msra.gmra.mrb[16].mxu1 %v8216_v17  ;;  %v8278_v14 = vsel %vm2039_vm0, %v2031_v35, %v2047_v34  ;;  %v4953_v31 = vpack.c.bf16 %v2466_v60, %v2462_v54  ;;  %v4827_v28 = vpack.c.bf16 %v2473_v6, %v2469_v29  ;;  %v2482_v23 = vld [vmem:[%s9954_s10 + $0x530] sm:$0xff]  ;;  %v2487_v16 = vld [vmem:[%s9954_s10 + $0x558] sm:$0xff]  ;;  %v2497_v7 = vld [vmem:[%s9954_s10 + $0x5a8] sm:$0xff]  ;;  %vm2043_vm3 = vcmp.gt.f32.partialorder %v8187_v9, 0.0 }
 0x41f   :  { %4818 = vmatpush1.bf16.msra.mxu0 %v4817_v59  ;;  %4946 = vmatpush1.bf16.msra.mxu1 %v4945_v61  ;;  %v4955_v13 = vpack.c.bf16 %v2475_v8, %v2471_v21  ;;  %v4829_v0 = vpack.c.bf16 %v2472_v12, %v2468_v46  ;;  %v4957_v18 = vpack.c.bf16 %v2474_v47, %v2470_v40  ;;  %v2485_v59 = vld [vmem:[%s9954_s10 + $0x548] sm:$0xff]  ;;  %v2492_v58 = vld [vmem:[%s9954_s10 + $0x580] sm:$0xff]  ;;  %v2503_v8 = vld [vmem:[%s9954_s10 + $0x5d8] sm:$0xff]  ;;  %vm2042_vm4 = vcmp.gt.f32.partialorder %v8209_v42, 0.0 }
 0x420   :  { %2642 = vmatprep.mubr.f32.mxu0 %v8244_v10  ;;  %2796 = vmatprep.mubr.f32.mxu1 %v8244_v10  ;;  %v4831_v19 = vpack.c.bf16 %v2481_v27, %v2477_v11  ;;  %v4959_v35 = vpack.c.bf16 %v2483_v55, %v2479_v36  ;;  %v2489_v61 = vld [vmem:[%s9954_s10 + $0x568] sm:$0xff]  ;;  %v4961_v50 = vpack.c.bf16 %v2482_v23, %v2478_v63  ;;  %v2496_v54 = vld [vmem:[%s9954_s10 + $0x5a0] sm:$0xff]  ;;  %v2502_v47 = vld [vmem:[%s9954_s10 + $0x5d0] sm:$0xff] }
 0x421   :  { %4820 = vmatprep.subr.bf16.mxu0 %v4819_v20  ;;  %4948 = vmatprep.subr.bf16.mxu1 %v4947_v1  ;;  %v2488_v20 = vld [vmem:[%s9954_s10 + $0x560] sm:$0xff]  ;;  %v4835_v1 = vpack.c.bf16 %v2489_v61, %v2485_v59  ;;  %v4963_v4 = vpack.c.bf16 %v2491_v26, %v2487_v16  ;;  %v4965_v53 = vpack.c.bf16 %v2490_v45, %v2486_v38  ;;  %v2501_v6 = vld [vmem:[%s9954_s10 + $0x5c8] sm:$0xff]  ;;  %v2506_v11 = vld [vmem:[%s9954_s10 + $0x5f0] sm:$0xff] }
 0x422   :  { %2643 = vmatmul.mubr.f32.gmra.mrb[18].mxu0 %v8264_v39  ;;  %2797 = vmatmul.mubr.f32.gmra.mrb[18].mxu1 %v8264_v39  ;;  %v4837_v34 = vpack.c.bf16 %v2488_v20, %v2484_v15  ;;  %v4839_v60 = vpack.c.bf16 %v2497_v7, %v2493_v41  ;;  %v2505_v21 = vld [vmem:[%s9954_s10 + $0x5e8] sm:$0xff]  ;;  %v2500_v12 = vld [vmem:[%s9954_s10 + $0x5c0] sm:$0xff]  ;;  %v2511_v55 = vld [vmem:[%s9954_s10 + $0x618] sm:$0xff]  ;;  %v4973_v33 = vpack.c.bf16 %v2506_v11, %v2502_v47 }
 0x423   :  { %4822 = vmatpush1.bf16.msra.mxu0 %v4821_v2  ;;  %4950 = vmatpush1.bf16.msra.mxu1 %v4949_v30  ;;  %v2495_v2 = vld [vmem:[%s9954_s10 + $0x598] sm:$0xff]  ;;  %v2509_v27 = vld [vmem:[%s9954_s10 + $0x608] sm:$0xff]  ;;  %v2510_v23 = vld [vmem:[%s9954_s10 + $0x610] sm:$0xff] }
 0x424   :  { %2713 = vmatprep.mubr.f32.mxu0 %v8278_v14  ;;  %2867 = vmatprep.mubr.f32.mxu1 %v8278_v14  ;;  %v2499_v30 = vld [vmem:[%s9954_s10 + $0x5b8] sm:$0xff]  ;;  %v2513_v36 = vld [vmem:[%s9954_s10 + $0x628] sm:$0xff]  ;;  %v2514_v59 = vld [vmem:[%s9954_s10 + $0x630] sm:$0xff] }
 0x425   :  { %4824 = vmatprep.subr.bf16.mxu0 %v4823_v56  ;;  %4952 = vmatprep.subr.bf16.mxu1 %v4951_v57  ;;  %v4967_v29 = vpack.c.bf16 %v2499_v30, %v2495_v2  ;;  %v2494_v56 = vld [vmem:[%s9954_s10 + $0x590] sm:$0xff]  ;;  %v2517_v61 = vld [vmem:[%s9954_s10 + $0x648] sm:$0xff]  ;;  %v2519_v26 = vld [vmem:[%s9954_s10 + $0x658] sm:$0xff]  ;;  %v4977_v15 = vpack.c.bf16 %v2514_v59, %v2510_v23 }
 0x426   :  { %v2498_v57 = vld [vmem:[%s9954_s10 + $0x5b0] sm:$0xff]  ;;  %v2521_v16 = vld [vmem:[%s9954_s10 + $0x668] sm:$0xff]  ;;  %v2516_v20 = vld [vmem:[%s9954_s10 + $0x640] sm:$0xff] }
 0x427   :  { %4826 = vmatpush1.bf16.msra.mxu0 %v4825_v22  ;;  %4954 = vmatpush1.bf16.msra.mxu1 %v4953_v31  ;;  %v2507_v22 = vld [vmem:[%s9954_s10 + $0x5f8] sm:$0xff]  ;;  %v4841_v31 = vpack.c.bf16 %v2496_v54, %v2492_v58  ;;  %v4969_v46 = vpack.c.bf16 %v2498_v57, %v2494_v56  ;;  %v2518_v45 = vld [vmem:[%s9954_s10 + $0x650] sm:$0xff]  ;;  %v2525_v7 = vld [vmem:[%s9954_s10 + $0x688] sm:$0xff] }
 0x428   :  { %4828 = vmatprep.subr.bf16.mxu0 %v4827_v28  ;;  %4956 = vmatprep.subr.bf16.mxu1 %v4955_v13  ;;  %v2504_v28 = vld [vmem:[%s9954_s10 + $0x5e0] sm:$0xff]  ;;  %v4843_v13 = vpack.c.bf16 %v2505_v21, %v2501_v6  ;;  %v4971_v40 = vpack.c.bf16 %v2507_v22, %v2503_v8  ;;  %v2522_v41 = vld [vmem:[%s9954_s10 + $0x670] sm:$0xff]  ;;  %v2529_v2 = vld [vmem:[%s9954_s10 + $0x6a8] sm:$0xff] }
 0x429   :  { %v2527_v30 = vld [vmem:[%s9954_s10 + $0x698] sm:$0xff]  ;;  %v4981_v58 = vpack.c.bf16 %v2522_v41, %v2518_v45  ;;  %v2524_v54 = vld [vmem:[%s9954_s10 + $0x680] sm:$0xff]  ;;  %v2526_v57 = vld [vmem:[%s9954_s10 + $0x690] sm:$0xff] }
 0x42a   :  { %v2530_v6 = vld [vmem:[%s9954_s10 + $0x6b0] sm:$0xff]  ;;  %v2533_v21 = vld [vmem:[%s9954_s10 + $0x6c8] sm:$0xff]  ;;  %v2535_v22 = vld [vmem:[%s9954_s10 + $0x6d8] sm:$0xff] }
 0x42b   :  { %4830 = vmatpush1.bf16.msra.mxu0 %v4829_v0  ;;  %4958 = vmatpush1.bf16.msra.mxu1 %v4957_v18  ;;  %v2515_v0 = vld [vmem:[%s9954_s10 + $0x638] sm:$0xff]  ;;  %v4845_v18 = vpack.c.bf16 %v2504_v28, %v2500_v12  ;;  %v2537_v8 = vld [vmem:[%s9954_s10 + $0x6e8] sm:$0xff]  ;;  %v4985_v12 = vpack.c.bf16 %v2530_v6, %v2526_v57  ;;  %v2532_v28 = vld [vmem:[%s9954_s10 + $0x6c0] sm:$0xff] }
 0x42c   :  { %4832 = vmatprep.subr.bf16.mxu0 %v4831_v19  ;;  %4960 = vmatprep.subr.bf16.mxu1 %v4959_v35  ;;  %v2512_v19 = vld [vmem:[%s9954_s10 + $0x620] sm:$0xff]  ;;  %v4847_v35 = vpack.c.bf16 %v2513_v36, %v2509_v27  ;;  %v4975_v63 = vpack.c.bf16 %v2515_v0, %v2511_v55  ;;  %v2534_v11 = vld [vmem:[%s9954_s10 + $0x6d0] sm:$0xff]  ;;  %v2541_v36 = vld [vmem:[%s9954_s10 + $0x708] sm:$0xff] }
 0x42d   :  { %v2538_v27 = vld [vmem:[%s9954_s10 + $0x6f0] sm:$0xff]  ;;  %v2545_v55 = vld [vmem:[%s9954_s10 + $0x728] sm:$0xff]  ;;  %v2543_v0 = vld [vmem:[%s9954_s10 + $0x718] sm:$0xff] }
 0x42e   :  { %v2542_v59 = vld [vmem:[%s9954_s10 + $0x710] sm:$0xff] }
 0x42f   :  { %4834 = vmatpush1.bf16.msra.mxu0 %v4833_v62  ;;  %4962 = vmatpush1.bf16.msra.mxu1 %v4961_v50  ;;  %v2523_v62 = vld [vmem:[%s9954_s10 + $0x678] sm:$0xff]  ;;  %v4849_v50 = vpack.c.bf16 %v2512_v19, %v2508_v5  ;;  %v4989_v5 = vpack.c.bf16 %v2538_v27, %v2534_v11  ;;  %v2540_v19 = vld [vmem:[%s9954_s10 + $0x700] sm:$0xff]  ;;  %v2550_v41 = vld [vmem:[%s9954_s10 + $0x750] sm:$0xff] }
 0x430   :  { %4836 = vmatprep.subr.bf16.mxu0 %v4835_v1  ;;  %4964 = vmatprep.subr.bf16.mxu1 %v4963_v4  ;;  %v2520_v1 = vld [vmem:[%s9954_s10 + $0x660] sm:$0xff]  ;;  %v4851_v4 = vpack.c.bf16 %v2521_v16, %v2517_v61  ;;  %v4979_v38 = vpack.c.bf16 %v2523_v62, %v2519_v26  ;;  %v2546_v61 = vld [vmem:[%s9954_s10 + $0x730] sm:$0xff]  ;;  %v2549_v16 = vld [vmem:[%s9954_s10 + $0x748] sm:$0xff] }
 0x431   :  { %v2553_v26 = vld [vmem:[%s9954_s10 + $0x768] sm:$0xff]  ;;  %v2551_v62 = vld [vmem:[%s9954_s10 + $0x758] sm:$0xff]  ;;  %v2558_v6 = vld [vmem:[%s9954_s10 + $0x790] sm:$0xff] }
 0x432   :  { %v2566_v27 = vld [vmem:[%s9954_s10 + $0x7d0] sm:$0xff] }
 0x433   :  { %4838 = vmatpush1.bf16.msra.mxu0 %v4837_v34  ;;  %4966 = vmatpush1.bf16.msra.mxu1 %v4965_v53  ;;  %v2531_v34 = vld [vmem:[%s9954_s10 + $0x6b8] sm:$0xff]  ;;  %v4853_v53 = vpack.c.bf16 %v2520_v1, %v2516_v20  ;;  %v4993_v20 = vpack.c.bf16 %v2546_v61, %v2542_v59  ;;  %v2548_v1 = vld [vmem:[%s9954_s10 + $0x740] sm:$0xff]  ;;  %v2046_v61 = vmul.f32 0.2, %v8207_v24 }
 0x434   :  { %4840 = vmatprep.subr.bf16.mxu0 %v4839_v60  ;;  %4968 = vmatprep.subr.bf16.mxu1 %v4967_v29  ;;  %v2528_v60 = vld [vmem:[%s9954_s10 + $0x6a0] sm:$0xff]  ;;  %v4855_v29 = vpack.c.bf16 %v2529_v2, %v2525_v7  ;;  %v4983_v56 = vpack.c.bf16 %v2531_v34, %v2527_v30  ;;  %v2554_v7 = vld [vmem:[%s9954_s10 + $0x770] sm:$0xff]  ;;  %v2557_v2 = vld [vmem:[%s9954_s10 + $0x788] sm:$0xff] }
 0x435   :  { %v2561_v30 = vld [vmem:[%s9954_s10 + $0x7a8] sm:$0xff]  ;;  %v2559_v34 = vld [vmem:[%s9954_s10 + $0x798] sm:$0xff]  ;;  %v2064_v59 = vld [vmem:[%s9957_s9 + $0x20] sm:$0xff] }
 0x437   :  { %4842 = vmatpush1.bf16.msra.mxu0 %v4841_v31  ;;  %4970 = vmatpush1.bf16.msra.mxu1 %v4969_v46  ;;  %v2539_v31 = vld [vmem:[%s9954_s10 + $0x6f8] sm:$0xff]  ;;  %v4857_v46 = vpack.c.bf16 %v2528_v60, %v2524_v54  ;;  %v4997_v54 = vpack.c.bf16 %v2554_v7, %v2550_v41  ;;  %v2556_v60 = vld [vmem:[%s9954_s10 + $0x780] sm:$0xff]  ;;  %v8629_v7 = vsel %vm2038_vm2, %v8207_v24, %v2046_v61 }
 0x438   :  { %4844 = vmatprep.subr.bf16.mxu0 %v4843_v13  ;;  %4972 = vmatprep.subr.bf16.mxu1 %v4971_v40  ;;  %v2536_v13 = vld [vmem:[%s9954_s10 + $0x6e0] sm:$0xff]  ;;  %v4859_v40 = vpack.c.bf16 %v2537_v8, %v2533_v21  ;;  %v4987_v47 = vpack.c.bf16 %v2539_v31, %v2535_v22  ;;  %v2562_v21 = vld [vmem:[%s9954_s10 + $0x7b0] sm:$0xff]  ;;  %v2565_v8 = vld [vmem:[%s9954_s10 + $0x7c8] sm:$0xff] }
 0x439   :  { %v2569_v22 = vld [vmem:[%s9954_s10 + $0x7e8] sm:$0xff]  ;;  %v2567_v31 = vld [vmem:[%s9954_s10 + $0x7d8] sm:$0xff]  ;;  %v2072_v41 = vld [vmem:[%s9957_s9 + $0x60] sm:$0xff] }
 0x43a   :  { %v2096_v61 = vld [vmem:[%s9957_s9 + $0x120] sm:$0xff] }
 0x43b   :  { %4846 = vmatpush1.bf16.msra.mxu0 %v4845_v18  ;;  %4974 = vmatpush1.bf16.msra.mxu1 %v4973_v33  ;;  %v2547_v18 = vld [vmem:[%s9954_s10 + $0x738] sm:$0xff]  ;;  %v4861_v33 = vpack.c.bf16 %v2536_v13, %v2532_v28  ;;  %v5001_v28 = vpack.c.bf16 %v2562_v21, %v2558_v6  ;;  %v2564_v13 = vld [vmem:[%s9954_s10 + $0x7c0] sm:$0xff] }
 0x43c   :  { %4848 = vmatprep.subr.bf16.mxu0 %v4847_v35  ;;  %4976 = vmatprep.subr.bf16.mxu1 %v4975_v63  ;;  %v2544_v35 = vld [vmem:[%s9954_s10 + $0x720] sm:$0xff]  ;;  %v4863_v63 = vpack.c.bf16 %v2545_v55, %v2541_v36  ;;  %v4991_v23 = vpack.c.bf16 %v2547_v18, %v2543_v0  ;;  %v2570_v36 = vld [vmem:[%s9954_s10 + $0x7f0] sm:$0xff]  ;;  %v2061_v55 = vld [vmem:[%s9957_s9 + $0x8] sm:$0xff] }
 0x43d   :  { %v2065_v0 = vld [vmem:[%s9957_s9 + $0x28] sm:$0xff]  ;;  %v2063_v18 = vld [vmem:[%s9957_s9 + $0x18] sm:$0xff]  ;;  %v2076_v6 = vld [vmem:[%s9957_s9 + $0x80] sm:$0xff] }
 0x43e   :  { %v2080_v21 = vld [vmem:[%s9957_s9 + $0xa0] sm:$0xff] }
 0x43f   :  { %4850 = vmatpush1.bf16.msra.mxu0 %v4849_v50  ;;  %4978 = vmatpush1.bf16.msra.mxu1 %v4977_v15  ;;  %v2555_v50 = vld [vmem:[%s9954_s10 + $0x778] sm:$0xff]  ;;  %v4865_v15 = vpack.c.bf16 %v2544_v35, %v2540_v19  ;;  %v5005_v19 = vpack.c.bf16 %v2570_v36, %v2566_v27  ;;  %v5007_v35 = vpack.c.bf16 %v2065_v0, %v2061_v55  ;;  %v2084_v27 = vld [vmem:[%s9957_s9 + $0xc0] sm:$0xff] }
 0x440   :  { %4852 = vmatprep.subr.bf16.mxu0 %v4851_v4  ;;  %4980 = vmatprep.subr.bf16.mxu1 %v4979_v38  ;;  %v2552_v4 = vld [vmem:[%s9954_s10 + $0x760] sm:$0xff]  ;;  %v4867_v38 = vpack.c.bf16 %v2553_v26, %v2549_v16  ;;  %v4995_v45 = vpack.c.bf16 %v2555_v50, %v2551_v62  ;;  %v2062_v16 = vld [vmem:[%s9957_s9 + $0x10] sm:$0xff]  ;;  %v2069_v62 = vld [vmem:[%s9957_s9 + $0x48] sm:$0xff]  ;;  %v2051_v50 = vmul.f32 0.2, %v8187_v9 }
 0x441   :  { %v2066_v26 = vld [vmem:[%s9957_s9 + $0x30] sm:$0xff]  ;;  %v2088_v36 = vld [vmem:[%s9957_s9 + $0xe0] sm:$0xff] }
 0x442   :  { %v8646_v24 = vsel %vm2043_vm3, %v8187_v9, %v2051_v50  ;;  %v2098_v50 = vld [vmem:[%s9957_s9 + $0x130] sm:$0xff] }
 0x443   :  { %4854 = vmatpush1.bf16.msra.mxu0 %v4853_v53  ;;  %4982 = vmatpush1.bf16.msra.mxu1 %v4981_v58  ;;  %v2563_v53 = vld [vmem:[%s9954_s10 + $0x7b8] sm:$0xff]  ;;  %v4869_v58 = vpack.c.bf16 %v2552_v4, %v2548_v1 }
 0x444   :  { %4856 = vmatprep.subr.bf16.mxu0 %v4855_v29  ;;  %4984 = vmatprep.subr.bf16.mxu1 %v4983_v56  ;;  %v2560_v29 = vld [vmem:[%s9954_s10 + $0x7a0] sm:$0xff]  ;;  %v4871_v56 = vpack.c.bf16 %v2561_v30, %v2557_v2  ;;  %v4999_v57 = vpack.c.bf16 %v2563_v53, %v2559_v34  ;;  %v2075_v1 = vld [vmem:[%s9957_s9 + $0x78] sm:$0xff]  ;;  %v2050_v2 = vmul.f32 0.2, %v8209_v42  ;;  %v2070_v53 = vld [vmem:[%s9957_s9 + $0x50] sm:$0xff] }
 0x447   :  { %4858 = vmatpush1.bf16.msra.mxu0 %v4857_v46  ;;  %4986 = vmatpush1.bf16.msra.mxu1 %v4985_v12  ;;  %v2571_v46 = vld [vmem:[%s9954_s10 + $0x7f8] sm:$0xff]  ;;  %v4873_v12 = vpack.c.bf16 %v2560_v29, %v2556_v60  ;;  %v2081_v60 = vld [vmem:[%s9957_s9 + $0xa8] sm:$0xff] }
 0x448   :  { %4860 = vmatprep.subr.bf16.mxu0 %v4859_v40  ;;  %4988 = vmatprep.subr.bf16.mxu1 %v4987_v47  ;;  %v2568_v40 = vld [vmem:[%s9954_s10 + $0x7e0] sm:$0xff]  ;;  %v4875_v47 = vpack.c.bf16 %v2569_v22, %v2565_v8  ;;  %v5003_v11 = vpack.c.bf16 %v2571_v46, %v2567_v31  ;;  %v2079_v29 = vld [vmem:[%s9957_s9 + $0x98] sm:$0xff]  ;;  %v8667_v8 = vsel %vm2042_vm4, %v8209_v42, %v2050_v2  ;;  %v2078_v46 = vld [vmem:[%s9957_s9 + $0x90] sm:$0xff] }
 0x449   :  { %v2089_v42 = vld [vmem:[%s9957_s9 + $0xe8] sm:$0xff]  ;;  %v2104_v2 = vld [vmem:[%s9957_s9 + $0x160] sm:$0xff] }
 0x44b   :  { %4862 = vmatpush1.bf16.msra.mxu0 %v4861_v33  ;;  %4990 = vmatpush1.bf16.msra.mxu1 %v4989_v5  ;;  %v2067_v33 = vld [vmem:[%s9957_s9 + $0x38] sm:$0xff]  ;;  %v4877_v5 = vpack.c.bf16 %v2568_v40, %v2564_v13 }
 0x44c   :  { %4864 = vmatprep.subr.bf16.mxu0 %v4863_v63  ;;  %4992 = vmatprep.subr.bf16.mxu1 %v4991_v23  ;;  %v5135_v63 = vpack.c.bf16 %v2067_v33, %v2063_v18  ;;  %v2060_v23 = vld [vmem:[%s9957_s9] sm:$0xff]  ;;  %v2087_v13 = vld [vmem:[%s9957_s9 + $0xd8] sm:$0xff]  ;;  %v2090_v18 = vld [vmem:[%s9957_s9 + $0xf0] sm:$0xff] }
 0x44d   :  { %v5009_v4 = vpack.c.bf16 %v2064_v59, %v2060_v23  ;;  %v2091_v40 = vld [vmem:[%s9957_s9 + $0xf8] sm:$0xff]  ;;  %v2093_v33 = vld [vmem:[%s9957_s9 + $0x108] sm:$0xff]  ;;  %v2092_v59 = vld [vmem:[%s9957_s9 + $0x100] sm:$0xff] }
 0x44e   :  { %v5147_v0 = vpack.c.bf16 %v2091_v40, %v2087_v13  ;;  %v2119_v13 = vld [vmem:[%s9957_s9 + $0x1d8] sm:$0xff] }
 0x44f   :  { %4866 = vmatpush1.bf16.msra.mxu0 %v4865_v15  ;;  %4994 = vmatpush1.bf16.msra.mxu1 %v4993_v20  ;;  %v2073_v15 = vld [vmem:[%s9957_s9 + $0x68] sm:$0xff]  ;;  %v2071_v20 = vld [vmem:[%s9957_s9 + $0x58] sm:$0xff] }
 0x450   :  { %4868 = vmatprep.subr.bf16.mxu0 %v4867_v38  ;;  %4996 = vmatprep.subr.bf16.mxu1 %v4995_v45  ;;  %v5137_v38 = vpack.c.bf16 %v2066_v26, %v2062_v16  ;;  %v2068_v45 = vld [vmem:[%s9957_s9 + $0x40] sm:$0xff]  ;;  %v5011_v30 = vpack.c.bf16 %v2073_v15, %v2069_v62  ;;  %v5139_v34 = vpack.c.bf16 %v2075_v1, %v2071_v20  ;;  %v2094_v62 = vld [vmem:[%s9957_s9 + $0x110] sm:$0xff]  ;;  %v2101_v15 = vld [vmem:[%s9957_s9 + $0x148] sm:$0xff] }
 0x451   :  { %v5013_v9 = vpack.c.bf16 %v2072_v41, %v2068_v45  ;;  %v2105_v20 = vld [vmem:[%s9957_s9 + $0x168] sm:$0xff]  ;;  %v2103_v1 = vld [vmem:[%s9957_s9 + $0x158] sm:$0xff]  ;;  %v5153_v45 = vpack.c.bf16 %v2098_v50, %v2094_v62  ;;  %v2100_v41 = vld [vmem:[%s9957_s9 + $0x140] sm:$0xff] }
 0x452   :  { %v2123_v40 = vld [vmem:[%s9957_s9 + $0x1f8] sm:$0xff]  ;;  %v2126_v62 = vld [vmem:[%s9957_s9 + $0x210] sm:$0xff] }
 0x453   :  { %4870 = vmatpush1.bf16.msra.mxu0 %v4869_v58  ;;  %4998 = vmatpush1.bf16.msra.mxu1 %v4997_v54  ;;  %v2074_v58 = vld [vmem:[%s9957_s9 + $0x70] sm:$0xff]  ;;  %v2077_v54 = vld [vmem:[%s9957_s9 + $0x88] sm:$0xff] }
 0x454   :  { %4872 = vmatprep.subr.bf16.mxu0 %v4871_v56  ;;  %5000 = vmatprep.subr.bf16.mxu1 %v4999_v57  ;;  %v2083_v56 = vld [vmem:[%s9957_s9 + $0xb8] sm:$0xff]  ;;  %v5141_v57 = vpack.c.bf16 %v2074_v58, %v2070_v53  ;;  %v5015_v22 = vpack.c.bf16 %v2081_v60, %v2077_v54  ;;  %v2102_v53 = vld [vmem:[%s9957_s9 + $0x150] sm:$0xff]  ;;  %v2109_v54 = vld [vmem:[%s9957_s9 + $0x188] sm:$0xff] }
 0x455   :  { %v5143_v31 = vpack.c.bf16 %v2083_v56, %v2079_v29  ;;  %v2106_v58 = vld [vmem:[%s9957_s9 + $0x170] sm:$0xff]  ;;  %v2113_v60 = vld [vmem:[%s9957_s9 + $0x1a8] sm:$0xff]  ;;  %v2111_v29 = vld [vmem:[%s9957_s9 + $0x198] sm:$0xff] }
 0x456   :  { %v2115_v56 = vld [vmem:[%s9957_s9 + $0x1b8] sm:$0xff]  ;;  %v2130_v50 = vld [vmem:[%s9957_s9 + $0x230] sm:$0xff] }
 0x457   :  { %4874 = vmatpush1.bf16.msra.mxu0 %v4873_v12  ;;  %5002 = vmatpush1.bf16.msra.mxu1 %v5001_v28  ;;  %v2082_v12 = vld [vmem:[%s9957_s9 + $0xb0] sm:$0xff]  ;;  %v2085_v28 = vld [vmem:[%s9957_s9 + $0xc8] sm:$0xff] }
 0x458   :  { %4876 = vmatprep.subr.bf16.mxu0 %v4875_v47  ;;  %5004 = vmatprep.subr.bf16.mxu1 %v5003_v11  ;;  %v5017_v47 = vpack.c.bf16 %v2080_v21, %v2076_v6  ;;  %v5145_v11 = vpack.c.bf16 %v2082_v12, %v2078_v46  ;;  %v5019_v55 = vpack.c.bf16 %v2089_v42, %v2085_v28  ;;  %v2108_v6 = vld [vmem:[%s9957_s9 + $0x180] sm:$0xff]  ;;  %v2110_v46 = vld [vmem:[%s9957_s9 + $0x190] sm:$0xff]  ;;  %v2117_v28 = vld [vmem:[%s9957_s9 + $0x1c8] sm:$0xff] }
 0x459   :  { %v2112_v21 = vld [vmem:[%s9957_s9 + $0x1a0] sm:$0xff]  ;;  %v2114_v12 = vld [vmem:[%s9957_s9 + $0x1b0] sm:$0xff]  ;;  %v2121_v42 = vld [vmem:[%s9957_s9 + $0x1e8] sm:$0xff] }
 0x45b   :  { %4878 = vmatpush1.bf16.msra.mxu0 %v4877_v5  ;;  %5006 = vmatpush1.bf16.msra.mxu1 %v5005_v19  ;;  %v2097_v5 = vld [vmem:[%s9957_s9 + $0x128] sm:$0xff]  ;;  %v2095_v19 = vld [vmem:[%s9957_s9 + $0x118] sm:$0xff] }
 0x45c   :  { %5008 = vmatprep.subr.bf16.mxu0 %v5007_v35  ;;  %5136 = vmatprep.subr.bf16.mxu1 %v5135_v63  ;;  %v2099_v35 = vld [vmem:[%s9957_s9 + $0x138] sm:$0xff]  ;;  %v5021_v63 = vpack.c.bf16 %v2088_v36, %v2084_v27  ;;  %v5023_v16 = vpack.c.bf16 %v2097_v5, %v2093_v33  ;;  %v2116_v27 = vld [vmem:[%s9957_s9 + $0x1c0] sm:$0xff]  ;;  %v2125_v33 = vld [vmem:[%s9957_s9 + $0x208] sm:$0xff] }
 0x45d   :  { %v5151_v26 = vpack.c.bf16 %v2099_v35, %v2095_v19  ;;  %v2120_v36 = vld [vmem:[%s9957_s9 + $0x1e0] sm:$0xff]  ;;  %v2129_v5 = vld [vmem:[%s9957_s9 + $0x228] sm:$0xff]  ;;  %v2127_v19 = vld [vmem:[%s9957_s9 + $0x218] sm:$0xff] }
 0x45e   :  { %2714 = vmatmul.mubr.f32.vlgmr.msra.gmra.mrb[16].mxu0 %v8629_v7  ;;  %2868 = vmatmul.mubr.f32.vlgmr.msra.gmra.mrb[16].mxu1 %v8629_v7  ;;  %v2131_v35 = vld [vmem:[%s9957_s9 + $0x238] sm:$0xff] }
 0x45f   :  { %2719 = vmatprep.mubr.f32.mxu0 %v8646_v24  ;;  %2873 = vmatprep.mubr.f32.mxu1 %v8646_v24 }
 0x460   :  { %5010 = vmatpush1.bf16.msra.mxu0 %v5009_v4  ;;  %5138 = vmatpush1.bf16.msra.mxu1 %v5137_v38  ;;  %v2107_v4 = vld [vmem:[%s9957_s9 + $0x178] sm:$0xff]  ;;  %v5025_v38 = vpack.c.bf16 %v2096_v61, %v2092_v59  ;;  %v2124_v59 = vld [vmem:[%s9957_s9 + $0x200] sm:$0xff] }
 0x461   :  { %5012 = vmatprep.subr.bf16.mxu0 %v5011_v30  ;;  %5140 = vmatprep.subr.bf16.mxu1 %v5139_v34  ;;  %v5027_v30 = vpack.c.bf16 %v2105_v20, %v2101_v15  ;;  %v5155_v34 = vpack.c.bf16 %v2107_v4, %v2103_v1  ;;  %v2128_v61 = vld [vmem:[%s9957_s9 + $0x220] sm:$0xff]  ;;  %v2133_v15 = vld [vmem:[%s9957_s9 + $0x248] sm:$0xff]  ;;  %v2135_v1 = vld [vmem:[%s9957_s9 + $0x258] sm:$0xff] }
 0x462   :  { %2720 = vmatmul.mubr.f32.gmra.mrb[18].mxu0 %v8667_v8  ;;  %2874 = vmatmul.mubr.f32.gmra.mrb[18].mxu1 %v8667_v8  ;;  %v2137_v20 = vld [vmem:[%s9957_s9 + $0x268] sm:$0xff]  ;;  %v2139_v4 = vld [vmem:[%s9957_s9 + $0x278] sm:$0xff] }
 0x463   :  { %2976 = vmatprep.mubr.f32.mxu0 %v8214_v37  ;;  %3130 = vmatprep.mubr.f32.mxu1 %v8214_v37  ;;  %v2086_v37 = vld [vmem:[%s9957_s9 + $0xd0] sm:$0xff] }
 0x464   :  { %5014 = vmatpush1.bf16.msra.mxu0 %v5013_v9  ;;  %5142 = vmatpush1.bf16.msra.mxu1 %v5141_v57  ;;  %v5149_v23 = vpack.c.bf16 %v2090_v18, %v2086_v37  ;;  %v5029_v9 = vpack.c.bf16 %v2104_v2, %v2100_v41  ;;  %v5157_v57 = vpack.c.bf16 %v2106_v58, %v2102_v53  ;;  %v2118_v37 = vld [vmem:[%s9957_s9 + $0x1d0] sm:$0xff]  ;;  %v2132_v41 = vld [vmem:[%s9957_s9 + $0x240] sm:$0xff] }
 0x465   :  { %5016 = vmatprep.subr.bf16.mxu0 %v5015_v22  ;;  %5144 = vmatprep.subr.bf16.mxu1 %v5143_v31  ;;  %v5031_v22 = vpack.c.bf16 %v2113_v60, %v2109_v54  ;;  %v5159_v31 = vpack.c.bf16 %v2115_v56, %v2111_v29  ;;  %v2122_v18 = vld [vmem:[%s9957_s9 + $0x1f0] sm:$0xff]  ;;  %v2136_v2 = vld [vmem:[%s9957_s9 + $0x260] sm:$0xff]  ;;  %v2141_v54 = vld [vmem:[%s9957_s9 + $0x288] sm:$0xff] }
 0x466   :  { %v2134_v53 = vld [vmem:[%s9957_s9 + $0x250] sm:$0xff]  ;;  %v2145_v60 = vld [vmem:[%s9957_s9 + $0x2a8] sm:$0xff]  ;;  %v2143_v29 = vld [vmem:[%s9957_s9 + $0x298] sm:$0xff] }
 0x467   :  { %v2138_v58 = vld [vmem:[%s9957_s9 + $0x270] sm:$0xff]  ;;  %v2147_v56 = vld [vmem:[%s9957_s9 + $0x2b8] sm:$0xff] }
 0x468   :  { %5018 = vmatpush1.bf16.msra.mxu0 %v5017_v47  ;;  %5146 = vmatpush1.bf16.msra.mxu1 %v5145_v11  ;;  %v5033_v47 = vpack.c.bf16 %v2112_v21, %v2108_v6  ;;  %v5161_v11 = vpack.c.bf16 %v2114_v12, %v2110_v46  ;;  %v2140_v6 = vld [vmem:[%s9957_s9 + $0x280] sm:$0xff]  ;;  %v2142_v46 = vld [vmem:[%s9957_s9 + $0x290] sm:$0xff] }
 0x469   :  { %5020 = vmatprep.subr.bf16.mxu0 %v5019_v55  ;;  %5148 = vmatprep.subr.bf16.mxu1 %v5147_v0  ;;  %v5035_v55 = vpack.c.bf16 %v2121_v42, %v2117_v28  ;;  %v5163_v0 = vpack.c.bf16 %v2123_v40, %v2119_v13  ;;  %v2144_v21 = vld [vmem:[%s9957_s9 + $0x2a0] sm:$0xff]  ;;  %v2146_v12 = vld [vmem:[%s9957_s9 + $0x2b0] sm:$0xff]  ;;  %v2149_v28 = vld [vmem:[%s9957_s9 + $0x2c8] sm:$0xff] }
 0x46a   :  { %v2153_v42 = vld [vmem:[%s9957_s9 + $0x2e8] sm:$0xff]  ;;  %v2151_v13 = vld [vmem:[%s9957_s9 + $0x2d8] sm:$0xff] }
 0x46b   :  { %v2155_v40 = vld [vmem:[%s9957_s9 + $0x2f8] sm:$0xff] }
 0x46c   :  { %5022 = vmatpush1.bf16.msra.mxu0 %v5021_v63  ;;  %5150 = vmatpush1.bf16.msra.mxu1 %v5149_v23  ;;  %v5037_v63 = vpack.c.bf16 %v2120_v36, %v2116_v27  ;;  %v5165_v23 = vpack.c.bf16 %v2122_v18, %v2118_v37  ;;  %v2148_v27 = vld [vmem:[%s9957_s9 + $0x2c0] sm:$0xff]  ;;  %v2150_v37 = vld [vmem:[%s9957_s9 + $0x2d0] sm:$0xff] }
 0x46d   :  { %5024 = vmatprep.subr.bf16.mxu0 %v5023_v16  ;;  %5152 = vmatprep.subr.bf16.mxu1 %v5151_v26  ;;  %v5039_v16 = vpack.c.bf16 %v2129_v5, %v2125_v33  ;;  %v5167_v26 = vpack.c.bf16 %v2131_v35, %v2127_v19  ;;  %v2152_v36 = vld [vmem:[%s9957_s9 + $0x2e0] sm:$0xff]  ;;  %v2154_v18 = vld [vmem:[%s9957_s9 + $0x2f0] sm:$0xff]  ;;  %v2157_v33 = vld [vmem:[%s9957_s9 + $0x308] sm:$0xff] }
 0x46e   :  { %v2161_v5 = vld [vmem:[%s9957_s9 + $0x328] sm:$0xff]  ;;  %v2159_v19 = vld [vmem:[%s9957_s9 + $0x318] sm:$0xff] }
 0x46f   :  { %v2163_v35 = vld [vmem:[%s9957_s9 + $0x338] sm:$0xff] }
 0x470   :  { %5026 = vmatpush1.bf16.msra.mxu0 %v5025_v38  ;;  %5154 = vmatpush1.bf16.msra.mxu1 %v5153_v45  ;;  %v5041_v38 = vpack.c.bf16 %v2128_v61, %v2124_v59  ;;  %v5169_v45 = vpack.c.bf16 %v2130_v50, %v2126_v62  ;;  %v2156_v59 = vld [vmem:[%s9957_s9 + $0x300] sm:$0xff]  ;;  %v2158_v62 = vld [vmem:[%s9957_s9 + $0x310] sm:$0xff] }
 0x471   :  { %5028 = vmatprep.subr.bf16.mxu0 %v5027_v30  ;;  %5156 = vmatprep.subr.bf16.mxu1 %v5155_v34  ;;  %v5043_v30 = vpack.c.bf16 %v2137_v20, %v2133_v15  ;;  %v5171_v34 = vpack.c.bf16 %v2139_v4, %v2135_v1  ;;  %v2160_v61 = vld [vmem:[%s9957_s9 + $0x320] sm:$0xff]  ;;  %v2162_v50 = vld [vmem:[%s9957_s9 + $0x330] sm:$0xff]  ;;  %v2165_v15 = vld [vmem:[%s9957_s9 + $0x348] sm:$0xff] }
 0x472   :  { %v2169_v20 = vld [vmem:[%s9957_s9 + $0x368] sm:$0xff]  ;;  %v2167_v1 = vld [vmem:[%s9957_s9 + $0x358] sm:$0xff] }
 0x473   :  { %v2171_v4 = vld [vmem:[%s9957_s9 + $0x378] sm:$0xff] }
 0x474   :  { %5030 = vmatpush1.bf16.msra.mxu0 %v5029_v9  ;;  %5158 = vmatpush1.bf16.msra.mxu1 %v5157_v57  ;;  %v5045_v9 = vpack.c.bf16 %v2136_v2, %v2132_v41  ;;  %v5173_v57 = vpack.c.bf16 %v2138_v58, %v2134_v53  ;;  %v2164_v41 = vld [vmem:[%s9957_s9 + $0x340] sm:$0xff]  ;;  %v2166_v53 = vld [vmem:[%s9957_s9 + $0x350] sm:$0xff] }
 0x475   :  { %5032 = vmatprep.subr.bf16.mxu0 %v5031_v22  ;;  %5160 = vmatprep.subr.bf16.mxu1 %v5159_v31  ;;  %v5047_v22 = vpack.c.bf16 %v2145_v60, %v2141_v54  ;;  %v5175_v31 = vpack.c.bf16 %v2147_v56, %v2143_v29  ;;  %v2168_v2 = vld [vmem:[%s9957_s9 + $0x360] sm:$0xff]  ;;  %v2170_v58 = vld [vmem:[%s9957_s9 + $0x370] sm:$0xff]  ;;  %v2173_v54 = vld [vmem:[%s9957_s9 + $0x388] sm:$0xff] }
 0x476   :  { %v2177_v60 = vld [vmem:[%s9957_s9 + $0x3a8] sm:$0xff]  ;;  %v2175_v29 = vld [vmem:[%s9957_s9 + $0x398] sm:$0xff] }
 0x477   :  { %v2179_v56 = vld [vmem:[%s9957_s9 + $0x3b8] sm:$0xff] }
 0x478   :  { %5034 = vmatpush1.bf16.msra.mxu0 %v5033_v47  ;;  %5162 = vmatpush1.bf16.msra.mxu1 %v5161_v11  ;;  %v5049_v47 = vpack.c.bf16 %v2144_v21, %v2140_v6  ;;  %v5177_v11 = vpack.c.bf16 %v2146_v12, %v2142_v46  ;;  %v2172_v6 = vld [vmem:[%s9957_s9 + $0x380] sm:$0xff]  ;;  %v2174_v46 = vld [vmem:[%s9957_s9 + $0x390] sm:$0xff] }
 0x479   :  { %5036 = vmatprep.subr.bf16.mxu0 %v5035_v55  ;;  %5164 = vmatprep.subr.bf16.mxu1 %v5163_v0  ;;  %v5051_v55 = vpack.c.bf16 %v2153_v42, %v2149_v28  ;;  %v5179_v0 = vpack.c.bf16 %v2155_v40, %v2151_v13  ;;  %v2176_v21 = vld [vmem:[%s9957_s9 + $0x3a0] sm:$0xff]  ;;  %v2178_v12 = vld [vmem:[%s9957_s9 + $0x3b0] sm:$0xff]  ;;  %v2181_v28 = vld [vmem:[%s9957_s9 + $0x3c8] sm:$0xff] }
 0x47a   :  { %v2185_v42 = vld [vmem:[%s9957_s9 + $0x3e8] sm:$0xff]  ;;  %v2183_v13 = vld [vmem:[%s9957_s9 + $0x3d8] sm:$0xff] }
 0x47b   :  { %v2187_v40 = vld [vmem:[%s9957_s9 + $0x3f8] sm:$0xff] }
 0x47c   :  { %5038 = vmatpush1.bf16.msra.mxu0 %v5037_v63  ;;  %5166 = vmatpush1.bf16.msra.mxu1 %v5165_v23  ;;  %v5053_v63 = vpack.c.bf16 %v2152_v36, %v2148_v27  ;;  %v5181_v23 = vpack.c.bf16 %v2154_v18, %v2150_v37  ;;  %v2180_v27 = vld [vmem:[%s9957_s9 + $0x3c0] sm:$0xff]  ;;  %v2182_v37 = vld [vmem:[%s9957_s9 + $0x3d0] sm:$0xff] }
 0x47d   :  { %5040 = vmatprep.subr.bf16.mxu0 %v5039_v16  ;;  %5168 = vmatprep.subr.bf16.mxu1 %v5167_v26  ;;  %v5055_v16 = vpack.c.bf16 %v2161_v5, %v2157_v33  ;;  %v5183_v26 = vpack.c.bf16 %v2163_v35, %v2159_v19  ;;  %v2184_v36 = vld [vmem:[%s9957_s9 + $0x3e0] sm:$0xff]  ;;  %v2186_v18 = vld [vmem:[%s9957_s9 + $0x3f0] sm:$0xff]  ;;  %v2189_v33 = vld [vmem:[%s9957_s9 + $0x408] sm:$0xff] }
 0x47e   :  { %v2193_v5 = vld [vmem:[%s9957_s9 + $0x428] sm:$0xff]  ;;  %v2191_v19 = vld [vmem:[%s9957_s9 + $0x418] sm:$0xff] }
 0x47f   :  { %v2195_v35 = vld [vmem:[%s9957_s9 + $0x438] sm:$0xff] }
 0x480   :  { %5042 = vmatpush1.bf16.msra.mxu0 %v5041_v38  ;;  %5170 = vmatpush1.bf16.msra.mxu1 %v5169_v45  ;;  %v5057_v38 = vpack.c.bf16 %v2160_v61, %v2156_v59  ;;  %v5185_v45 = vpack.c.bf16 %v2162_v50, %v2158_v62  ;;  %v5071_v59 = vpack.c.bf16 %v2193_v5, %v2189_v33  ;;  %v2190_v62 = vld [vmem:[%s9957_s9 + $0x410] sm:$0xff] }
 0x481   :  { %5044 = vmatprep.subr.bf16.mxu0 %v5043_v30  ;;  %5172 = vmatprep.subr.bf16.mxu1 %v5171_v34  ;;  %v5059_v30 = vpack.c.bf16 %v2169_v20, %v2165_v15  ;;  %v5187_v34 = vpack.c.bf16 %v2171_v4, %v2167_v1  ;;  %v5199_v61 = vpack.c.bf16 %v2195_v35, %v2191_v19  ;;  %v2194_v50 = vld [vmem:[%s9957_s9 + $0x430] sm:$0xff]  ;;  %v2197_v15 = vld [vmem:[%s9957_s9 + $0x448] sm:$0xff]  ;;  %v2199_v1 = vld [vmem:[%s9957_s9 + $0x458] sm:$0xff] }
 0x482   :  { %v2201_v20 = vld [vmem:[%s9957_s9 + $0x468] sm:$0xff]  ;;  %v2203_v4 = vld [vmem:[%s9957_s9 + $0x478] sm:$0xff]  ;;  %v2220_v35 = vld [vmem:[%s9957_s9 + $0x500] sm:$0xff] }
 0x484   :  { %5046 = vmatpush1.bf16.msra.mxu0 %v5045_v9  ;;  %5174 = vmatpush1.bf16.msra.mxu1 %v5173_v57  ;;  %v5061_v9 = vpack.c.bf16 %v2168_v2, %v2164_v41  ;;  %v5189_v57 = vpack.c.bf16 %v2170_v58, %v2166_v53  ;;  %v2196_v41 = vld [vmem:[%s9957_s9 + $0x440] sm:$0xff]  ;;  %v2198_v53 = vld [vmem:[%s9957_s9 + $0x450] sm:$0xff] }
 0x485   :  { %5048 = vmatprep.subr.bf16.mxu0 %v5047_v22  ;;  %5176 = vmatprep.subr.bf16.mxu1 %v5175_v31  ;;  %v5063_v22 = vpack.c.bf16 %v2177_v60, %v2173_v54  ;;  %v5191_v31 = vpack.c.bf16 %v2179_v56, %v2175_v29  ;;  %v2200_v2 = vld [vmem:[%s9957_s9 + $0x460] sm:$0xff]  ;;  %v2202_v58 = vld [vmem:[%s9957_s9 + $0x470] sm:$0xff]  ;;  %v2205_v54 = vld [vmem:[%s9957_s9 + $0x488] sm:$0xff] }
 0x486   :  { %v2209_v60 = vld [vmem:[%s9957_s9 + $0x4a8] sm:$0xff]  ;;  %v2207_v29 = vld [vmem:[%s9957_s9 + $0x498] sm:$0xff] }
 0x487   :  { %v2211_v56 = vld [vmem:[%s9957_s9 + $0x4b8] sm:$0xff] }
 0x488   :  { %5050 = vmatpush1.bf16.msra.mxu0 %v5049_v47  ;;  %5178 = vmatpush1.bf16.msra.mxu1 %v5177_v11  ;;  %v5065_v47 = vpack.c.bf16 %v2176_v21, %v2172_v6  ;;  %v5193_v11 = vpack.c.bf16 %v2178_v12, %v2174_v46  ;;  %v2208_v6 = vld [vmem:[%s9957_s9 + $0x4a0] sm:$0xff]  ;;  %v2206_v21 = vld [vmem:[%s9957_s9 + $0x490] sm:$0xff]  ;;  %v2213_v46 = vld [vmem:[%s9957_s9 + $0x4c8] sm:$0xff] }
 0x489   :  { %5052 = vmatprep.subr.bf16.mxu0 %v5051_v55  ;;  %5180 = vmatprep.subr.bf16.mxu1 %v5179_v0  ;;  %v5067_v55 = vpack.c.bf16 %v2185_v42, %v2181_v28  ;;  %v5195_v0 = vpack.c.bf16 %v2187_v40, %v2183_v13  ;;  %v2217_v12 = vld [vmem:[%s9957_s9 + $0x4e8] sm:$0xff]  ;;  %v2215_v28 = vld [vmem:[%s9957_s9 + $0x4d8] sm:$0xff] }
 0x48a   :  { %v2219_v42 = vld [vmem:[%s9957_s9 + $0x4f8] sm:$0xff] }
 0x48c   :  { %5054 = vmatpush1.bf16.msra.mxu0 %v5053_v63  ;;  %5182 = vmatpush1.bf16.msra.mxu1 %v5181_v23  ;;  %v5069_v63 = vpack.c.bf16 %v2184_v36, %v2180_v27  ;;  %v5197_v23 = vpack.c.bf16 %v2186_v18, %v2182_v37  ;;  %v2214_v27 = vld [vmem:[%s9957_s9 + $0x4d0] sm:$0xff]  ;;  %v5211_v36 = vpack.c.bf16 %v2219_v42, %v2215_v28  ;;  %v2223_v37 = vld [vmem:[%s9957_s9 + $0x518] sm:$0xff]  ;;  %v2244_v42 = vld [vmem:[%s9957_s9 + $0x5c0] sm:$0xff] }
 0x48d   :  { %5056 = vmatprep.subr.bf16.mxu0 %v5055_v16  ;;  %5184 = vmatprep.subr.bf16.mxu1 %v5183_v26  ;;  %v2188_v16 = vld [vmem:[%s9957_s9 + $0x400] sm:$0xff]  ;;  %v2227_v18 = vld [vmem:[%s9957_s9 + $0x538] sm:$0xff] }
 0x48e   :  { %v2192_v26 = vld [vmem:[%s9957_s9 + $0x420] sm:$0xff] }
 0x490   :  { %5058 = vmatpush1.bf16.msra.mxu0 %v5057_v38  ;;  %5186 = vmatpush1.bf16.msra.mxu1 %v5185_v45  ;;  %v5073_v38 = vpack.c.bf16 %v2192_v26, %v2188_v16  ;;  %v5201_v45 = vpack.c.bf16 %v2194_v50, %v2190_v62  ;;  %v2229_v16 = vld [vmem:[%s9957_s9 + $0x548] sm:$0xff]  ;;  %v2231_v62 = vld [vmem:[%s9957_s9 + $0x558] sm:$0xff] }
 0x491   :  { %5060 = vmatprep.subr.bf16.mxu0 %v5059_v30  ;;  %5188 = vmatprep.subr.bf16.mxu1 %v5187_v34  ;;  %v5075_v30 = vpack.c.bf16 %v2201_v20, %v2197_v15  ;;  %v5203_v34 = vpack.c.bf16 %v2203_v4, %v2199_v1  ;;  %v2233_v26 = vld [vmem:[%s9957_s9 + $0x568] sm:$0xff]  ;;  %v2235_v50 = vld [vmem:[%s9957_s9 + $0x578] sm:$0xff]  ;;  %v2228_v4 = vld [vmem:[%s9957_s9 + $0x540] sm:$0xff] }
 0x492   :  { %v5091_v1 = vpack.c.bf16 %v2233_v26, %v2229_v16 }
 0x494   :  { %5062 = vmatpush1.bf16.msra.mxu0 %v5061_v9  ;;  %5190 = vmatpush1.bf16.msra.mxu1 %v5189_v57  ;;  %v5077_v9 = vpack.c.bf16 %v2200_v2, %v2196_v41  ;;  %v2204_v57 = vld [vmem:[%s9957_s9 + $0x480] sm:$0xff]  ;;  %v5219_v41 = vpack.c.bf16 %v2235_v50, %v2231_v62  ;;  %v2234_v2 = vld [vmem:[%s9957_s9 + $0x570] sm:$0xff] }
 0x495   :  { %5064 = vmatprep.subr.bf16.mxu0 %v5063_v22  ;;  %5192 = vmatprep.subr.bf16.mxu1 %v5191_v31  ;;  %v5079_v22 = vpack.c.bf16 %v2209_v60, %v2205_v54  ;;  %v5207_v31 = vpack.c.bf16 %v2211_v56, %v2207_v29  ;;  %v5081_v13 = vpack.c.bf16 %v2208_v6, %v2204_v57  ;;  %v2236_v56 = vld [vmem:[%s9957_s9 + $0x580] sm:$0xff]  ;;  %v2242_v6 = vld [vmem:[%s9957_s9 + $0x5b0] sm:$0xff] }
 0x496   :  { %v2260_v50 = vld [vmem:[%s9957_s9 + $0x640] sm:$0xff] }
 0x498   :  { %5066 = vmatpush1.bf16.msra.mxu0 %v5065_v47  ;;  %5194 = vmatpush1.bf16.msra.mxu1 %v5193_v11  ;;  %v5083_v47 = vpack.c.bf16 %v2217_v12, %v2213_v46  ;;  %v2216_v11 = vld [vmem:[%s9957_s9 + $0x4e0] sm:$0xff] }
 0x499   :  { %5068 = vmatprep.subr.bf16.mxu0 %v5067_v55  ;;  %5196 = vmatprep.subr.bf16.mxu1 %v5195_v0  ;;  %v2221_v55 = vld [vmem:[%s9957_s9 + $0x508] sm:$0xff] }
 0x49a   :  { %v2225_v0 = vld [vmem:[%s9957_s9 + $0x528] sm:$0xff] }
 0x49b   :  { %v5087_v19 = vpack.c.bf16 %v2225_v0, %v2221_v55 }
 0x49c   :  { %5070 = vmatpush1.bf16.msra.mxu0 %v5069_v63  ;;  %5198 = vmatpush1.bf16.msra.mxu1 %v5197_v23  ;;  %v2224_v63 = vld [vmem:[%s9957_s9 + $0x520] sm:$0xff]  ;;  %v2222_v23 = vld [vmem:[%s9957_s9 + $0x510] sm:$0xff] }
 0x49d   :  { %5072 = vmatprep.subr.bf16.mxu0 %v5071_v59  ;;  %5200 = vmatprep.subr.bf16.mxu1 %v5199_v61  ;;  %v5215_v59 = vpack.c.bf16 %v2227_v18, %v2223_v37  ;;  %v2226_v61 = vld [vmem:[%s9957_s9 + $0x530] sm:$0xff]  ;;  %v5089_v15 = vpack.c.bf16 %v2224_v63, %v2220_v35  ;;  %v2252_v18 = vld [vmem:[%s9957_s9 + $0x600] sm:$0xff]  ;;  %v2261_v63 = vld [vmem:[%s9957_s9 + $0x648] sm:$0xff] }
 0x49e   :  { %v5217_v20 = vpack.c.bf16 %v2226_v61, %v2222_v23  ;;  %v2258_v35 = vld [vmem:[%s9957_s9 + $0x630] sm:$0xff]  ;;  %v2265_v23 = vld [vmem:[%s9957_s9 + $0x668] sm:$0xff]  ;;  %v2267_v61 = vld [vmem:[%s9957_s9 + $0x678] sm:$0xff] }
 0x49f   :  { %2977 = vmatmul.mubr.f32.vlgmr.msra.gmra.mrb[20].mxu0 %v8216_v17  ;;  %3131 = vmatmul.mubr.f32.vlgmr.msra.gmra.mrb[20].mxu1 %v8216_v17  ;;  %v5205_v17 = vpack.c.bf16 %v2202_v58, %v2198_v53  ;;  %v2239_v53 = vld [vmem:[%s9957_s9 + $0x598] sm:$0xff]  ;;  %v5107_v62 = vpack.c.bf16 %v2265_v23, %v2261_v63 }
 0x4a0   :  { %2982 = vmatprep.mubr.f32.mxu0 %v8244_v10  ;;  %5074 = vmatpush1.bf16.msra.mxu0 %v5073_v38  ;;  %v2232_v38 = vld [vmem:[%s9957_s9 + $0x560] sm:$0xff]  ;;  %v2243_v58 = vld [vmem:[%s9957_s9 + $0x5b8] sm:$0xff] }
 0x4a1   :  { %3136 = vmatprep.mubr.f32.mxu1 %v8244_v10  ;;  %5202 = vmatpush1.bf16.msra.mxu1 %v5201_v45  ;;  %v2210_v10 = vld [vmem:[%s9957_s9 + $0x4b0] sm:$0xff]  ;;  %v5093_v54 = vpack.c.bf16 %v2232_v38, %v2228_v4  ;;  %v5223_v57 = vpack.c.bf16 %v2243_v58, %v2239_v53  ;;  %v2269_v38 = vld [vmem:[%s9957_s9 + $0x688] sm:$0xff]  ;;  %v2268_v58 = vld [vmem:[%s9957_s9 + $0x680] sm:$0xff] }
 0x4a2   :  { %5076 = vmatprep.subr.bf16.mxu0 %v5075_v30  ;;  %5204 = vmatprep.subr.bf16.mxu1 %v5203_v34  ;;  %v5209_v40 = vpack.c.bf16 %v2210_v10, %v2206_v21  ;;  %v2230_v45 = vld [vmem:[%s9957_s9 + $0x550] sm:$0xff]  ;;  %v2237_v30 = vld [vmem:[%s9957_s9 + $0x588] sm:$0xff]  ;;  %v2251_v10 = vld [vmem:[%s9957_s9 + $0x5f8] sm:$0xff] }
 0x4a3   :  { %2983 = vmatmul.mubr.f32.gmra.mrb[22].mxu0 %v8264_v39  ;;  %3137 = vmatmul.mubr.f32.gmra.mrb[22].mxu1 %v8264_v39  ;;  %v2212_v39 = vld [vmem:[%s9957_s9 + $0x4c0] sm:$0xff]  ;;  %v2241_v34 = vld [vmem:[%s9957_s9 + $0x5a8] sm:$0xff]  ;;  %v5221_v60 = vpack.c.bf16 %v2234_v2, %v2230_v45  ;;  %v2266_v4 = vld [vmem:[%s9957_s9 + $0x670] sm:$0xff] }
 0x4a4   :  { %5078 = vmatpush1.bf16.msra.mxu0 %v5077_v9  ;;  %3053 = vmatprep.mubr.f32.mxu0 %v8278_v14  ;;  %v5085_v33 = vpack.c.bf16 %v2216_v11, %v2212_v39  ;;  %v5095_v29 = vpack.c.bf16 %v2241_v34, %v2237_v30  ;;  %v2240_v9 = vld [vmem:[%s9957_s9 + $0x5a0] sm:$0xff]  ;;  %v2245_v21 = vld [vmem:[%s9957_s9 + $0x5c8] sm:$0xff]  ;;  %v2250_v39 = vld [vmem:[%s9957_s9 + $0x5f0] sm:$0xff] }
 0x4a5   :  { %5206 = vmatpush1.bf16.msra.mxu1 %v5205_v17  ;;  %3207 = vmatprep.mubr.f32.mxu1 %v8278_v14  ;;  %v2218_v14 = vld [vmem:[%s9957_s9 + $0x4f0] sm:$0xff]  ;;  %v5097_v46 = vpack.c.bf16 %v2240_v9, %v2236_v56  ;;  %v2253_v11 = vld [vmem:[%s9957_s9 + $0x608] sm:$0xff]  ;;  %v2275_v2 = vld [vmem:[%s9957_s9 + $0x6b8] sm:$0xff] }
 0x4a6   :  { %5080 = vmatprep.subr.bf16.mxu0 %v5079_v22  ;;  %5208 = vmatprep.subr.bf16.mxu1 %v5207_v31  ;;  %v5213_v5 = vpack.c.bf16 %v2218_v14, %v2214_v27  ;;  %v2238_v17 = vld [vmem:[%s9957_s9 + $0x590] sm:$0xff]  ;;  %v2249_v22 = vld [vmem:[%s9957_s9 + $0x5e8] sm:$0xff]  ;;  %v2247_v31 = vld [vmem:[%s9957_s9 + $0x5d8] sm:$0xff] }
 0x4a7   :  { %v5225_v12 = vpack.c.bf16 %v2242_v6, %v2238_v17  ;;  %v5099_v28 = vpack.c.bf16 %v2249_v22, %v2245_v21  ;;  %v2257_v27 = vld [vmem:[%s9957_s9 + $0x628] sm:$0xff]  ;;  %v2259_v14 = vld [vmem:[%s9957_s9 + $0x638] sm:$0xff]  ;;  %v2274_v56 = vld [vmem:[%s9957_s9 + $0x6b0] sm:$0xff] }
 0x4a8   :  { %5082 = vmatpush1.bf16.msra.mxu0 %v5081_v13  ;;  %v2248_v13 = vld [vmem:[%s9957_s9 + $0x5e0] sm:$0xff]  ;;  %v5103_v37 = vpack.c.bf16 %v2257_v27, %v2253_v11  ;;  %v2273_v45 = vld [vmem:[%s9957_s9 + $0x6a8] sm:$0xff]  ;;  %v2283_v6 = vld [vmem:[%s9957_s9 + $0x6f8] sm:$0xff] }
 0x4a9   :  { %5210 = vmatpush1.bf16.msra.mxu1 %v5209_v40  ;;  %5084 = vmatprep.subr.bf16.mxu0 %v5083_v47  ;;  %v2246_v40 = vld [vmem:[%s9957_s9 + $0x5d0] sm:$0xff]  ;;  %v5227_v47 = vpack.c.bf16 %v2251_v10, %v2247_v31  ;;  %v5101_v55 = vpack.c.bf16 %v2248_v13, %v2244_v42  ;;  %v5111_v53 = vpack.c.bf16 %v2273_v45, %v2269_v38  ;;  %v2277_v9 = vld [vmem:[%s9957_s9 + $0x6c8] sm:$0xff]  ;;  %v2276_v10 = vld [vmem:[%s9957_s9 + $0x6c0] sm:$0xff] }
 0x4aa   :  { %5212 = vmatprep.subr.bf16.mxu1 %v5211_v36  ;;  %v2255_v36 = vld [vmem:[%s9957_s9 + $0x618] sm:$0xff]  ;;  %v5229_v0 = vpack.c.bf16 %v2250_v39, %v2246_v40  ;;  %v2281_v17 = vld [vmem:[%s9957_s9 + $0x6e8] sm:$0xff]  ;;  %v2282_v42 = vld [vmem:[%s9957_s9 + $0x6f0] sm:$0xff] }
 0x4ab   :  { %v5115_v31 = vpack.c.bf16 %v2281_v17, %v2277_v9  ;;  %v2285_v13 = vld [vmem:[%s9957_s9 + $0x708] sm:$0xff]  ;;  %v2291_v39 = vld [vmem:[%s9957_s9 + $0x738] sm:$0xff] }
 0x4ac   :  { %5086 = vmatpush1.bf16.msra.mxu0 %v5085_v33  ;;  %v2256_v33 = vld [vmem:[%s9957_s9 + $0x620] sm:$0xff]  ;;  %v2289_v40 = vld [vmem:[%s9957_s9 + $0x728] sm:$0xff] }
 0x4ad   :  { %5214 = vmatpush1.bf16.msra.mxu1 %v5213_v5  ;;  %5088 = vmatprep.subr.bf16.mxu0 %v5087_v19  ;;  %v2254_v5 = vld [vmem:[%s9957_s9 + $0x610] sm:$0xff]  ;;  %v5231_v19 = vpack.c.bf16 %v2259_v14, %v2255_v36  ;;  %v5105_v16 = vpack.c.bf16 %v2256_v33, %v2252_v18  ;;  %v5119_v36 = vpack.c.bf16 %v2289_v40, %v2285_v13  ;;  %v2284_v14 = vld [vmem:[%s9957_s9 + $0x700] sm:$0xff]  ;;  %v2293_v33 = vld [vmem:[%s9957_s9 + $0x748] sm:$0xff] }
 0x4ae   :  { %5216 = vmatprep.subr.bf16.mxu1 %v5215_v59  ;;  %v2263_v59 = vld [vmem:[%s9957_s9 + $0x658] sm:$0xff]  ;;  %v5233_v26 = vpack.c.bf16 %v2258_v35, %v2254_v5  ;;  %v2290_v18 = vld [vmem:[%s9957_s9 + $0x730] sm:$0xff]  ;;  %v2297_v5 = vld [vmem:[%s9957_s9 + $0x768] sm:$0xff] }
 0x4af   :  { %v2299_v35 = vld [vmem:[%s9957_s9 + $0x778] sm:$0xff] }
 0x4b0   :  { %5090 = vmatpush1.bf16.msra.mxu0 %v5089_v15  ;;  %v2264_v15 = vld [vmem:[%s9957_s9 + $0x660] sm:$0xff] }
 0x4b1   :  { %5218 = vmatpush1.bf16.msra.mxu1 %v5217_v20  ;;  %5092 = vmatprep.subr.bf16.mxu0 %v5091_v1  ;;  %v2262_v20 = vld [vmem:[%s9957_s9 + $0x650] sm:$0xff]  ;;  %v5235_v1 = vpack.c.bf16 %v2267_v61, %v2263_v59  ;;  %v5109_v30 = vpack.c.bf16 %v2264_v15, %v2260_v50  ;;  %v5123_v59 = vpack.c.bf16 %v2297_v5, %v2293_v33  ;;  %v2292_v61 = vld [vmem:[%s9957_s9 + $0x740] sm:$0xff]  ;;  %v2301_v15 = vld [vmem:[%s9957_s9 + $0x788] sm:$0xff] }
 0x4b2   :  { %5220 = vmatprep.subr.bf16.mxu1 %v5219_v41  ;;  %v2271_v41 = vld [vmem:[%s9957_s9 + $0x698] sm:$0xff]  ;;  %v5237_v34 = vpack.c.bf16 %v2266_v4, %v2262_v20  ;;  %v2298_v50 = vld [vmem:[%s9957_s9 + $0x770] sm:$0xff]  ;;  %v2305_v20 = vld [vmem:[%s9957_s9 + $0x7a8] sm:$0xff] }
 0x4b3   :  { %v2307_v4 = vld [vmem:[%s9957_s9 + $0x7b8] sm:$0xff] }
 0x4b4   :  { %5094 = vmatpush1.bf16.msra.mxu0 %v5093_v54  ;;  %v2272_v54 = vld [vmem:[%s9957_s9 + $0x6a0] sm:$0xff] }
 0x4b5   :  { %5222 = vmatpush1.bf16.msra.mxu1 %v5221_v60  ;;  %5096 = vmatprep.subr.bf16.mxu0 %v5095_v29  ;;  %v2270_v60 = vld [vmem:[%s9957_s9 + $0x690] sm:$0xff]  ;;  %v5239_v29 = vpack.c.bf16 %v2275_v2, %v2271_v41  ;;  %v5113_v21 = vpack.c.bf16 %v2272_v54, %v2268_v58  ;;  %v5127_v41 = vpack.c.bf16 %v2305_v20, %v2301_v15  ;;  %v2300_v2 = vld [vmem:[%s9957_s9 + $0x780] sm:$0xff]  ;;  %v2309_v54 = vld [vmem:[%s9957_s9 + $0x7c8] sm:$0xff] }
 0x4b6   :  { %5224 = vmatprep.subr.bf16.mxu1 %v5223_v57  ;;  %v2279_v57 = vld [vmem:[%s9957_s9 + $0x6d8] sm:$0xff]  ;;  %v5241_v22 = vpack.c.bf16 %v2274_v56, %v2270_v60  ;;  %v2306_v58 = vld [vmem:[%s9957_s9 + $0x7b0] sm:$0xff]  ;;  %v2313_v60 = vld [vmem:[%s9957_s9 + $0x7e8] sm:$0xff] }
 0x4b7   :  { %v2315_v56 = vld [vmem:[%s9957_s9 + $0x7f8] sm:$0xff]  ;;  %v3538_v15 = vld [vmem:[%s9958_s14 + $0x100] sm:$0xff]  ;;  %v3539_v20 = vld [vmem:[%s9958_s14 + $0x108] sm:$0xff] }
 0x4b8   :  { %5098 = vmatpush1.bf16.msra.mxu0 %v5097_v46  ;;  %v2280_v46 = vld [vmem:[%s9957_s9 + $0x6e0] sm:$0xff] }
 0x4b9   :  { %5226 = vmatpush1.bf16.msra.mxu1 %v5225_v12  ;;  %5100 = vmatprep.subr.bf16.mxu0 %v5099_v28  ;;  %v2278_v12 = vld [vmem:[%s9957_s9 + $0x6d0] sm:$0xff]  ;;  %v5243_v28 = vpack.c.bf16 %v2283_v6, %v2279_v57  ;;  %v5117_v11 = vpack.c.bf16 %v2280_v46, %v2276_v10  ;;  %v5131_v57 = vpack.c.bf16 %v2313_v60, %v2309_v54  ;;  %v2308_v6 = vld [vmem:[%s9957_s9 + $0x7c0] sm:$0xff]  ;;  %v3541_v60 = vld [vmem:[%s9958_s14 + $0x118] sm:$0xff] }
 0x4ba   :  { %5228 = vmatprep.subr.bf16.mxu1 %v5227_v47  ;;  %v2287_v47 = vld [vmem:[%s9957_s9 + $0x718] sm:$0xff]  ;;  %v5245_v27 = vpack.c.bf16 %v2282_v42, %v2278_v12  ;;  %v2314_v10 = vld [vmem:[%s9957_s9 + $0x7f0] sm:$0xff] }
 0x4bb   :  { %v3540_v54 = vld [vmem:[%s9958_s14 + $0x110] sm:$0xff] }
 0x4bc   :  { %5102 = vmatpush1.bf16.msra.mxu0 %v5101_v55  ;;  %v2288_v55 = vld [vmem:[%s9957_s9 + $0x720] sm:$0xff] }
 0x4bd   :  { %5230 = vmatpush1.bf16.msra.mxu1 %v5229_v0  ;;  %5104 = vmatprep.subr.bf16.mxu0 %v5103_v37  ;;  %v2286_v0 = vld [vmem:[%s9957_s9 + $0x710] sm:$0xff]  ;;  %v5247_v37 = vpack.c.bf16 %v2291_v39, %v2287_v47  ;;  %v5121_v63 = vpack.c.bf16 %v2288_v55, %v2284_v14 }
 0x4be   :  { %5232 = vmatprep.subr.bf16.mxu1 %v5231_v19  ;;  %v2295_v19 = vld [vmem:[%s9957_s9 + $0x758] sm:$0xff]  ;;  %v5249_v23 = vpack.c.bf16 %v2290_v18, %v2286_v0 }
 0x4c0   :  { %5106 = vmatpush1.bf16.msra.mxu0 %v5105_v16  ;;  %v2296_v16 = vld [vmem:[%s9957_s9 + $0x760] sm:$0xff] }
 0x4c1   :  { %5234 = vmatpush1.bf16.msra.mxu1 %v5233_v26  ;;  %5108 = vmatprep.subr.bf16.mxu0 %v5107_v62  ;;  %v2294_v26 = vld [vmem:[%s9957_s9 + $0x750] sm:$0xff]  ;;  %v5251_v62 = vpack.c.bf16 %v2299_v35, %v2295_v19  ;;  %v5125_v38 = vpack.c.bf16 %v2296_v16, %v2292_v61  ;;  %v3522_v35 = vld [vmem:[%s9958_s14 + $0x80] sm:$0xff]  ;;  %v3555_v61 = vld [vmem:[%s9958_s14 + $0x188] sm:$0xff] }
 0x4c2   :  { %5236 = vmatprep.subr.bf16.mxu1 %v5235_v1  ;;  %v2303_v1 = vld [vmem:[%s9957_s9 + $0x798] sm:$0xff]  ;;  %v5253_v45 = vpack.c.bf16 %v2298_v50, %v2294_v26  ;;  %v3506_v16 = vld [vmem:[%s9958_s14] sm:$0xff]  ;;  %v3507_v26 = vld [vmem:[%s9958_s14 + $0x8] sm:$0xff] }
 0x4c3   :  { %v5265_v50 = vpack.c.bf16 %v3507_v26, %v3506_v16  ;;  %v3530_v16 = vld [vmem:[%s9958_s14 + $0xc0] sm:$0xff]  ;;  %v3531_v26 = vld [vmem:[%s9958_s14 + $0xc8] sm:$0xff] }
 0x4c4   :  { %5110 = vmatpush1.bf16.msra.mxu0 %v5109_v30  ;;  %v2304_v30 = vld [vmem:[%s9957_s9 + $0x7a0] sm:$0xff] }
 0x4c5   :  { %5238 = vmatpush1.bf16.msra.mxu1 %v5237_v34  ;;  %5112 = vmatprep.subr.bf16.mxu0 %v5111_v53  ;;  %v2302_v34 = vld [vmem:[%s9957_s9 + $0x790] sm:$0xff]  ;;  %v5255_v53 = vpack.c.bf16 %v2307_v4, %v2303_v1  ;;  %v5129_v9 = vpack.c.bf16 %v2304_v30, %v2300_v2  ;;  %v5297_v1 = vpack.c.bf16 %v3539_v20, %v3538_v15  ;;  %v3557_v2 = vld [vmem:[%s9958_s14 + $0x198] sm:$0xff]  ;;  %v3563_v15 = vld [vmem:[%s9958_s14 + $0x1c8] sm:$0xff] }
 0x4c6   :  { %5240 = vmatprep.subr.bf16.mxu1 %v5239_v29  ;;  %v2311_v29 = vld [vmem:[%s9957_s9 + $0x7d8] sm:$0xff]  ;;  %v5257_v17 = vpack.c.bf16 %v2306_v58, %v2302_v34  ;;  %v3524_v4 = vld [vmem:[%s9958_s14 + $0x90] sm:$0xff]  ;;  %v3514_v20 = vld [vmem:[%s9958_s14 + $0x40] sm:$0xff] }
 0x4c7   :  { %v3508_v30 = vld [vmem:[%s9958_s14 + $0x10] sm:$0xff]  ;;  %v3509_v34 = vld [vmem:[%s9958_s14 + $0x18] sm:$0xff] }
 0x4c8   :  { %5114 = vmatpush1.bf16.msra.mxu0 %v5113_v21  ;;  %v2312_v21 = vld [vmem:[%s9957_s9 + $0x7e0] sm:$0xff]  ;;  %v5269_v58 = vpack.c.bf16 %v3509_v34, %v3508_v30  ;;  %v3532_v30 = vld [vmem:[%s9958_s14 + $0xd0] sm:$0xff]  ;;  %v3533_v34 = vld [vmem:[%s9958_s14 + $0xd8] sm:$0xff] }
 0x4c9   :  { %5242 = vmatpush1.bf16.msra.mxu1 %v5241_v22  ;;  %5116 = vmatprep.subr.bf16.mxu0 %v5115_v31  ;;  %v5259_v22 = vpack.c.bf16 %v2315_v56, %v2311_v29  ;;  %v2310_v31 = vld [vmem:[%s9957_s9 + $0x7d0] sm:$0xff]  ;;  %v5133_v46 = vpack.c.bf16 %v2312_v21, %v2308_v6  ;;  %v5301_v29 = vpack.c.bf16 %v3541_v60, %v3540_v54  ;;  %v3526_v56 = vld [vmem:[%s9958_s14 + $0xa0] sm:$0xff]  ;;  %v3559_v6 = vld [vmem:[%s9958_s14 + $0x1a8] sm:$0xff] }
 0x4ca   :  { %5244 = vmatprep.subr.bf16.mxu1 %v5243_v28  ;;  %v5261_v12 = vpack.c.bf16 %v2314_v10, %v2310_v31  ;;  %v3510_v21 = vld [vmem:[%s9958_s14 + $0x20] sm:$0xff]  ;;  %v3565_v54 = vld [vmem:[%s9958_s14 + $0x1d8] sm:$0xff]  ;;  %v3516_v60 = vld [vmem:[%s9958_s14 + $0x50] sm:$0xff] }
 0x4cc   :  { %5118 = vmatpush1.bf16.msra.mxu0 %v5117_v11 }
 0x4cd   :  { %5246 = vmatpush1.bf16.msra.mxu1 %v5245_v27  ;;  %5120 = vmatprep.subr.bf16.mxu0 %v5119_v36 }
 0x4ce   :  { %5248 = vmatprep.subr.bf16.mxu1 %v5247_v37 }
 0x4d0   :  { %5122 = vmatpush1.bf16.msra.mxu0 %v5121_v63  ;;  %v3523_v63 = vld [vmem:[%s9958_s14 + $0x88] sm:$0xff] }
 0x4d1   :  { %5250 = vmatpush1.bf16.msra.mxu1 %v5249_v23  ;;  %5124 = vmatprep.subr.bf16.mxu0 %v5123_v59  ;;  %v3554_v23 = vld [vmem:[%s9958_s14 + $0x180] sm:$0xff]  ;;  %v5263_v59 = vpack.c.bf16 %v3523_v63, %v3522_v35 }
 0x4d2   :  { %5252 = vmatprep.subr.bf16.mxu1 %v5251_v62  ;;  %v5295_v62 = vpack.c.bf16 %v3555_v61, %v3554_v23  ;;  %v3544_v23 = vld [vmem:[%s9958_s14 + $0x130] sm:$0xff] }
 0x4d4   :  { %5126 = vmatpush1.bf16.msra.mxu0 %v5125_v38  ;;  %v3525_v38 = vld [vmem:[%s9958_s14 + $0x98] sm:$0xff] }
 0x4d5   :  { %5254 = vmatpush1.bf16.msra.mxu1 %v5253_v45  ;;  %5128 = vmatprep.subr.bf16.mxu0 %v5127_v41  ;;  %v3556_v45 = vld [vmem:[%s9958_s14 + $0x190] sm:$0xff]  ;;  %v5267_v41 = vpack.c.bf16 %v3525_v38, %v3524_v4 }
 0x4d6   :  { %5256 = vmatprep.subr.bf16.mxu1 %v5255_v53  ;;  %v5299_v53 = vpack.c.bf16 %v3557_v2, %v3556_v45  ;;  %v3546_v45 = vld [vmem:[%s9958_s14 + $0x140] sm:$0xff] }
 0x4d8   :  { %5130 = vmatpush1.bf16.msra.mxu0 %v5129_v9  ;;  %v3527_v9 = vld [vmem:[%s9958_s14 + $0xa8] sm:$0xff] }
 0x4d9   :  { %5258 = vmatpush1.bf16.msra.mxu1 %v5257_v17  ;;  %5132 = vmatprep.subr.bf16.mxu0 %v5131_v57  ;;  %v3558_v17 = vld [vmem:[%s9958_s14 + $0x1a0] sm:$0xff]  ;;  %v5271_v57 = vpack.c.bf16 %v3527_v9, %v3526_v56 }
 0x4da   :  { %5260 = vmatprep.subr.bf16.mxu1 %v5259_v22  ;;  %v3511_v22 = vld [vmem:[%s9958_s14 + $0x28] sm:$0xff]  ;;  %v5303_v31 = vpack.c.bf16 %v3559_v6, %v3558_v17  ;;  %v3548_v17 = vld [vmem:[%s9958_s14 + $0x150] sm:$0xff]  ;;  %v3534_v6 = vld [vmem:[%s9958_s14 + $0xe0] sm:$0xff] }
 0x4db   :  { %v5273_v10 = vpack.c.bf16 %v3511_v22, %v3510_v21  ;;  %v3535_v22 = vld [vmem:[%s9958_s14 + $0xe8] sm:$0xff] }
 0x4dc   :  { %5134 = vmatpush1.bf16.msra.mxu0 %v5133_v46  ;;  %v3542_v46 = vld [vmem:[%s9958_s14 + $0x120] sm:$0xff] }
 0x4dd   :  { %5262 = vmatpush1.bf16.msra.mxu1 %v5261_v12  ;;  %5264 = vmatprep.subr.bf16.mxu0 %v5263_v59  ;;  %v3543_v12 = vld [vmem:[%s9958_s14 + $0x128] sm:$0xff]  ;;  %v3545_v59 = vld [vmem:[%s9958_s14 + $0x138] sm:$0xff] }
 0x4de   :  { %5296 = vmatprep.subr.bf16.mxu1 %v5295_v62  ;;  %v5309_v61 = vpack.c.bf16 %v3545_v59, %v3544_v23  ;;  %v3562_v62 = vld [vmem:[%s9958_s14 + $0x1c0] sm:$0xff]  ;;  %v3569_v23 = vld [vmem:[%s9958_s14 + $0x1f8] sm:$0xff]  ;;  %v3520_v59 = vld [vmem:[%s9958_s14 + $0x70] sm:$0xff] }
 0x4df   :  { %3054 = vmatmul.mubr.f32.vlgmr.msra.gmra.mrb[20].mxu0 %v8629_v7  ;;  %v5311_v4 = vpack.c.bf16 %v3563_v15, %v3562_v62  ;;  %v3553_v62 = vld [vmem:[%s9958_s14 + $0x178] sm:$0xff] }
 0x4e0   :  { %3208 = vmatmul.mubr.f32.vlgmr.msra.gmra.mrb[20].mxu1 %v8629_v7  ;;  %3059 = vmatprep.mubr.f32.mxu0 %v8646_v24 }
 0x4e1   :  { %3213 = vmatprep.mubr.f32.mxu1 %v8646_v24  ;;  %5266 = vmatpush3.bf16.msra.mxu0 %v5265_v50  ;;  %v5279_v50 = vpack.c.bf16 %v3531_v26, %v3530_v16  ;;  %v3521_v16 = vld [vmem:[%s9958_s14 + $0x78] sm:$0xff]  ;;  %v3552_v26 = vld [vmem:[%s9958_s14 + $0x170] sm:$0xff] }
 0x4e2   :  { %5298 = vmatpush3.bf16.msra.mxu1 %v5297_v1  ;;  %5268 = vmatprep.subr.bf16.mxu0 %v5267_v41  ;;  %v3515_v1 = vld [vmem:[%s9958_s14 + $0x48] sm:$0xff]  ;;  %v5325_v15 = vpack.c.bf16 %v3553_v62, %v3552_v26 }
 0x4e3   :  { %3060 = vmatmul.mubr.f32.gmra.mrb[22].mxu0 %v8667_v8  ;;  %5300 = vmatprep.subr.bf16.mxu1 %v5299_v53  ;;  %v5281_v38 = vpack.c.bf16 %v3515_v1, %v3514_v20  ;;  %v3547_v41 = vld [vmem:[%s9958_s14 + $0x148] sm:$0xff]  ;;  %v3564_v53 = vld [vmem:[%s9958_s14 + $0x1d0] sm:$0xff]  ;;  %v3458_v20 = vld [vmem:[%s9959_s13 + $0x80] sm:$0xff] }
 0x4e4   :  { %3214 = vmatmul.mubr.f32.gmra.mrb[22].mxu1 %v8667_v8  ;;  %v5313_v2 = vpack.c.bf16 %v3547_v41, %v3546_v45  ;;  %v5315_v56 = vpack.c.bf16 %v3565_v54, %v3564_v53  ;;  %v3459_v1 = vld [vmem:[%s9959_s13 + $0x88] sm:$0xff]  ;;  %v3223_v53 = vshra.s32 %v5895_v48, 8 }
 0x4e5   :  { %5270 = vmatpush3.bf16.msra.mxu0 %v5269_v58  ;;  %v5283_v58 = vpack.c.bf16 %v3533_v34, %v3532_v30  ;;  %v3491_v45 = vld [vmem:[%s9959_s13 + $0x188] sm:$0xff]  ;;  %v3222_v30 = vshra.s32 %v5884_v43, 8  ;;  %v3224_v34 = vshra.s32 %v5902_v52, 8 }
 0x4e6   :  { %5302 = vmatpush3.bf16.msra.mxu1 %v5301_v29  ;;  %5272 = vmatprep.subr.bf16.mxu0 %v5271_v57  ;;  %v3517_v29 = vld [vmem:[%s9958_s14 + $0x58] sm:$0xff] }
 0x4e7   :  { %5304 = vmatprep.subr.bf16.mxu1 %v5303_v31  ;;  %v5285_v9 = vpack.c.bf16 %v3517_v29, %v3516_v60  ;;  %v3549_v57 = vld [vmem:[%s9958_s14 + $0x158] sm:$0xff]  ;;  %v3566_v31 = vld [vmem:[%s9958_s14 + $0x1e0] sm:$0xff]  ;;  %v3221_v29 = vmul.u32 2, %v5897_v49 }
 0x4e8   :  { %v5317_v21 = vpack.c.bf16 %v3549_v57, %v3548_v17 }
 0x4e9   :  { %5274 = vmatpush3.bf16.msra.mxu0 %v5273_v10  ;;  %v3567_v10 = vld [vmem:[%s9958_s14 + $0x1e8] sm:$0xff]  ;;  %v3230_v17 = vadd.s32 %v3222_v30, %v3221_v29  ;;  %v3231_v57 = vadd.s32 %v3223_v53, %v3221_v29 }
 0x4eb   :  { %vm3238_vm9 = vcmp.lt.s32.totalorder %v3230_v17, 14  ;;  %vm3239_vm11 = vcmp.lt.s32.totalorder %v3231_v57, 14 }
 0x531   :  { %v2715_v28 = vpop.f32.mrb[16].mxu0  ;;  %v2869_v42 = vpop.f32.mrb[16].mxu1 }
 0x532   :  { %v2717_v13 = vpop.f32.mrb[17].mxu0  ;;  %v2871_v40 = vpop.f32.mrb[17].mxu1  ;;  %v2888_v11 = vrot.slane %v2715_v28, 1  ;;  %v2894_v27 = vrot.slane %v2869_v42, 1  ;;  %v5305_v28 = vpack.c.bf16 %v3543_v12, %v3542_v46  ;;  %v3528_v42 = vld [vmem:[%s9958_s14 + $0xb0] sm:$0xff]  ;;  %v5287_v46 = vpack.c.bf16 %v3535_v22, %v3534_v6 }
 0x533   :  { %v2891_v55 = vrot.slane %v2717_v13, 1  ;;  %v2897_v8 = vrot.slane %v2871_v40, 1  ;;  %v3529_v13 = vld [vmem:[%s9958_s14 + $0xb8] sm:$0xff]  ;;  %v3560_v40 = vld [vmem:[%s9958_s14 + $0x1b0] sm:$0xff]  ;;  %v5319_v12 = vpack.c.bf16 %v3567_v10, %v3566_v31 }
 0x534   :  { %5306 = vmatpush3.bf16.msra.mxu1 %v5305_v28  ;;  %v3518_v28 = vld [vmem:[%s9958_s14 + $0x60] sm:$0xff] }
 0x535   :  { %v9389_v47 = vpop.f32.mrb[18].mxu0  ;;  %v9391_v39 = vpop.f32.mrb[18].mxu1 }
 0x536   :  { %v2889_v7 = vrot.slane %v9389_v47, 1  ;;  %v2895_v36 = vrot.slane %v9391_v39, 1  ;;  %v9395_v14 = vpop.f32.mrb[19].mxu0  ;;  %v9397_v24 = vpop.f32.mrb[19].mxu1 }
 0x537   :  { %v2892_v0 = vrot.slane %v9395_v14, 1  ;;  %v2898_v37 = vrot.slane %v9397_v24, 1 }
 0x538   :  { %v9404_v18 = vsel %vm330_vm1, %v2888_v11, %v2889_v7  ;;  %v9409_v33 = vsel %vm330_vm1, %v2894_v27, %v2895_v36  ;;  %v5275_v11 = vpack.c.bf16 %v3529_v13, %v3528_v42  ;;  %v3561_v27 = vld [vmem:[%s9958_s14 + $0x1b8] sm:$0xff]  ;;  %v3519_v42 = vld [vmem:[%s9958_s14 + $0x68] sm:$0xff]  ;;  %v3550_v13 = vld [vmem:[%s9958_s14 + $0x160] sm:$0xff]  ;;  %v2908_v49 = vsel %vm330_vm1, %v2889_v7, 0.0 }
 0x539   :  { %v9414_v5 = vsel %vm330_vm1, %v2891_v55, %v2892_v0  ;;  %v9419_v19 = vsel %vm330_vm1, %v2897_v8, %v2898_v37  ;;  %v3512_v55 = vld [vmem:[%s9958_s14 + $0x30] sm:$0xff]  ;;  %v3513_v8 = vld [vmem:[%s9958_s14 + $0x38] sm:$0xff]  ;;  %v5307_v35 = vpack.c.bf16 %v3561_v27, %v3560_v40  ;;  %v5289_v40 = vpack.c.bf16 %v3519_v42, %v3518_v28 }
 0x53a   :  { %v5277_v63 = vpack.c.bf16 %v3513_v8, %v3512_v55  ;;  %5276 = vmatprep.subr.bf16.mxu0 %v5275_v11  ;;  %v3551_v11 = vld [vmem:[%s9958_s14 + $0x168] sm:$0xff]  ;;  %v3536_v27 = vld [vmem:[%s9958_s14 + $0xf0] sm:$0xff]  ;;  %v3537_v55 = vld [vmem:[%s9958_s14 + $0xf8] sm:$0xff]  ;;  %v2909_v7 = vsel %vm330_vm1, %v2892_v0, 0.0  ;;  %v3986_v0 = vsel %vm3239_vm11, 1.0, %v5458_v3 }
 0x53b   :  { %5308 = vmatprep.subr.bf16.mxu1 %v5307_v35  ;;  %v5321_v8 = vpack.c.bf16 %v3551_v11, %v3550_v13  ;;  %v5291_v35 = vpack.c.bf16 %v3537_v55, %v3536_v27 }
 0x53c   :  { %5278 = vmatpush3.bf16.msra.mxu0 %v5277_v63  ;;  %5310 = vmatpush3.bf16.msra.mxu1 %v5309_v61  ;;  %v3568_v63 = vld [vmem:[%s9958_s14 + $0x1f0] sm:$0xff] }
 0x53d   :  { %5280 = vmatprep.subr.bf16.mxu0 %v5279_v50  ;;  %5312 = vmatprep.subr.bf16.mxu1 %v5311_v4  ;;  %v5323_v61 = vpack.c.bf16 %v3569_v23, %v3568_v63  ;;  %v5293_v50 = vpack.c.bf16 %v3521_v16, %v3520_v59  ;;  %v3490_v4 = vld [vmem:[%s9959_s13 + $0x180] sm:$0xff] }
 0x53e   :  { %v5359_v41 = vpack.c.bf16 %v3491_v45, %v3490_v4 }
 0x540   :  { %5282 = vmatpush3.bf16.msra.mxu0 %v5281_v38  ;;  %5314 = vmatpush3.bf16.msra.mxu1 %v5313_v2  ;;  %v5327_v38 = vpack.c.bf16 %v3459_v1, %v3458_v20  ;;  %v3220_v2 = vmul.u32 2, %v5887_v44  ;;  %v3232_v44 = vadd.s32 %v3224_v34, %v3221_v29 }
 0x541   :  { %5284 = vmatprep.subr.bf16.mxu0 %v5283_v58  ;;  %5316 = vmatprep.subr.bf16.mxu1 %v5315_v56  ;;  %v3225_v58 = vshra.s32 %v5952_v25, 8 }
 0x542   :  { %v3226_v54 = vadd.s32 %v3222_v30, %v3220_v2  ;;  %v3228_v60 = vadd.s32 %v3224_v34, %v3220_v2  ;;  %v3227_v56 = vadd.s32 %v3223_v53, %v3220_v2  ;;  %vm3240_vm10 = vcmp.lt.s32.totalorder %v3232_v44, 14 }
 0x543   :  { %v3233_v43 = vadd.s32 %v3225_v58, %v3221_v29  ;;  %v3987_v14 = vsel %vm3240_vm10, 1.0, %v5458_v3 }
 0x544   :  { %5286 = vmatpush3.bf16.msra.mxu0 %v5285_v9  ;;  %5318 = vmatpush3.bf16.msra.mxu1 %v5317_v21  ;;  %v3229_v9 = vadd.s32 %v3225_v58, %v3220_v2  ;;  %vm3234_vm5 = vcmp.lt.s32.totalorder %v3226_v54, 14  ;;  %vm3236_vm6 = vcmp.lt.s32.totalorder %v3228_v60, 14  ;;  %vm3235_vm7 = vcmp.lt.s32.totalorder %v3227_v56, 14 }
 0x545   :  { %5288 = vmatprep.subr.bf16.mxu0 %v5287_v46  ;;  %5320 = vmatprep.subr.bf16.mxu1 %v5319_v12  ;;  %v3981_v52 = vsel %vm3234_vm5, 1.0, %v5458_v3  ;;  %v3983_v48 = vsel %vm3236_vm6, 1.0, %v5458_v3  ;;  %v3982_v25 = vsel %vm3235_vm7, 1.0, %v5458_v3  ;;  %v2910_v46 = vsel %vm330_vm1, %v2895_v36, 0.0 }
 0x546   :  { %vm3237_vm8 = vcmp.lt.s32.totalorder %v3229_v9, 14  ;;  %vm3241_vm12 = vcmp.lt.s32.totalorder %v3233_v43, 14  ;;  %v3985_v36 = vsel %vm3238_vm9, 1.0, %v5458_v3  ;;  %vm3920_vm9 = vcmask 1043456  }
 0x547   :  { %v3984_v21 = vsel %vm3237_vm8, 1.0, %v5458_v3  ;;  %v3988_v24 = vsel %vm3241_vm12, 1.0, %v5458_v3  ;;  %vm3909_vm8 = vcmask 1045504  }
 0x548   :  { %5290 = vmatpush3.bf16.msra.mxu0 %v5289_v40  ;;  %5322 = vmatpush3.bf16.msra.mxu1 %v5321_v8 }
 0x549   :  { %5292 = vmatprep.subr.bf16.mxu0 %v5291_v35  ;;  %5324 = vmatprep.subr.bf16.mxu1 %v5323_v61 }
 0x54c   :  { %5294 = vmatpush3.bf16.msra.mxu0 %v5293_v50  ;;  %5326 = vmatpush3.bf16.msra.mxu1 %v5325_v15 }
 0x54d   :  { %5328 = vmatprep.subr.bf16.mxu0 %v5327_v38  ;;  %5360 = vmatprep.subr.bf16.mxu1 %v5359_v41 }
 0x5b2   :  { %v3055_v6 = vpop.f32.mrb[20].mxu0 }
 0x5b3   :  { %v9639_v22 = vadd.f32 %v3055_v6, %v9404_v18  ;;  %v3209_v31 = vpop.f32.mrb[20].mxu1  ;;  %v3057_v10 = vpop.f32.mrb[21].mxu0 }
 0x5b4   :  { %v9645_v12 = vadd.f32 %v3209_v31, %v9409_v33  ;;  %v9648_v28 = vadd.f32 %v3057_v10, %v9414_v5  ;;  %v3211_v47 = vpop.f32.mrb[21].mxu1  ;;  %v2911_v33 = vsel %vm330_vm1, %v2898_v37, 0.0 }
 0x5b5   :  { %v3258_v18 = vmul.f32 %v9639_v22, %v3981_v52  ;;  %v9655_v39 = vadd.f32 %v3211_v47, %v9419_v19 }
 0x5b6   :  { %v3260_v5 = vmul.f32 %v9645_v12, %v3983_v48  ;;  %v3259_v42 = vmul.f32 %v9648_v28, %v3982_v25  ;;  %v3061_v13 = vpop.f32.mrb[22].mxu0 }
 0x5b7   :  { %v3266_v40 = vmul.f32 %v9639_v22, %v3258_v18  ;;  %v3261_v19 = vmul.f32 %v9655_v39, %v3984_v21  ;;  %v9667_v11 = vadd.f32 %v3061_v13, %v2908_v49  ;;  %v3215_v27 = vpop.f32.mrb[22].mxu1  ;;  %v3063_v55 = vpop.f32.mrb[23].mxu0 }
 0x5b8   :  { %v3268_v37 = vmul.f32 %v9645_v12, %v3260_v5  ;;  %v3274_v8 = vadd.f32 %v3260_v5, %v3258_v18  ;;  %v3267_v35 = vmul.f32 %v9648_v28, %v3259_v42  ;;  %v9672_v63 = vadd.f32 %v3215_v27, %v2910_v46  ;;  %v3217_v23 = vpop.f32.mrb[23].mxu1 }
 0x5b9   :  { %v3269_v59 = vmul.f32 %v9655_v39, %v3261_v19  ;;  %v3275_v61 = vadd.f32 %v3261_v19, %v3259_v42  ;;  %v3262_v16 = vmul.f32 %v9667_v11, %v3985_v36  ;;  %v9676_v26 = vadd.f32 %v3063_v55, %v2909_v7 }
 0x5ba   :  { %v3278_v62 = vadd.f32 %v3268_v37, %v3266_v40  ;;  %v3264_v50 = vmul.f32 %v9672_v63, %v3987_v14  ;;  %v9679_v15 = vadd.f32 %v3217_v23, %v2911_v33 }
 0x5bb   :  { %v3279_v3 = vadd.f32 %v3269_v59, %v3267_v35  ;;  %v3270_v20 = vmul.f32 %v9667_v11, %v3262_v16  ;;  %v3263_v1 = vmul.f32 %v9676_v26, %v3986_v0  ;;  %v5460_v59 = vmov 1966171168  }
 0x5bc   :  { %v3272_v4 = vmul.f32 %v9672_v63, %v3264_v50  ;;  %v3276_v38 = vadd.f32 %v3264_v50, %v3262_v16  ;;  %v3265_v45 = vmul.f32 %v9679_v15, %v3988_v24 }
 0x5bd   :  { %v3271_v41 = vmul.f32 %v9676_v26, %v3263_v1 }
 0x5be   :  { %v3280_v2 = vadd.f32 %v3272_v4, %v3270_v20  ;;  %v3282_v30 = vadd.f32 %v3276_v38, %v3274_v8  ;;  %v3273_v34 = vmul.f32 %v9679_v15, %v3265_v45  ;;  %v3277_v53 = vadd.f32 %v3265_v45, %v3263_v1  ;;  %v3318_v4 = vld [vmem:[%s9960_s11] sm:$0x3] }
 0x5bf   :  { %v3350_v45 = vsub.s32 1, %v5878_v32 }
 0x5c0   :  { %v3283_v58 = vrot.slane %v3282_v30, 4  ;;  %v3298_v54 = vadd.f32 %v3280_v2, %v3278_v62  ;;  %v3281_v60 = vadd.f32 %v3273_v34, %v3271_v41  ;;  %v3289_v29 = vadd.f32 %v3277_v53, %v3275_v61 }
 0x5c1   :  { %v3327_v61 = vunpack.c.l.s4 %v5460_v59  ;;  %v3476_v59 = vld [vmem:[%s9959_s13 + $0x110] sm:$0xff] }
 0x5c2   :  { %v3284_v56 = vadd.f32 %v3283_v58, %v3282_v30  ;;  %v3299_v9 = vrot.slane %v3298_v54, 4  ;;  %v3290_v17 = vrot.slane %v3289_v29, 4  ;;  %v3305_v44 = vadd.f32 %v3281_v60, %v3279_v3 }
 0x5c3   :  { %v3328_v16 = vunpack.c.0.s8 %v3327_v61  ;;  %v3477_v61 = vld [vmem:[%s9959_s13 + $0x118] sm:$0xff] }
 0x5c4   :  { %v3285_v57 = vrot.slane %v3284_v56, 2  ;;  %v3300_v43 = vadd.f32 %v3299_v9, %v3298_v54  ;;  %v3291_v52 = vadd.f32 %v3290_v17, %v3289_v29  ;;  %v3306_v48 = vrot.slane %v3305_v44, 4 }
 0x5c5   :  { %v3331_v50 = vsub.s32 %v3328_v16, %v5878_v32 }
 0x5c6   :  { %v3286_v6 = vadd.f32 %v3285_v57, %v3284_v56  ;;  %v3301_v25 = vrot.slane %v3300_v43, 2  ;;  %v3292_v21 = vrot.slane %v3291_v52, 2  ;;  %v3307_v49 = vadd.f32 %v3306_v48, %v3305_v44  ;;  %v3342_v48 = vld [vmem:[%s9961_s12] sm:$0x3] }
 0x5c8   :  { %v3287_v31 = vrot.slane %v3286_v6, 1  ;;  %v3302_v10 = vadd.f32 %v3301_v25, %v3300_v43  ;;  %v3293_v46 = vadd.f32 %v3292_v21, %v3291_v52  ;;  %v3308_v47 = vrot.slane %v3307_v49, 2  ;;  %v9727_v25 = vld [vmem:[%s9959_s13 + $0x98] sm:$0xff]  ;;  %v9732_v21 = vld [vmem:[%s9959_s13 + $0x190] sm:$0xff] }
 0x5ca   :  { %v3288_v7 = vadd.f32 %v3287_v31, %v3286_v6  ;;  %v3303_v18 = vrot.slane %v3302_v10, 1  ;;  %v3294_v36 = vrot.slane %v3293_v46, 1  ;;  %v3309_v33 = vadd.f32 %v3308_v47, %v3307_v49  ;;  %v3493_v49 = vld [vmem:[%s9959_s13 + $0x198] sm:$0xff] }
 0x5cc   :  { %v3296_v5 = vmul.f32 0.035714287, %v3288_v7  ;;  %v3304_v42 = vadd.f32 %v3303_v18, %v3302_v10  ;;  %v3295_v13 = vadd.f32 %v3294_v36, %v3293_v46  ;;  %v3310_v14 = vrot.slane %v3309_v33, 1 }
 0x5cd   :  { %v5363_v18 = vpack.c.bf16 %v3493_v49, %v9732_v21 }
 0x5ce   :  { %v3312_v0 = vmul.f32 0.035714287, %v3304_v42  ;;  %v3314_v40 = vmul.f32 %v3296_v5, %v3296_v5  ;;  %v3297_v19 = vmul.f32 0.035714287, %v3295_v13  ;;  %v3311_v27 = vadd.f32 %v3310_v14, %v3309_v33 }
 0x5d0   :  { %v3316_v55 = vsub.f32 %v3312_v0, %v3314_v40  ;;  %v3313_v24 = vmul.f32 0.035714287, %v3311_v27  ;;  %v3315_v37 = vmul.f32 %v3297_v19, %v3297_v19 }
 0x5d2   :  { %v3319_v8 = vadd.f32 1e-05, %v3316_v55  ;;  %v3317_v35 = vsub.f32 %v3313_v24, %v3315_v37 }
 0x5d4   :  { %5446 = vrsqrt.f32 %v3319_v8  ;;  %v3320_v23 = vadd.f32 1e-05, %v3317_v35 }
 0x5d6   :  { %5448 = vrsqrt.f32 %v3320_v23 }
 0x5de   :  { %v5447_v62 = vpop.eup %5446 }
 0x5e0   :  { %v5449_v3 = vpop.eup %5448 }
 0x5e1   :  { %v3325_v20 = vcombine.low %v5447_v62, %v5449_v3  ;;  %v3462_v3 = vld [vmem:[%s9959_s13 + $0xa0] sm:$0xff] }
 0x5e3   :  { %v3332_v1 = vrot.slane %v3325_v20, %v3331_v50  ;;  %v3463_v20 = vld [vmem:[%s9959_s13 + $0xa8] sm:$0xff] }
 0x5e5   :  { %v3339_v38 = vrot.slane %v3332_v1, %v3331_v50 }
 0x5e7   :  { %v3341_v41 = vmul.f32 %v3339_v38, %v3318_v4  ;;  %v3494_v38 = vld [vmem:[%s9959_s13 + $0x1a0] sm:$0xff] }
 0x5e9   :  { %v3347_v2 = vrot.slane %v3341_v41, %v6436_v51  ;;  %v3351_v30 = vrot.slane %v3341_v41, %v3350_v45 }
 0x5eb   :  { %v3354_v34 = vmul.f32 %v3347_v2, %v3296_v5  ;;  %v3355_v53 = vmul.f32 %v3351_v30, %v3297_v19  ;;  %v3393_v58 = vrot.slane %v3351_v30, %v6436_v51  ;;  %v3389_v54 = vrot.slane %v3347_v2, %v6436_v51  ;;  %v3444_v19 = vld [vmem:[%s9959_s13 + $0x10] sm:$0xff] }
 0x5ed   :  { %v3358_v60 = vcombine.low %v3354_v34, %v3355_v53  ;;  %v3401_v29 = vmul.f32 %v9679_v15, %v3393_v58  ;;  %v3395_v56 = vmul.f32 %v9648_v28, %v3393_v58  ;;  %v3397_v9 = vmul.f32 %v9655_v39, %v3393_v58  ;;  %v3442_v28 = vld [vmem:[%s9959_s13] sm:$0xff]  ;;  %v3475_v39 = vld [vmem:[%s9959_s13 + $0x108] sm:$0xff] }
 0x5ee   :  { %v3394_v17 = vmul.f32 %v9639_v22, %v3389_v54  ;;  %v3396_v32 = vmul.f32 %v9645_v12, %v3389_v54  ;;  %v3399_v44 = vmul.f32 %v9676_v26, %v3393_v58  ;;  %v3398_v57 = vmul.f32 %v9667_v11, %v3389_v54  ;;  %v3443_v22 = vld [vmem:[%s9959_s13 + $0x8] sm:$0xff]  ;;  %v3474_v12 = vld [vmem:[%s9959_s13 + $0x100] sm:$0xff]  ;;  %v9721_v11 = vld [vmem:[%s9959_s13 + $0x90] sm:$0xff] }
 0x5ef   :  { %v3365_v43 = vrot.slane %v3358_v60, %v3331_v50  ;;  %v3400_v52 = vmul.f32 %v9672_v63, %v3389_v54  ;;  %v5329_v46 = vpack.c.bf16 %v3443_v22, %v3442_v28  ;;  %v5361_v47 = vpack.c.bf16 %v3475_v39, %v3474_v12  ;;  %v3446_v53 = vld [vmem:[%s9959_s13 + $0x20] sm:$0xff]  ;;  %v3447_v58 = vld [vmem:[%s9959_s13 + $0x28] sm:$0xff]  ;;  %v3480_v12 = vld [vmem:[%s9959_s13 + $0x130] sm:$0xff] }
 0x5f0   :  { %v5331_v7 = vpack.c.bf16 %v9727_v25, %v9721_v11  ;;  %v5365_v34 = vpack.c.bf16 %v3477_v61, %v3476_v59  ;;  %v5335_v54 = vpack.c.bf16 %v3463_v20, %v3462_v3  ;;  %v3478_v60 = vld [vmem:[%s9959_s13 + $0x120] sm:$0xff]  ;;  %v3481_v39 = vld [vmem:[%s9959_s13 + $0x138] sm:$0xff]  ;;  %v3499_v25 = vld [vmem:[%s9959_s13 + $0x1c8] sm:$0xff] }
 0x5f1   :  { %v3372_v15 = vrot.slane %v3365_v43, %v3331_v50  ;;  %v3497_v43 = vld [vmem:[%s9959_s13 + $0x1b8] sm:$0xff]  ;;  %v3466_v11 = vld [vmem:[%s9959_s13 + $0xc0] sm:$0xff]  ;;  %v5373_v49 = vpack.c.bf16 %v3481_v39, %v3480_v12 }
 0x5f2   :  { %v3454_v61 = vld [vmem:[%s9959_s13 + $0x60] sm:$0xff] }
 0x5f3   :  { %v3374_v6 = vsub.f32 %v3342_v48, %v3372_v15  ;;  %v3448_v15 = vld [vmem:[%s9959_s13 + $0x30] sm:$0xff] }
 0x5f5   :  { %v3383_v63 = vrot.slane %v3374_v6, %v3350_v45  ;;  %v3379_v26 = vrot.slane %v3374_v6, %v6436_v51  ;;  %v3495_v45 = vld [vmem:[%s9959_s13 + $0x1a8] sm:$0xff]  ;;  %v3449_v6 = vld [vmem:[%s9959_s13 + $0x38] sm:$0xff] }
 0x5f6   :  { %v5341_v21 = vpack.c.bf16 %v3449_v6, %v3448_v15 }
 0x5f7   :  { %v3409_v31 = vrot.slane %v3383_v63, %v6436_v51  ;;  %v3405_v10 = vrot.slane %v3379_v26, %v6436_v51  ;;  %v3445_v51 = vld [vmem:[%s9959_s13 + $0x18] sm:$0xff]  ;;  %v3467_v63 = vld [vmem:[%s9959_s13 + $0xc8] sm:$0xff]  ;;  %v3498_v26 = vld [vmem:[%s9959_s13 + $0x1c0] sm:$0xff] }
 0x5f8   :  { %v5333_v4 = vpack.c.bf16 %v3445_v51, %v3444_v19 }
 0x5f9   :  { %v3411_v36 = vadd.f32 %v3409_v31, %v3395_v56  ;;  %v3413_v33 = vadd.f32 %v3409_v31, %v3397_v9  ;;  %v3410_v5 = vadd.f32 %v3405_v10, %v3394_v17  ;;  %v3412_v42 = vadd.f32 %v3405_v10, %v3396_v32  ;;  %v3464_v56 = vld [vmem:[%s9959_s13 + $0xb0] sm:$0xff] }
 0x5fa   :  { %v3415_v13 = vadd.f32 %v3409_v31, %v3399_v44  ;;  %v3417_v14 = vadd.f32 %v3409_v31, %v3401_v29  ;;  %v3414_v0 = vadd.f32 %v3405_v10, %v3398_v57  ;;  %v3416_v40 = vadd.f32 %v3405_v10, %v3400_v52  ;;  %v3479_v29 = vld [vmem:[%s9959_s13 + $0x128] sm:$0xff]  ;;  %v3465_v44 = vld [vmem:[%s9959_s13 + $0xb8] sm:$0xff]  ;;  %v3496_v57 = vld [vmem:[%s9959_s13 + $0x1b0] sm:$0xff] }
 0x5fb   :  { %vm3419_vm13 = vcmp.gt.f32.partialorder %v3411_v36, 0.0  ;;  %v3427_v27 = vmul.f32 0.2, %v3411_v36  ;;  %vm3421_vm14 = vcmp.gt.f32.partialorder %v3413_v33, 0.0  ;;  %v3429_v55 = vmul.f32 0.2, %v3413_v33 }
 0x5fc   :  { %vm3418_vm15 = vcmp.gt.f32.partialorder %v3410_v5, 0.0  ;;  %v3426_v24 = vmul.f32 0.2, %v3410_v5  ;;  %vm3420_vm0 = vcmp.gt.f32.partialorder %v3412_v42, 0.0  ;;  %v3428_v37 = vmul.f32 0.2, %v3412_v42 }
 0x5fd   :  { %v3435_v8 = vsel %vm3419_vm13, %v3411_v36, %v3427_v27  ;;  %v3437_v35 = vsel %vm3421_vm14, %v3413_v33, %v3429_v55  ;;  %vm3423_vm2 = vcmp.gt.f32.partialorder %v3415_v13, 0.0  ;;  %v3431_v23 = vmul.f32 0.2, %v3415_v13  ;;  %v3450_v31 = vld [vmem:[%s9959_s13 + $0x40] sm:$0xff]  ;;  %v3451_v10 = vld [vmem:[%s9959_s13 + $0x48] sm:$0xff]  ;;  %v3468_v36 = vld [vmem:[%s9959_s13 + $0xd0] sm:$0xff] }
 0x5fe   :  { %3634 = vmatprep.mubr.f32.mxu0 %v3435_v8  ;;  %3709 = vmatprep.mubr.f32.mxu1 %v3437_v35  ;;  %v9754_v16 = vsel %vm3418_vm15, %v3410_v5, %v3426_v24  ;;  %v9756_v62 = vsel %vm3420_vm0, %v3412_v42, %v3428_v37  ;;  %vm3425_vm3 = vcmp.gt.f32.partialorder %v3417_v14, 0.0  ;;  %v3433_v50 = vmul.f32 0.2, %v3417_v14  ;;  %v3469_v33 = vld [vmem:[%s9959_s13 + $0xd8] sm:$0xff]  ;;  %v3500_v5 = vld [vmem:[%s9959_s13 + $0x1d0] sm:$0xff]  ;;  %v3470_v24 = vld [vmem:[%s9959_s13 + $0xe0] sm:$0xff] }
 0x5ff   :  { %3635 = vmatmul.mubr.f32.vlgmr.msra.gmra.mrb[24].mxu0 %v9754_v16  ;;  %3710 = vmatmul.mubr.f32.vlgmr.msra.gmra.mrb[24].mxu1 %v9756_v62  ;;  %vm3422_vm4 = vcmp.gt.f32.partialorder %v3414_v0, 0.0  ;;  %v3430_v1 = vmul.f32 0.2, %v3414_v0  ;;  %vm3424_vm5 = vcmp.gt.f32.partialorder %v3416_v40, 0.0  ;;  %v9773_v41 = vsel %vm3423_vm2, %v3415_v13, %v3431_v23  ;;  %v3501_v42 = vld [vmem:[%s9959_s13 + $0x1d8] sm:$0xff]  ;;  %v3484_v27 = vld [vmem:[%s9959_s13 + $0x150] sm:$0xff] }
 0x600   :  { %5330 = vmatpush3.bf16.msra.mxu0 %v5329_v46  ;;  %5362 = vmatpush3.bf16.msra.mxu1 %v5361_v47  ;;  %v9775_v2 = vsel %vm3425_vm3, %v3417_v14, %v3433_v50  ;;  %v3432_v30 = vmul.f32 0.2, %v3416_v40  ;;  %v5367_v32 = vpack.c.bf16 %v3495_v45, %v3494_v38  ;;  %v5337_v52 = vpack.c.bf16 %v3447_v58, %v3446_v53  ;;  %v3485_v55 = vld [vmem:[%s9959_s13 + $0x158] sm:$0xff]  ;;  %v3471_v37 = vld [vmem:[%s9959_s13 + $0xe8] sm:$0xff]  ;;  %v3472_v38 = vld [vmem:[%s9959_s13 + $0xf0] sm:$0xff] }
 0x601   :  { %3639 = vmatprep.mubr.f32.mxu0 %v9773_v41  ;;  %3714 = vmatprep.mubr.f32.mxu1 %v9775_v2  ;;  %v9795_v9 = vsel %vm3422_vm4, %v3414_v0, %v3430_v1  ;;  %v5369_v48 = vpack.c.bf16 %v3479_v29, %v3478_v60  ;;  %v5339_v28 = vpack.c.bf16 %v3465_v44, %v3464_v56  ;;  %v3452_v0 = vld [vmem:[%s9959_s13 + $0x50] sm:$0xff]  ;;  %v3455_v50 = vld [vmem:[%s9959_s13 + $0x68] sm:$0xff]  ;;  %v3486_v1 = vld [vmem:[%s9959_s13 + $0x160] sm:$0xff] }
 0x602   :  { %5332 = vmatprep.subr.bf16.mxu0 %v5331_v7  ;;  %5364 = vmatprep.subr.bf16.mxu1 %v5363_v18  ;;  %v9798_v17 = vsel %vm3424_vm5, %v3416_v40, %v3432_v30  ;;  %v5371_v22 = vpack.c.bf16 %v3497_v43, %v3496_v57  ;;  %v5343_v46 = vpack.c.bf16 %v3467_v63, %v3466_v11  ;;  %v3482_v7 = vld [vmem:[%s9959_s13 + $0x140] sm:$0xff]  ;;  %v3483_v18 = vld [vmem:[%s9959_s13 + $0x148] sm:$0xff]  ;;  %v3453_v40 = vld [vmem:[%s9959_s13 + $0x58] sm:$0xff] }
 0x603   :  { %3640 = vmatmul.mubr.f32.gmra.mrb[26].mxu0 %v9795_v9  ;;  %3715 = vmatmul.mubr.f32.gmra.mrb[26].mxu1 %v9798_v17  ;;  %v5375_v47 = vpack.c.bf16 %v3499_v25, %v3498_v26  ;;  %v5345_v13 = vpack.c.bf16 %v3451_v10, %v3450_v31  ;;  %v5377_v14 = vpack.c.bf16 %v3483_v18, %v3482_v7  ;;  %v3473_v45 = vld [vmem:[%s9959_s13 + $0xf8] sm:$0xff]  ;;  %v3504_v30 = vld [vmem:[%s9959_s13 + $0x1f0] sm:$0xff] }
 0x604   :  { %5334 = vmatpush3.bf16.msra.mxu0 %v5333_v4  ;;  %5366 = vmatpush3.bf16.msra.mxu1 %v5365_v34  ;;  %v5347_v19 = vpack.c.bf16 %v3469_v33, %v3468_v36  ;;  %v5379_v51 = vpack.c.bf16 %v3501_v42, %v3500_v5  ;;  %v5349_v23 = vpack.c.bf16 %v3453_v40, %v3452_v0  ;;  %v3487_v4 = vld [vmem:[%s9959_s13 + $0x168] sm:$0xff]  ;;  %v3505_v34 = vld [vmem:[%s9959_s13 + $0x1f8] sm:$0xff] }
 0x605   :  { %3792 = vmatprep.mubr.f32.mxu0 %v3435_v8  ;;  %3867 = vmatprep.mubr.f32.mxu1 %v3437_v35  ;;  %v3502_v8 = vld [vmem:[%s9959_s13 + $0x1e0] sm:$0xff]  ;;  %v3503_v35 = vld [vmem:[%s9959_s13 + $0x1e8] sm:$0xff]  ;;  %v5381_v59 = vpack.c.bf16 %v3485_v55, %v3484_v27  ;;  %v5351_v3 = vpack.c.bf16 %v3471_v37, %v3470_v24  ;;  %v5353_v53 = vpack.c.bf16 %v3455_v50, %v3454_v61  ;;  %v3457_v56 = vld [vmem:[%s9959_s13 + $0x78] sm:$0xff] }
 0x606   :  { %5336 = vmatprep.subr.bf16.mxu0 %v5335_v54  ;;  %5368 = vmatprep.subr.bf16.mxu1 %v5367_v32  ;;  %v5383_v20 = vpack.c.bf16 %v3503_v35, %v3502_v8  ;;  %v5385_v58 = vpack.c.bf16 %v3487_v4, %v3486_v1  ;;  %v3456_v54 = vld [vmem:[%s9959_s13 + $0x70] sm:$0xff]  ;;  %v5355_v60 = vpack.c.bf16 %v3473_v45, %v3472_v38  ;;  %v3489_v44 = vld [vmem:[%s9959_s13 + $0x178] sm:$0xff]  ;;  %v3893_v8 = vld [vmem:[%s9964_s16] sm:$0xff] }
 0x607   :  { %v5387_v29 = vpack.c.bf16 %v3505_v34, %v3504_v30  ;;  %v3488_v32 = vld [vmem:[%s9959_s13 + $0x170] sm:$0xff]  ;;  %v5357_v57 = vpack.c.bf16 %v3457_v56, %v3456_v54 }
 0x608   :  { %5338 = vmatpush3.bf16.msra.mxu0 %v5337_v52  ;;  %5370 = vmatpush3.bf16.msra.mxu1 %v5369_v48  ;;  %v5389_v43 = vpack.c.bf16 %v3489_v44, %v3488_v32  ;;  %v23_v52 = vstv %s9962_s15  ;;  %v25_v48 = vstv %s9963_s17 }
 0x609   :  { %5340 = vmatprep.subr.bf16.mxu0 %v5339_v28  ;;  %5372 = vmatprep.subr.bf16.mxu1 %v5371_v22  ;;  %24 = vst [vmem:[#allocation2] sm:$0x1] %v23_v52  ;;  %26 = vst [vmem:[#allocation3] sm:$0x1] %v25_v48 }
 0x60c   :  { %5342 = vmatpush3.bf16.msra.mxu0 %v5341_v21  ;;  %5374 = vmatpush3.bf16.msra.mxu1 %v5373_v49 }
 0x60d   :  { %5344 = vmatprep.subr.bf16.mxu0 %v5343_v46  ;;  %5376 = vmatprep.subr.bf16.mxu1 %v5375_v47 }
 0x610   :  { %5346 = vmatpush3.bf16.msra.mxu0 %v5345_v13  ;;  %5378 = vmatpush3.bf16.msra.mxu1 %v5377_v14  ;;  %v3989_v5 = vld [vmem:[#allocation2] ss:$0 sm:$0xff] }
 0x611   :  { %5348 = vmatprep.subr.bf16.mxu0 %v5347_v19  ;;  %5380 = vmatprep.subr.bf16.mxu1 %v5379_v51 }
 0x614   :  { %5350 = vmatpush3.bf16.msra.mxu0 %v5349_v23  ;;  %5382 = vmatpush3.bf16.msra.mxu1 %v5381_v59  ;;  %v3894_v59 = vld [vmem:[%s9964_s16 + $0x8] sm:$0xff] }
 0x615   :  { %5352 = vmatprep.subr.bf16.mxu0 %v5351_v3  ;;  %5384 = vmatprep.subr.bf16.mxu1 %v5383_v20 }
 0x618   :  { %5354 = vmatpush3.bf16.msra.mxu0 %v5353_v53  ;;  %5386 = vmatpush3.bf16.msra.mxu1 %v5385_v58 }
 0x619   :  { %5356 = vmatprep.subr.bf16.mxu0 %v5355_v60  ;;  %5388 = vmatprep.subr.bf16.mxu1 %v5387_v29 }
 0x61c   :  { %5358 = vmatpush3.bf16.msra.mxu0 %v5357_v57  ;;  %5390 = vmatpush3.bf16.msra.mxu1 %v5389_v43  ;;  %v3990_v43 = vld [vmem:[#allocation3] ss:$0 sm:$0xff] }
 0x61f   :  { %3793 = vmatmul.mubr.f32.vlgmr.msra.gmra.mrb[28].mxu0 %v9754_v16  ;;  %3868 = vmatmul.mubr.f32.vlgmr.msra.gmra.mrb[28].mxu1 %v9756_v62 }
 0x620   :  { %3797 = vmatprep.mubr.f32.mxu0 %v9773_v41  ;;  %3872 = vmatprep.mubr.f32.mxu1 %v9775_v2 }
 0x623   :  { %3798 = vmatmul.mubr.f32.gmra.mrb[30].mxu0 %v9795_v9  ;;  %3873 = vmatmul.mubr.f32.gmra.mrb[30].mxu1 %v9798_v17 }
 0x6d2   :  { %v4023_v16 = vpop.f32.mrb[24].mxu0  ;;  %v4061_v62 = vpop.f32.mrb[24].mxu1 }
 0x6d3   :  { %v4024_v15 = vpop.f32.mrb[25].mxu0  ;;  %v4062_v41 = vpop.f32.mrb[25].mxu1 }
 0x6d4   :  { %v4025_v6 = vadd.f32 %v4024_v15, %v4023_v16  ;;  %v4063_v2 = vadd.f32 %v4062_v41, %v4061_v62 }
 0x6d6   :  { %v3712_v28 = vadd.f32 %v4063_v2, %v4025_v6  ;;  %v4026_v9 = vpop.f32.mrb[26].mxu0  ;;  %v4064_v22 = vpop.f32.mrb[26].mxu1 }
 0x6d7   :  { %v4027_v17 = vpop.f32.mrb[27].mxu0  ;;  %v4065_v12 = vpop.f32.mrb[27].mxu1 }
 0x6d8   :  { %v4028_v39 = vadd.f32 %v4027_v17, %v4026_v9  ;;  %v4066_v11 = vadd.f32 %v4065_v12, %v4064_v22  ;;  %v3722_v26 = vrot.slane %v3712_v28, 1 }
 0x6da   :  { %v3717_v63 = vadd.f32 %v4066_v11, %v4028_v39 }
 0x6dc   :  { %v3723_v25 = vrot.slane %v3717_v63, 1 }
 0x6de   :  { %v3724_v21 = vsel %vm330_vm1, %v3722_v26, %v3723_v25  ;;  %v3727_v19 = vsel %vm330_vm1, %v3723_v25, 0.0 }
 0x6f2   :  { %v4099_v49 = vpop.f32.mrb[28].mxu0  ;;  %v4137_v31 = vpop.f32.mrb[28].mxu1 }
 0x6f3   :  { %v4100_v10 = vpop.f32.mrb[29].mxu0  ;;  %v4138_v46 = vpop.f32.mrb[29].mxu1 }
 0x6f4   :  { %v4101_v47 = vadd.f32 %v4100_v10, %v4099_v49  ;;  %v4139_v7 = vadd.f32 %v4138_v46, %v4137_v31 }
 0x6f6   :  { %v3795_v18 = vadd.f32 %v4101_v47, %v3724_v21  ;;  %v4102_v36 = vpop.f32.mrb[30].mxu0  ;;  %v4140_v33 = vpop.f32.mrb[30].mxu1 }
 0x6f7   :  { %v4103_v42 = vpop.f32.mrb[31].mxu0  ;;  %v4141_v13 = vpop.f32.mrb[31].mxu1 }
 0x6f8   :  { %v3870_v14 = vadd.f32 %v4139_v7, %v3795_v18  ;;  %v4104_v0 = vadd.f32 %v4103_v42, %v4102_v36  ;;  %v4142_v40 = vadd.f32 %v4141_v13, %v4140_v33 }
 0x6fa   :  { %v3885_v51 = vadd.f32 %v3989_v5, %v3870_v14  ;;  %v3800_v27 = vadd.f32 %v4104_v0, %v3727_v19 }
 0x6fc   :  { %vm3887_vm6 = vcmp.gt.f32.partialorder %v3885_v51, 0.0  ;;  %v3889_v55 = vmul.f32 0.2, %v3885_v51  ;;  %v3875_v24 = vadd.f32 %v4142_v40, %v3800_v27 }
 0x6fe   :  { %v3891_v37 = vsel %vm3887_vm6, %v3885_v51, %v3889_v55  ;;  %v3886_v35 = vadd.f32 %v3989_v5, %v3875_v24 }
 0x6ff   :  { %v3895_v61 = vmul.f32 %v3893_v8, %v3891_v37 }
 0x700   :  { %vm3888_vm7 = vcmp.gt.f32.partialorder %v3886_v35, 0.0  ;;  %v3890_v23 = vmul.f32 0.2, %v3886_v35 }
 0x701   :  { %v3899_v20 = vrot.slane %v3895_v61, 1 }
 0x702   :  { %v3892_v50 = vsel %vm3888_vm7, %v3886_v35, %v3890_v23 }
 0x703   :  { %v3896_v3 = vmul.f32 %v3894_v59, %v3892_v50 }
 0x705   :  { %v3900_v1 = vrot.slane %v3896_v3, 1 }
 0x707   :  { %v3901_v4 = vsel %vm330_vm1, %v3899_v20, %v3900_v1  ;;  %v3904_v38 = vsel %vm330_vm1, %v3900_v1, 0.0  ;;  %vm3950_vm1 = vcmask 7168  }
 0x708   :  { %v3905_v45 = vadd.f32 %v3901_v4, %v3895_v61  ;;  %v3906_v30 = vadd.f32 %v3904_v38, %v3896_v3 }
 0x70a   :  { %v3910_v34 = vrot.slane %v3905_v45, 2  ;;  %v3911_v53 = vrot.slane %v3906_v30, 2 }
 0x70c   :  { %v3912_v58 = vsel %vm3909_vm8, %v3910_v34, %v3911_v53  ;;  %v3915_v54 = vsel %vm3909_vm8, %v3911_v53, 0.0 }
 0x70d   :  { %v3916_v60 = vadd.f32 %v3912_v58, %v3905_v45  ;;  %v3917_v29 = vadd.f32 %v3915_v54, %v3906_v30 }
 0x70f   :  { %v3921_v56 = vrot.slane %v3916_v60, 4  ;;  %v3922_v32 = vrot.slane %v3917_v29, 4 }
 0x711   :  { %v3923_v44 = vsel %vm3920_vm9, %v3921_v56, %v3922_v32  ;;  %v3926_v57 = vsel %vm3920_vm9, %v3922_v32, 0.0 }
 0x712   :  { %v3927_v52 = vadd.f32 %v3923_v44, %v3916_v60  ;;  %v3928_v48 = vadd.f32 %v3926_v57, %v3917_v29 }
 0x714   :  { %v3936_v16 = vadd.f32 %v3990_v43, %v3927_v52  ;;  %v3937_v62 = vadd.f32 %v3990_v43, %v3928_v48 }
 0x716   :  { %v3938_v15 = vsub.f32 0.0, %v3936_v16  ;;  %v3939_v41 = vsub.f32 0.0, %v3937_v62 }
 0x718   :  { %v3940_v6 = vmul.f32 1.442695, %v3938_v15  ;;  %v3942_v2 = vmul.f32 1.442695, %v3939_v41 }
 0x71a   :  { %5450 = vpow2.f32 %v3940_v6 }
 0x71b   :  { %5452 = vpow2.f32 %v3942_v2 }
 0x724   :  { %v5451_v28 = vpop.eup %5450 }
 0x725   :  { %v5453_v9 = vpop.eup %5452  ;;  %v3944_v22 = vadd.f32 1.0, %v5451_v28 }
 0x726   :  { %v3945_v17 = vadd.f32 1.0, %v5453_v9 }
 0x727   :  { %5454 = vrcp.f32 %v3944_v22 }
 0x728   :  { %5456 = vrcp.f32 %v3945_v17 }
 0x731   :  { %v5455_v12 = vpop.eup %5454 }
 0x732   :  { %v5457_v39 = vpop.eup %5456  ;;  %3951 = vst.msk [vmem:[%s9965_s18] sm:$0xff] %vm3950_vm1, %v5455_v12 }
 0x733   :  { %3952 = vst.msk [vmem:[%s9965_s18 + $0x8] sm:$0xff] %vm3950_vm1, %v5457_v39 }

</bundles_post_ra>
